<compile_context>
chip_gen: v5e
topology: v5e:2x2
jax: 0.10.0
libtpu: 0.0.40
codegen_flags: <defaults>
</compile_context>

<pallas_src>
import functools

import jax
import jax.numpy as jnp
from jax import lax
from jax.experimental import pallas as pl
from jax.experimental.pallas import tpu as pltpu

FC_HIDDEN = 256  # FiLMModulation's fc width is hard-coded to 256 in the PyTorch module.


def _layernorm(x, w, b, eps=1e-5):
    mu = jnp.mean(x, axis=-1, keepdims=True)
    var = jnp.mean(jnp.square(x - mu), axis=-1, keepdims=True)
    return (x - mu) * lax.rsqrt(var + eps) * w + b


def film_net_kernel(cond_ref, coords_ref,
                    wf1_ref, bf1_ref, wf2_ref, bf2_ref, wf3_ref, bf3_ref,
                    w_in_ref, b_in_ref, w_sc_ref, b_sc_ref,
                    w_hid_ref, b_hid_ref, ln_w_ref, ln_b_ref,
                    w_out_ref, b_out_ref,
                    out_ref, *, num_film, num_extra, hidden_dim, use_sine):
    f32 = jnp.float32
    bf16 = jnp.bfloat16

    def mm(x_f32, w_bf16):
        # bf16 x bf16 operands on the MXU, f32 accumulation.
        return jnp.dot(x_f32.astype(bf16), w_bf16, preferred_element_type=f32)

    act = jnp.sin if use_sine else (lambda v: jnp.maximum(v, 0.0))

    # ---------- FiLMModulation: cond -> [gamma | beta] (f32 epilogue) ----------
    h = jnp.maximum(mm(cond_ref[...], wf1_ref[...]) + bf1_ref[...], 0.0)
    h = jnp.maximum(mm(h, wf2_ref[...]) + bf2_ref[...], 0.0)
    mod = mm(h, wf3_ref[...]) + bf3_ref[...]          # (B_TILE, 2*hidden*num_film)
    chunk = hidden_dim * num_film                     # gamma|beta split (128-aligned)

    # ---------- ModulatedMLP on coords ----------
    h = coords_ref[...]                               # (B_TILE, coord_pad) f32
    for i in range(num_film):
        h_in = h
        if i == 0:
            y = mm(h, w_in_ref[...]) + b_in_ref[...]
            sc = mm(h_in, w_sc_ref[...]) + b_sc_ref[...]   # shortcut Linear(coord->H)
        else:
            y = mm(h, w_hid_ref[i - 1]) + b_hid_ref[pl.ds(i - 1, 1), :]
            sc = h_in                                      # Identity shortcut
        y = act(_layernorm(y, ln_w_ref[pl.ds(i, 1), :], ln_b_ref[pl.ds(i, 1), :]))
        g = mod[:, i * hidden_dim:(i + 1) * hidden_dim]
        b = mod[:, chunk + i * hidden_dim: chunk + (i + 1) * hidden_dim]
        h = g * y + b
        h = h + sc

    for j in range(num_extra):
        w_idx = (num_film - 1) + j
        ln_idx = num_film + j
        y = mm(h, w_hid_ref[w_idx]) + b_hid_ref[pl.ds(w_idx, 1), :]
        h = act(_layernorm(y, ln_w_ref[pl.ds(ln_idx, 1), :], ln_b_ref[pl.ds(ln_idx, 1), :]))

    # Lane-dense (B_TILE, 128) store; wrapper slices to output_dim.
    out_ref[...] = mm(h, w_out_ref[...]) + b_out_ref[...]


def film_net_forward(coords, cond, params, *, hidden_dim, num_layers, extra_layers,
                     output_dim, use_sine=True, b_tile=8):
    """Pallas implementation of FiLMNet.forward(coords, cond)."""
    B, coord_dim = coords.shape
    cond_dim = cond.shape[1]
    num_film = num_layers - 1
    n_mod = 2 * hidden_dim * num_film

    assert B % b_tile == 0 and b_tile % 8 == 0, "pad batch to a multiple of the tile"

    (wf1, bf1, wf2, bf2, wf3, bf3,
     w_in, b_in, w_sc, b_sc, w_hid, b_hid, ln_w, ln_b, w_out, b_out) = params

    f32, bf16 = jnp.float32, jnp.bfloat16
    coord_pad = 16     # zero-pad tiny K dim to a clean bf16 sublane tile
    out_pad = 128      # lane-dense output store; sliced in the wrapper

    coords_p = jnp.zeros((B, coord_pad), f32).at[:, :coord_dim].set(coords)
    w_in_p = jnp.zeros((coord_pad, hidden_dim), f32).at[:coord_dim].set(w_in).astype(bf16)
    w_sc_p = jnp.zeros((coord_pad, hidden_dim), f32).at[:coord_dim].set(w_sc).astype(bf16)
    w_out_p = jnp.zeros((hidden_dim, out_pad), f32).at[:, :output_dim].set(w_out).astype(bf16)
    b_out_p = jnp.zeros((1, out_pad), f32).at[:, :output_dim].set(b_out[None, :])

    inputs = (
        cond.astype(f32), coords_p,
        wf1.astype(bf16), bf1.reshape(1, -1).astype(f32),
        wf2.astype(bf16), bf2.reshape(1, -1).astype(f32),
        wf3.astype(bf16), bf3.reshape(1, -1).astype(f32),
        w_in_p, b_in.reshape(1, -1).astype(f32),
        w_sc_p, b_sc.reshape(1, -1).astype(f32),
        w_hid.astype(bf16), b_hid.astype(f32),
        ln_w.astype(f32), ln_b.astype(f32),
        w_out_p, b_out_p,
    )

    def batch_spec(shape):
        return pl.BlockSpec(shape, lambda i: (i, 0))

    def resident_spec(arr):
        zeros = (0,) * arr.ndim
        return pl.BlockSpec(arr.shape, lambda i: zeros)   # DMA'd once, VMEM-resident

    in_specs = [batch_spec((b_tile, cond_dim)), batch_spec((b_tile, coord_pad))]
    in_specs += [resident_spec(a) for a in inputs[2:]]
    out_spec = pl.BlockSpec((b_tile, out_pad), lambda i: (i, 0))

    flops = 2 * B * (cond_dim * FC_HIDDEN + FC_HIDDEN * FC_HIDDEN + FC_HIDDEN * n_mod
                     + 2 * coord_pad * hidden_dim
                     + (num_film - 1 + extra_layers) * hidden_dim * hidden_dim
                     + hidden_dim * out_pad)
    transcendentals = B * (num_film + extra_layers) * hidden_dim
    bytes_accessed = sum(int(a.size) * a.dtype.itemsize for a in inputs) + B * out_pad * 4

    kernel = functools.partial(film_net_kernel, num_film=num_film, num_extra=extra_layers,
                               hidden_dim=hidden_dim, use_sine=use_sine)

    out = pl.pallas_call(
        kernel,
        out_shape=jax.ShapeDtypeStruct((B, out_pad), f32),
        grid=(B // b_tile,),
        in_specs=in_specs,
        out_specs=out_spec,
        compiler_params=pltpu.CompilerParams(dimension_semantics=("parallel",)),
        cost_estimate=pl.CostEstimate(flops=int(flops),
                                      transcendentals=int(transcendentals),
                                      bytes_accessed=int(bytes_accessed)),
    )(*inputs)
    return out[:, :output_dim]


def init_params(key, *, cond_dim, coord_dim, output_dim, hidden_dim, num_layers, extra_layers):
    """Deterministic synthetic parameters (shapes match the nn.Linear/LayerNorm layers,
    stored as (in_features, out_features) so kernels compute x @ W + b)."""
    num_film = num_layers - 1
    n_mod = 2 * hidden_dim * num_film
    n_hid = (num_film - 1) + extra_layers            # layers[1:], extra[:]
    n_ln = num_film + extra_layers                   # norms + extra_norms
    keys = iter(jax.random.split(key, 32))

    def lin(fan_in, fan_out):
        s = 1.0 / jnp.sqrt(jnp.float32(fan_in))
        w = jax.random.uniform(next(keys), (fan_in, fan_out), jnp.float32, -s, s)
        b = jax.random.uniform(next(keys), (fan_out,), jnp.float32, -s, s)
        return w, b

    wf1, bf1 = lin(cond_dim, FC_HIDDEN)
    wf2, bf2 = lin(FC_HIDDEN, FC_HIDDEN)
    wf3, bf3 = lin(FC_HIDDEN, n_mod)
    w_in, b_in = lin(coord_dim, hidden_dim)
    w_sc, b_sc = lin(coord_dim, hidden_dim)
    w_hid, b_hid = [], []
    for _ in range(n_hid):
        w, b = lin(hidden_dim, hidden_dim)
        w_hid.append(w)
        b_hid.append(b)
    w_hid, b_hid = jnp.stack(w_hid), jnp.stack(b_hid)
    ln_w = 1.0 + 0.1 * jax.random.normal(next(keys), (n_ln, hidden_dim), jnp.float32)
    ln_b = 0.1 * jax.random.normal(next(keys), (n_ln, hidden_dim), jnp.float32)
    w_out, b_out = lin(hidden_dim, output_dim)
    return (wf1, bf1, wf2, bf2, wf3, bf3, w_in, b_in, w_sc, b_sc,
            w_hid, b_hid, ln_w, ln_b, w_out, b_out)


def film_net_ref(coords, cond, params, *, hidden_dim, num_layers, extra_layers, use_sine=True):
    """Pure-JAX reference with the SAME numerics as the kernel (bf16 matmul operands,
    f32 accumulation, f32 element-wise path)."""
    (wf1, bf1, wf2, bf2, wf3, bf3, w_in, b_in, w_sc, b_sc,
     w_hid, b_hid, ln_w, ln_b, w_out, b_out) = params
    bf16, f32 = jnp.bfloat16, jnp.float32

    def mm(x, w):
        return jnp.dot(x.astype(bf16), w.astype(bf16), preferred_element_type=f32)

    def ln(x, w, b, eps=1e-5):
        mu = jnp.mean(x, axis=-1, keepdims=True)
        var = jnp.mean(jnp.square(x - mu), axis=-1, keepdims=True)
        return (x - mu) * lax.rsqrt(var + eps) * w + b

    act = jnp.sin if use_sine else (lambda v: jnp.maximum(v, 0.0))

    h = jnp.maximum(mm(cond, wf1) + bf1, 0.0)
    h = jnp.maximum(mm(h, wf2) + bf2, 0.0)
    mod = mm(h, wf3) + bf3
    chunk = hidden_dim * (num_layers - 1)
    gamma, beta = mod[:, :chunk], mod[:, chunk:]

    h = coords.astype(f32)
    for i in range(num_layers - 1):
        h_in = h
        if i == 0:
            y = mm(h, w_in) + b_in
            sc = mm(h_in, w_sc) + b_sc
        else:
            y = mm(h, w_hid[i - 1]) + b_hid[i - 1]
            sc = h_in
        y = act(ln(y, ln_w[i], ln_b[i]))
        g = gamma[:, i * hidden_dim:(i + 1) * hidden_dim]
        b = beta[:, i * hidden_dim:(i + 1) * hidden_dim]
        h = g * y + b
        h = h + sc
    for j in range(extra_layers):
        w_idx = (num_layers - 2) + j
        ln_idx = (num_layers - 1) + j
        y = mm(h, w_hid[w_idx]) + b_hid[w_idx]
        h = act(ln(y, ln_w[ln_idx], ln_b[ln_idx]))
    return mm(h, w_out) + b_out


if __name__ == "__main__":
    # Small shapes consistent with the module (hidden_dim kept a multiple of 128
    # so the FiLM gamma/beta chunk boundaries are lane-aligned).
    batch = 8
    cond_dim = 32
    coord_dim = 3
    output_dim = 3
    hidden_dim = 128
    num_layers = 4
    extra_layers = 3

    key = jax.random.PRNGKey(0)
    k_coords, k_cond, k_params = jax.random.split(key, 3)
    coords = jax.random.normal(k_coords, (batch, coord_dim), jnp.float32)
    cond = jax.random.normal(k_cond, (batch, cond_dim), jnp.float32)
    params = init_params(k_params, cond_dim=cond_dim, coord_dim=coord_dim,
                         output_dim=output_dim, hidden_dim=hidden_dim,
                         num_layers=num_layers, extra_layers=extra_layers)

    out = film_net_forward(coords, cond, params, hidden_dim=hidden_dim,
                           num_layers=num_layers, extra_layers=extra_layers,
                           output_dim=output_dim, use_sine=True)
    out = jax.block_until_ready(out)

    ref = film_net_ref(coords, cond, params, hidden_dim=hidden_dim,
                       num_layers=num_layers, extra_layers=extra_layers, use_sine=True)
    assert out.shape == (batch, output_dim)
    assert jnp.allclose(out, ref, atol=2e-2, rtol=2e-2)
    print("KERNEL_OK")
</pallas_src>

<mosaic_0001>
module attributes {stable_mosaic.version = 11 : i64} {
  func.func @film_net_kernel(%arg0: i32, %arg1: memref<8x32xf32, #tpu.memory_space<vmem>>, %arg2: memref<8x16xf32, #tpu.memory_space<vmem>>, %arg3: memref<32x256xbf16, #tpu.memory_space<vmem>>, %arg4: memref<1x256xf32, #tpu.memory_space<vmem>>, %arg5: memref<256x256xbf16, #tpu.memory_space<vmem>>, %arg6: memref<1x256xf32, #tpu.memory_space<vmem>>, %arg7: memref<256x768xbf16, #tpu.memory_space<vmem>>, %arg8: memref<1x768xf32, #tpu.memory_space<vmem>>, %arg9: memref<16x128xbf16, #tpu.memory_space<vmem>>, %arg10: memref<1x128xf32, #tpu.memory_space<vmem>>, %arg11: memref<16x128xbf16, #tpu.memory_space<vmem>>, %arg12: memref<1x128xf32, #tpu.memory_space<vmem>>, %arg13: memref<5x128x128xbf16, #tpu.memory_space<vmem>>, %arg14: memref<5x128xf32, #tpu.memory_space<vmem>>, %arg15: memref<6x128xf32, #tpu.memory_space<vmem>>, %arg16: memref<6x128xf32, #tpu.memory_space<vmem>>, %arg17: memref<128x128xbf16, #tpu.memory_space<vmem>>, %arg18: memref<1x128xf32, #tpu.memory_space<vmem>>, %arg19: memref<8x128xf32, #tpu.memory_space<vmem>>) attributes {dimension_semantics = [#tpu.dimension_semantics<parallel>], iteration_bounds = array<i64: 1>, scalar_prefetch = 0 : i64, scratch_operands = 0 : i64, tpu.core_type = #tpu.core_type<tc>, window_params = [{transform_indices = @transform_0, window_bounds = array<i64: 8, 32>}, {transform_indices = @transform_1, window_bounds = array<i64: 8, 16>}, {pipeline_mode = #tpu.pipeline_mode<synchronous>, transform_indices = @transform_2, window_bounds = array<i64: 32, 256>}, {pipeline_mode = #tpu.pipeline_mode<synchronous>, transform_indices = @transform_3, window_bounds = array<i64: 1, 256>}, {pipeline_mode = #tpu.pipeline_mode<synchronous>, transform_indices = @transform_4, window_bounds = array<i64: 256, 256>}, {pipeline_mode = #tpu.pipeline_mode<synchronous>, transform_indices = @transform_5, window_bounds = array<i64: 1, 256>}, {pipeline_mode = #tpu.pipeline_mode<synchronous>, transform_indices = @transform_6, window_bounds = array<i64: 256, 768>}, {pipeline_mode = #tpu.pipeline_mode<synchronous>, transform_indices = @transform_7, window_bounds = array<i64: 1, 768>}, {pipeline_mode = #tpu.pipeline_mode<synchronous>, transform_indices = @transform_8, window_bounds = array<i64: 16, 128>}, {pipeline_mode = #tpu.pipeline_mode<synchronous>, transform_indices = @transform_9, window_bounds = array<i64: 1, 128>}, {pipeline_mode = #tpu.pipeline_mode<synchronous>, transform_indices = @transform_10, window_bounds = array<i64: 16, 128>}, {pipeline_mode = #tpu.pipeline_mode<synchronous>, transform_indices = @transform_11, window_bounds = array<i64: 1, 128>}, {pipeline_mode = #tpu.pipeline_mode<synchronous>, transform_indices = @transform_12, window_bounds = array<i64: 5, 128, 128>}, {pipeline_mode = #tpu.pipeline_mode<synchronous>, transform_indices = @transform_13, window_bounds = array<i64: 5, 128>}, {pipeline_mode = #tpu.pipeline_mode<synchronous>, transform_indices = @transform_14, window_bounds = array<i64: 6, 128>}, {pipeline_mode = #tpu.pipeline_mode<synchronous>, transform_indices = @transform_15, window_bounds = array<i64: 6, 128>}, {pipeline_mode = #tpu.pipeline_mode<synchronous>, transform_indices = @transform_16, window_bounds = array<i64: 128, 128>}, {pipeline_mode = #tpu.pipeline_mode<synchronous>, transform_indices = @transform_17, window_bounds = array<i64: 1, 128>}, {transform_indices = @transform_18, window_bounds = array<i64: 8, 128>}]} {
    %c0 = arith.constant 0 : index
    %c0_0 = arith.constant 0 : index
    %0 = vector.load %arg1[%c0, %c0_0] : memref<8x32xf32, #tpu.memory_space<vmem>>, vector<8x32xf32>
    %c0_1 = arith.constant 0 : index
    %c0_2 = arith.constant 0 : index
    %1 = vector.load %arg3[%c0_1, %c0_2] : memref<32x256xbf16, #tpu.memory_space<vmem>>, vector<32x256xbf16>
    %2 = arith.truncf %0 : vector<8x32xf32> to vector<8x32xbf16>
    %cst = arith.constant dense<0.000000e+00> : vector<8x256xf32>
    %3 = tpu.matmul %2, %1, %cst {dimension_numbers = #tpu.dot_dimension_numbers<[1], [0], [0], [1], [0, 0, 1, 1], [], []>} : vector<8x32xbf16>, vector<32x256xbf16>, vector<8x256xf32> -> vector<8x256xf32>
    %c0_3 = arith.constant 0 : index
    %c0_4 = arith.constant 0 : index
    %4 = vector.load %arg4[%c0_3, %c0_4] : memref<1x256xf32, #tpu.memory_space<vmem>>, vector<1x256xf32>
    %5 = vector.broadcast %4 : vector<1x256xf32> to vector<8x256xf32>
    %6 = arith.addf %3, %5 : vector<8x256xf32>
    %cst_5 = arith.constant 0.000000e+00 : f32
    %7 = vector.broadcast %cst_5 : f32 to vector<8x256xf32>
    %8 = arith.maximumf %6, %7 : vector<8x256xf32>
    %c0_6 = arith.constant 0 : index
    %c0_7 = arith.constant 0 : index
    %9 = vector.load %arg5[%c0_6, %c0_7] : memref<256x256xbf16, #tpu.memory_space<vmem>>, vector<256x256xbf16>
    %10 = arith.truncf %8 : vector<8x256xf32> to vector<8x256xbf16>
    %cst_8 = arith.constant dense<0.000000e+00> : vector<8x256xf32>
    %11 = tpu.matmul %10, %9, %cst_8 {dimension_numbers = #tpu.dot_dimension_numbers<[1], [0], [0], [1], [0, 0, 1, 1], [], []>} : vector<8x256xbf16>, vector<256x256xbf16>, vector<8x256xf32> -> vector<8x256xf32>
    %c0_9 = arith.constant 0 : index
    %c0_10 = arith.constant 0 : index
    %12 = vector.load %arg6[%c0_9, %c0_10] : memref<1x256xf32, #tpu.memory_space<vmem>>, vector<1x256xf32>
    %13 = vector.broadcast %12 : vector<1x256xf32> to vector<8x256xf32>
    %14 = arith.addf %11, %13 : vector<8x256xf32>
    %cst_11 = arith.constant 0.000000e+00 : f32
    %15 = vector.broadcast %cst_11 : f32 to vector<8x256xf32>
    %16 = arith.maximumf %14, %15 : vector<8x256xf32>
    %c0_12 = arith.constant 0 : index
    %c0_13 = arith.constant 0 : index
    %17 = vector.load %arg7[%c0_12, %c0_13] : memref<256x768xbf16, #tpu.memory_space<vmem>>, vector<256x768xbf16>
    %18 = arith.truncf %16 : vector<8x256xf32> to vector<8x256xbf16>
    %cst_14 = arith.constant dense<0.000000e+00> : vector<8x768xf32>
    %19 = tpu.matmul %18, %17, %cst_14 {dimension_numbers = #tpu.dot_dimension_numbers<[1], [0], [0], [1], [0, 0, 1, 1], [], []>} : vector<8x256xbf16>, vector<256x768xbf16>, vector<8x768xf32> -> vector<8x768xf32>
    %c0_15 = arith.constant 0 : index
    %c0_16 = arith.constant 0 : index
    %20 = vector.load %arg8[%c0_15, %c0_16] : memref<1x768xf32, #tpu.memory_space<vmem>>, vector<1x768xf32>
    %21 = vector.broadcast %20 : vector<1x768xf32> to vector<8x768xf32>
    %22 = arith.addf %19, %21 : vector<8x768xf32>
    %c0_17 = arith.constant 0 : index
    %c0_18 = arith.constant 0 : index
    %23 = vector.load %arg2[%c0_17, %c0_18] : memref<8x16xf32, #tpu.memory_space<vmem>>, vector<8x16xf32>
    %c0_19 = arith.constant 0 : index
    %c0_20 = arith.constant 0 : index
    %24 = vector.load %arg9[%c0_19, %c0_20] : memref<16x128xbf16, #tpu.memory_space<vmem>>, vector<16x128xbf16>
    %25 = arith.truncf %23 : vector<8x16xf32> to vector<8x16xbf16>
    %cst_21 = arith.constant dense<0.000000e+00> : vector<8x128xf32>
    %26 = tpu.matmul %25, %24, %cst_21 {dimension_numbers = #tpu.dot_dimension_numbers<[1], [0], [0], [1], [0, 0, 1, 1], [], []>} : vector<8x16xbf16>, vector<16x128xbf16>, vector<8x128xf32> -> vector<8x128xf32>
    %c0_22 = arith.constant 0 : index
    %c0_23 = arith.constant 0 : index
    %27 = vector.load %arg10[%c0_22, %c0_23] : memref<1x128xf32, #tpu.memory_space<vmem>>, vector<1x128xf32>
    %28 = vector.broadcast %27 : vector<1x128xf32> to vector<8x128xf32>
    %29 = arith.addf %26, %28 : vector<8x128xf32>
    %c0_24 = arith.constant 0 : index
    %c0_25 = arith.constant 0 : index
    %30 = vector.load %arg11[%c0_24, %c0_25] : memref<16x128xbf16, #tpu.memory_space<vmem>>, vector<16x128xbf16>
    %31 = arith.truncf %23 : vector<8x16xf32> to vector<8x16xbf16>
    %cst_26 = arith.constant dense<0.000000e+00> : vector<8x128xf32>
    %32 = tpu.matmul %31, %30, %cst_26 {dimension_numbers = #tpu.dot_dimension_numbers<[1], [0], [0], [1], [0, 0, 1, 1], [], []>} : vector<8x16xbf16>, vector<16x128xbf16>, vector<8x128xf32> -> vector<8x128xf32>
    %c0_27 = arith.constant 0 : index
    %c0_28 = arith.constant 0 : index
    %33 = vector.load %arg12[%c0_27, %c0_28] : memref<1x128xf32, #tpu.memory_space<vmem>>, vector<1x128xf32>
    %34 = vector.broadcast %33 : vector<1x128xf32> to vector<8x128xf32>
    %35 = arith.addf %32, %34 : vector<8x128xf32>
    %c0_29 = arith.constant 0 : index
    %c0_30 = arith.constant 0 : index
    %36 = vector.load %arg15[%c0_29, %c0_30] : memref<6x128xf32, #tpu.memory_space<vmem>>, vector<1x128xf32>
    %c0_31 = arith.constant 0 : index
    %c0_32 = arith.constant 0 : index
    %37 = vector.load %arg16[%c0_31, %c0_32] : memref<6x128xf32, #tpu.memory_space<vmem>>, vector<1x128xf32>
    %cst_33 = arith.constant dense<0.000000e+00> : vector<8xf32>
    %38 = vector.multi_reduction <add>, %29, %cst_33 [1] : vector<8x128xf32> to vector<8xf32>
    %39 = vector.shape_cast %38 : vector<8xf32> to vector<8x1xf32>
    %cst_34 = arith.constant 1.280000e+02 : f32
    %40 = vector.broadcast %cst_34 : f32 to vector<8x1xf32>
    %41 = arith.divf %39, %40 : vector<8x1xf32>
    %42 = vector.broadcast %41 : vector<8x1xf32> to vector<8x128xf32>
    %43 = arith.subf %29, %42 : vector<8x128xf32>
    %44 = arith.mulf %43, %43 : vector<8x128xf32>
    %cst_35 = arith.constant dense<0.000000e+00> : vector<8xf32>
    %45 = vector.multi_reduction <add>, %44, %cst_35 [1] : vector<8x128xf32> to vector<8xf32>
    %46 = vector.shape_cast %45 : vector<8xf32> to vector<8x1xf32>
    %cst_36 = arith.constant 1.280000e+02 : f32
    %47 = vector.broadcast %cst_36 : f32 to vector<8x1xf32>
    %48 = arith.divf %46, %47 : vector<8x1xf32>
    %49 = vector.broadcast %41 : vector<8x1xf32> to vector<8x128xf32>
    %50 = arith.subf %29, %49 : vector<8x128xf32>
    %cst_37 = arith.constant 9.99999974E-6 : f32
    %51 = vector.broadcast %cst_37 : f32 to vector<8x1xf32>
    %52 = arith.addf %48, %51 : vector<8x1xf32>
    %53 = math.rsqrt %52 : vector<8x1xf32>
    %54 = vector.broadcast %53 : vector<8x1xf32> to vector<8x128xf32>
    %55 = arith.mulf %50, %54 : vector<8x128xf32>
    %56 = vector.broadcast %36 : vector<1x128xf32> to vector<8x128xf32>
    %57 = arith.mulf %55, %56 : vector<8x128xf32>
    %58 = vector.broadcast %37 : vector<1x128xf32> to vector<8x128xf32>
    %59 = arith.addf %57, %58 : vector<8x128xf32>
    %60 = math.sin %59 : vector<8x128xf32>
    %61 = vector.extract_strided_slice %22 {offsets = [0, 0], sizes = [8, 128], strides = [1, 1]} : vector<8x768xf32> to vector<8x128xf32>
    %62 = vector.extract_strided_slice %22 {offsets = [0, 384], sizes = [8, 128], strides = [1, 1]} : vector<8x768xf32> to vector<8x128xf32>
    %63 = arith.mulf %61, %60 : vector<8x128xf32>
    %64 = arith.addf %63, %62 : vector<8x128xf32>
    %65 = arith.addf %64, %35 : vector<8x128xf32>
    %c0_38 = arith.constant 0 : index
    %c0_39 = arith.constant 0 : index
    %c0_40 = arith.constant 0 : index
    %66 = vector.load %arg13[%c0_38, %c0_39, %c0_40] : memref<5x128x128xbf16, #tpu.memory_space<vmem>>, vector<1x128x128xbf16>
    %67 = vector.shape_cast %66 : vector<1x128x128xbf16> to vector<128x128xbf16>
    %68 = arith.truncf %65 : vector<8x128xf32> to vector<8x128xbf16>
    %cst_41 = arith.constant dense<0.000000e+00> : vector<8x128xf32>
    %69 = tpu.matmul %68, %67, %cst_41 {dimension_numbers = #tpu.dot_dimension_numbers<[1], [0], [0], [1], [0, 0, 1, 1], [], []>} : vector<8x128xbf16>, vector<128x128xbf16>, vector<8x128xf32> -> vector<8x128xf32>
    %c0_42 = arith.constant 0 : index
    %c0_43 = arith.constant 0 : index
    %70 = vector.load %arg14[%c0_42, %c0_43] : memref<5x128xf32, #tpu.memory_space<vmem>>, vector<1x128xf32>
    %71 = vector.broadcast %70 : vector<1x128xf32> to vector<8x128xf32>
    %72 = arith.addf %69, %71 : vector<8x128xf32>
    %c1 = arith.constant 1 : index
    %c0_44 = arith.constant 0 : index
    %73 = vector.load %arg15[%c1, %c0_44] : memref<6x128xf32, #tpu.memory_space<vmem>>, vector<1x128xf32>
    %c1_45 = arith.constant 1 : index
    %c0_46 = arith.constant 0 : index
    %74 = vector.load %arg16[%c1_45, %c0_46] : memref<6x128xf32, #tpu.memory_space<vmem>>, vector<1x128xf32>
    %cst_47 = arith.constant dense<0.000000e+00> : vector<8xf32>
    %75 = vector.multi_reduction <add>, %72, %cst_47 [1] : vector<8x128xf32> to vector<8xf32>
    %76 = vector.shape_cast %75 : vector<8xf32> to vector<8x1xf32>
    %cst_48 = arith.constant 1.280000e+02 : f32
    %77 = vector.broadcast %cst_48 : f32 to vector<8x1xf32>
    %78 = arith.divf %76, %77 : vector<8x1xf32>
    %79 = vector.broadcast %78 : vector<8x1xf32> to vector<8x128xf32>
    %80 = arith.subf %72, %79 : vector<8x128xf32>
    %81 = arith.mulf %80, %80 : vector<8x128xf32>
    %cst_49 = arith.constant dense<0.000000e+00> : vector<8xf32>
    %82 = vector.multi_reduction <add>, %81, %cst_49 [1] : vector<8x128xf32> to vector<8xf32>
    %83 = vector.shape_cast %82 : vector<8xf32> to vector<8x1xf32>
    %cst_50 = arith.constant 1.280000e+02 : f32
    %84 = vector.broadcast %cst_50 : f32 to vector<8x1xf32>
    %85 = arith.divf %83, %84 : vector<8x1xf32>
    %86 = vector.broadcast %78 : vector<8x1xf32> to vector<8x128xf32>
    %87 = arith.subf %72, %86 : vector<8x128xf32>
    %cst_51 = arith.constant 9.99999974E-6 : f32
    %88 = vector.broadcast %cst_51 : f32 to vector<8x1xf32>
    %89 = arith.addf %85, %88 : vector<8x1xf32>
    %90 = math.rsqrt %89 : vector<8x1xf32>
    %91 = vector.broadcast %90 : vector<8x1xf32> to vector<8x128xf32>
    %92 = arith.mulf %87, %91 : vector<8x128xf32>
    %93 = vector.broadcast %73 : vector<1x128xf32> to vector<8x128xf32>
    %94 = arith.mulf %92, %93 : vector<8x128xf32>
    %95 = vector.broadcast %74 : vector<1x128xf32> to vector<8x128xf32>
    %96 = arith.addf %94, %95 : vector<8x128xf32>
    %97 = math.sin %96 : vector<8x128xf32>
    %98 = vector.extract_strided_slice %22 {offsets = [0, 128], sizes = [8, 128], strides = [1, 1]} : vector<8x768xf32> to vector<8x128xf32>
    %99 = vector.extract_strided_slice %22 {offsets = [0, 512], sizes = [8, 128], strides = [1, 1]} : vector<8x768xf32> to vector<8x128xf32>
    %100 = arith.mulf %98, %97 : vector<8x128xf32>
    %101 = arith.addf %100, %99 : vector<8x128xf32>
    %102 = arith.addf %101, %65 : vector<8x128xf32>
    %c1_52 = arith.constant 1 : index
    %c0_53 = arith.constant 0 : index
    %c0_54 = arith.constant 0 : index
    %103 = vector.load %arg13[%c1_52, %c0_53, %c0_54] : memref<5x128x128xbf16, #tpu.memory_space<vmem>>, vector<1x128x128xbf16>
    %104 = vector.shape_cast %103 : vector<1x128x128xbf16> to vector<128x128xbf16>
    %105 = arith.truncf %102 : vector<8x128xf32> to vector<8x128xbf16>
    %cst_55 = arith.constant dense<0.000000e+00> : vector<8x128xf32>
    %106 = tpu.matmul %105, %104, %cst_55 {dimension_numbers = #tpu.dot_dimension_numbers<[1], [0], [0], [1], [0, 0, 1, 1], [], []>} : vector<8x128xbf16>, vector<128x128xbf16>, vector<8x128xf32> -> vector<8x128xf32>
    %c1_56 = arith.constant 1 : index
    %c0_57 = arith.constant 0 : index
    %107 = vector.load %arg14[%c1_56, %c0_57] : memref<5x128xf32, #tpu.memory_space<vmem>>, vector<1x128xf32>
    %108 = vector.broadcast %107 : vector<1x128xf32> to vector<8x128xf32>
    %109 = arith.addf %106, %108 : vector<8x128xf32>
    %c2 = arith.constant 2 : index
    %c0_58 = arith.constant 0 : index
    %110 = vector.load %arg15[%c2, %c0_58] : memref<6x128xf32, #tpu.memory_space<vmem>>, vector<1x128xf32>
    %c2_59 = arith.constant 2 : index
    %c0_60 = arith.constant 0 : index
    %111 = vector.load %arg16[%c2_59, %c0_60] : memref<6x128xf32, #tpu.memory_space<vmem>>, vector<1x128xf32>
    %cst_61 = arith.constant dense<0.000000e+00> : vector<8xf32>
    %112 = vector.multi_reduction <add>, %109, %cst_61 [1] : vector<8x128xf32> to vector<8xf32>
    %113 = vector.shape_cast %112 : vector<8xf32> to vector<8x1xf32>
    %cst_62 = arith.constant 1.280000e+02 : f32
    %114 = vector.broadcast %cst_62 : f32 to vector<8x1xf32>
    %115 = arith.divf %113, %114 : vector<8x1xf32>
    %116 = vector.broadcast %115 : vector<8x1xf32> to vector<8x128xf32>
    %117 = arith.subf %109, %116 : vector<8x128xf32>
    %118 = arith.mulf %117, %117 : vector<8x128xf32>
    %cst_63 = arith.constant dense<0.000000e+00> : vector<8xf32>
    %119 = vector.multi_reduction <add>, %118, %cst_63 [1] : vector<8x128xf32> to vector<8xf32>
    %120 = vector.shape_cast %119 : vector<8xf32> to vector<8x1xf32>
    %cst_64 = arith.constant 1.280000e+02 : f32
    %121 = vector.broadcast %cst_64 : f32 to vector<8x1xf32>
    %122 = arith.divf %120, %121 : vector<8x1xf32>
    %123 = vector.broadcast %115 : vector<8x1xf32> to vector<8x128xf32>
    %124 = arith.subf %109, %123 : vector<8x128xf32>
    %cst_65 = arith.constant 9.99999974E-6 : f32
    %125 = vector.broadcast %cst_65 : f32 to vector<8x1xf32>
    %126 = arith.addf %122, %125 : vector<8x1xf32>
    %127 = math.rsqrt %126 : vector<8x1xf32>
    %128 = vector.broadcast %127 : vector<8x1xf32> to vector<8x128xf32>
    %129 = arith.mulf %124, %128 : vector<8x128xf32>
    %130 = vector.broadcast %110 : vector<1x128xf32> to vector<8x128xf32>
    %131 = arith.mulf %129, %130 : vector<8x128xf32>
    %132 = vector.broadcast %111 : vector<1x128xf32> to vector<8x128xf32>
    %133 = arith.addf %131, %132 : vector<8x128xf32>
    %134 = math.sin %133 : vector<8x128xf32>
    %135 = vector.extract_strided_slice %22 {offsets = [0, 256], sizes = [8, 128], strides = [1, 1]} : vector<8x768xf32> to vector<8x128xf32>
    %136 = vector.extract_strided_slice %22 {offsets = [0, 640], sizes = [8, 128], strides = [1, 1]} : vector<8x768xf32> to vector<8x128xf32>
    %137 = arith.mulf %135, %134 : vector<8x128xf32>
    %138 = arith.addf %137, %136 : vector<8x128xf32>
    %139 = arith.addf %138, %102 : vector<8x128xf32>
    %c2_66 = arith.constant 2 : index
    %c0_67 = arith.constant 0 : index
    %c0_68 = arith.constant 0 : index
    %140 = vector.load %arg13[%c2_66, %c0_67, %c0_68] : memref<5x128x128xbf16, #tpu.memory_space<vmem>>, vector<1x128x128xbf16>
    %141 = vector.shape_cast %140 : vector<1x128x128xbf16> to vector<128x128xbf16>
    %142 = arith.truncf %139 : vector<8x128xf32> to vector<8x128xbf16>
    %cst_69 = arith.constant dense<0.000000e+00> : vector<8x128xf32>
    %143 = tpu.matmul %142, %141, %cst_69 {dimension_numbers = #tpu.dot_dimension_numbers<[1], [0], [0], [1], [0, 0, 1, 1], [], []>} : vector<8x128xbf16>, vector<128x128xbf16>, vector<8x128xf32> -> vector<8x128xf32>
    %c2_70 = arith.constant 2 : index
    %c0_71 = arith.constant 0 : index
    %144 = vector.load %arg14[%c2_70, %c0_71] : memref<5x128xf32, #tpu.memory_space<vmem>>, vector<1x128xf32>
    %145 = vector.broadcast %144 : vector<1x128xf32> to vector<8x128xf32>
    %146 = arith.addf %143, %145 : vector<8x128xf32>
    %c3 = arith.constant 3 : index
    %c0_72 = arith.constant 0 : index
    %147 = vector.load %arg15[%c3, %c0_72] : memref<6x128xf32, #tpu.memory_space<vmem>>, vector<1x128xf32>
    %c3_73 = arith.constant 3 : index
    %c0_74 = arith.constant 0 : index
    %148 = vector.load %arg16[%c3_73, %c0_74] : memref<6x128xf32, #tpu.memory_space<vmem>>, vector<1x128xf32>
    %cst_75 = arith.constant dense<0.000000e+00> : vector<8xf32>
    %149 = vector.multi_reduction <add>, %146, %cst_75 [1] : vector<8x128xf32> to vector<8xf32>
    %150 = vector.shape_cast %149 : vector<8xf32> to vector<8x1xf32>
    %cst_76 = arith.constant 1.280000e+02 : f32
    %151 = vector.broadcast %cst_76 : f32 to vector<8x1xf32>
    %152 = arith.divf %150, %151 : vector<8x1xf32>
    %153 = vector.broadcast %152 : vector<8x1xf32> to vector<8x128xf32>
    %154 = arith.subf %146, %153 : vector<8x128xf32>
    %155 = arith.mulf %154, %154 : vector<8x128xf32>
    %cst_77 = arith.constant dense<0.000000e+00> : vector<8xf32>
    %156 = vector.multi_reduction <add>, %155, %cst_77 [1] : vector<8x128xf32> to vector<8xf32>
    %157 = vector.shape_cast %156 : vector<8xf32> to vector<8x1xf32>
    %cst_78 = arith.constant 1.280000e+02 : f32
    %158 = vector.broadcast %cst_78 : f32 to vector<8x1xf32>
    %159 = arith.divf %157, %158 : vector<8x1xf32>
    %160 = vector.broadcast %152 : vector<8x1xf32> to vector<8x128xf32>
    %161 = arith.subf %146, %160 : vector<8x128xf32>
    %cst_79 = arith.constant 9.99999974E-6 : f32
    %162 = vector.broadcast %cst_79 : f32 to vector<8x1xf32>
    %163 = arith.addf %159, %162 : vector<8x1xf32>
    %164 = math.rsqrt %163 : vector<8x1xf32>
    %165 = vector.broadcast %164 : vector<8x1xf32> to vector<8x128xf32>
    %166 = arith.mulf %161, %165 : vector<8x128xf32>
    %167 = vector.broadcast %147 : vector<1x128xf32> to vector<8x128xf32>
    %168 = arith.mulf %166, %167 : vector<8x128xf32>
    %169 = vector.broadcast %148 : vector<1x128xf32> to vector<8x128xf32>
    %170 = arith.addf %168, %169 : vector<8x128xf32>
    %171 = math.sin %170 : vector<8x128xf32>
    %c3_80 = arith.constant 3 : index
    %c0_81 = arith.constant 0 : index
    %c0_82 = arith.constant 0 : index
    %172 = vector.load %arg13[%c3_80, %c0_81, %c0_82] : memref<5x128x128xbf16, #tpu.memory_space<vmem>>, vector<1x128x128xbf16>
    %173 = vector.shape_cast %172 : vector<1x128x128xbf16> to vector<128x128xbf16>
    %174 = arith.truncf %171 : vector<8x128xf32> to vector<8x128xbf16>
    %cst_83 = arith.constant dense<0.000000e+00> : vector<8x128xf32>
    %175 = tpu.matmul %174, %173, %cst_83 {dimension_numbers = #tpu.dot_dimension_numbers<[1], [0], [0], [1], [0, 0, 1, 1], [], []>} : vector<8x128xbf16>, vector<128x128xbf16>, vector<8x128xf32> -> vector<8x128xf32>
    %c3_84 = arith.constant 3 : index
    %c0_85 = arith.constant 0 : index
    %176 = vector.load %arg14[%c3_84, %c0_85] : memref<5x128xf32, #tpu.memory_space<vmem>>, vector<1x128xf32>
    %177 = vector.broadcast %176 : vector<1x128xf32> to vector<8x128xf32>
    %178 = arith.addf %175, %177 : vector<8x128xf32>
    %c4 = arith.constant 4 : index
    %c0_86 = arith.constant 0 : index
    %179 = vector.load %arg15[%c4, %c0_86] : memref<6x128xf32, #tpu.memory_space<vmem>>, vector<1x128xf32>
    %c4_87 = arith.constant 4 : index
    %c0_88 = arith.constant 0 : index
    %180 = vector.load %arg16[%c4_87, %c0_88] : memref<6x128xf32, #tpu.memory_space<vmem>>, vector<1x128xf32>
    %cst_89 = arith.constant dense<0.000000e+00> : vector<8xf32>
    %181 = vector.multi_reduction <add>, %178, %cst_89 [1] : vector<8x128xf32> to vector<8xf32>
    %182 = vector.shape_cast %181 : vector<8xf32> to vector<8x1xf32>
    %cst_90 = arith.constant 1.280000e+02 : f32
    %183 = vector.broadcast %cst_90 : f32 to vector<8x1xf32>
    %184 = arith.divf %182, %183 : vector<8x1xf32>
    %185 = vector.broadcast %184 : vector<8x1xf32> to vector<8x128xf32>
    %186 = arith.subf %178, %185 : vector<8x128xf32>
    %187 = arith.mulf %186, %186 : vector<8x128xf32>
    %cst_91 = arith.constant dense<0.000000e+00> : vector<8xf32>
    %188 = vector.multi_reduction <add>, %187, %cst_91 [1] : vector<8x128xf32> to vector<8xf32>
    %189 = vector.shape_cast %188 : vector<8xf32> to vector<8x1xf32>
    %cst_92 = arith.constant 1.280000e+02 : f32
    %190 = vector.broadcast %cst_92 : f32 to vector<8x1xf32>
    %191 = arith.divf %189, %190 : vector<8x1xf32>
    %192 = vector.broadcast %184 : vector<8x1xf32> to vector<8x128xf32>
    %193 = arith.subf %178, %192 : vector<8x128xf32>
    %cst_93 = arith.constant 9.99999974E-6 : f32
    %194 = vector.broadcast %cst_93 : f32 to vector<8x1xf32>
    %195 = arith.addf %191, %194 : vector<8x1xf32>
    %196 = math.rsqrt %195 : vector<8x1xf32>
    %197 = vector.broadcast %196 : vector<8x1xf32> to vector<8x128xf32>
    %198 = arith.mulf %193, %197 : vector<8x128xf32>
    %199 = vector.broadcast %179 : vector<1x128xf32> to vector<8x128xf32>
    %200 = arith.mulf %198, %199 : vector<8x128xf32>
    %201 = vector.broadcast %180 : vector<1x128xf32> to vector<8x128xf32>
    %202 = arith.addf %200, %201 : vector<8x128xf32>
    %203 = math.sin %202 : vector<8x128xf32>
    %c4_94 = arith.constant 4 : index
    %c0_95 = arith.constant 0 : index
    %c0_96 = arith.constant 0 : index
    %204 = vector.load %arg13[%c4_94, %c0_95, %c0_96] : memref<5x128x128xbf16, #tpu.memory_space<vmem>>, vector<1x128x128xbf16>
    %205 = vector.shape_cast %204 : vector<1x128x128xbf16> to vector<128x128xbf16>
    %206 = arith.truncf %203 : vector<8x128xf32> to vector<8x128xbf16>
    %cst_97 = arith.constant dense<0.000000e+00> : vector<8x128xf32>
    %207 = tpu.matmul %206, %205, %cst_97 {dimension_numbers = #tpu.dot_dimension_numbers<[1], [0], [0], [1], [0, 0, 1, 1], [], []>} : vector<8x128xbf16>, vector<128x128xbf16>, vector<8x128xf32> -> vector<8x128xf32>
    %c4_98 = arith.constant 4 : index
    %c0_99 = arith.constant 0 : index
    %208 = vector.load %arg14[%c4_98, %c0_99] : memref<5x128xf32, #tpu.memory_space<vmem>>, vector<1x128xf32>
    %209 = vector.broadcast %208 : vector<1x128xf32> to vector<8x128xf32>
    %210 = arith.addf %207, %209 : vector<8x128xf32>
    %c5 = arith.constant 5 : index
    %c0_100 = arith.constant 0 : index
    %211 = vector.load %arg15[%c5, %c0_100] : memref<6x128xf32, #tpu.memory_space<vmem>>, vector<1x128xf32>
    %c5_101 = arith.constant 5 : index
    %c0_102 = arith.constant 0 : index
    %212 = vector.load %arg16[%c5_101, %c0_102] : memref<6x128xf32, #tpu.memory_space<vmem>>, vector<1x128xf32>
    %cst_103 = arith.constant dense<0.000000e+00> : vector<8xf32>
    %213 = vector.multi_reduction <add>, %210, %cst_103 [1] : vector<8x128xf32> to vector<8xf32>
    %214 = vector.shape_cast %213 : vector<8xf32> to vector<8x1xf32>
    %cst_104 = arith.constant 1.280000e+02 : f32
    %215 = vector.broadcast %cst_104 : f32 to vector<8x1xf32>
    %216 = arith.divf %214, %215 : vector<8x1xf32>
    %217 = vector.broadcast %216 : vector<8x1xf32> to vector<8x128xf32>
    %218 = arith.subf %210, %217 : vector<8x128xf32>
    %219 = arith.mulf %218, %218 : vector<8x128xf32>
    %cst_105 = arith.constant dense<0.000000e+00> : vector<8xf32>
    %220 = vector.multi_reduction <add>, %219, %cst_105 [1] : vector<8x128xf32> to vector<8xf32>
    %221 = vector.shape_cast %220 : vector<8xf32> to vector<8x1xf32>
    %cst_106 = arith.constant 1.280000e+02 : f32
    %222 = vector.broadcast %cst_106 : f32 to vector<8x1xf32>
    %223 = arith.divf %221, %222 : vector<8x1xf32>
    %224 = vector.broadcast %216 : vector<8x1xf32> to vector<8x128xf32>
    %225 = arith.subf %210, %224 : vector<8x128xf32>
    %cst_107 = arith.constant 9.99999974E-6 : f32
    %226 = vector.broadcast %cst_107 : f32 to vector<8x1xf32>
    %227 = arith.addf %223, %226 : vector<8x1xf32>
    %228 = math.rsqrt %227 : vector<8x1xf32>
    %229 = vector.broadcast %228 : vector<8x1xf32> to vector<8x128xf32>
    %230 = arith.mulf %225, %229 : vector<8x128xf32>
    %231 = vector.broadcast %211 : vector<1x128xf32> to vector<8x128xf32>
    %232 = arith.mulf %230, %231 : vector<8x128xf32>
    %233 = vector.broadcast %212 : vector<1x128xf32> to vector<8x128xf32>
    %234 = arith.addf %232, %233 : vector<8x128xf32>
    %235 = math.sin %234 : vector<8x128xf32>
    %c0_108 = arith.constant 0 : index
    %c0_109 = arith.constant 0 : index
    %236 = vector.load %arg17[%c0_108, %c0_109] : memref<128x128xbf16, #tpu.memory_space<vmem>>, vector<128x128xbf16>
    %237 = arith.truncf %235 : vector<8x128xf32> to vector<8x128xbf16>
    %cst_110 = arith.constant dense<0.000000e+00> : vector<8x128xf32>
    %238 = tpu.matmul %237, %236, %cst_110 {dimension_numbers = #tpu.dot_dimension_numbers<[1], [0], [0], [1], [0, 0, 1, 1], [], []>} : vector<8x128xbf16>, vector<128x128xbf16>, vector<8x128xf32> -> vector<8x128xf32>
    %c0_111 = arith.constant 0 : index
    %c0_112 = arith.constant 0 : index
    %239 = vector.load %arg18[%c0_111, %c0_112] : memref<1x128xf32, #tpu.memory_space<vmem>>, vector<1x128xf32>
    %240 = vector.broadcast %239 : vector<1x128xf32> to vector<8x128xf32>
    %241 = arith.addf %238, %240 : vector<8x128xf32>
    %c0_113 = arith.constant 0 : index
    %c0_114 = arith.constant 0 : index
    %242 = vector.load %arg19[%c0_113, %c0_114] : memref<8x128xf32, #tpu.memory_space<vmem>>, vector<8x128xf32>
    tpu.vector_store %arg19[%c0_113, %c0_114], %241 {strides = array<i32>} : memref<8x128xf32, #tpu.memory_space<vmem>>, vector<8x128xf32>,
    return
  }
  func.func @transform_0(%arg0: i32) -> (i32, i32) {
    %c0_i32 = arith.constant 0 : i32
    %c0_i32_0 = arith.constant 0 : i32
    return %arg0, %c0_i32 : i32, i32
  }
  func.func @transform_1(%arg0: i32) -> (i32, i32) {
    %c0_i32 = arith.constant 0 : i32
    %c0_i32_0 = arith.constant 0 : i32
    return %arg0, %c0_i32 : i32, i32
  }
  func.func @transform_2(%arg0: i32) -> (i32, i32) {
    %c0_i32 = arith.constant 0 : i32
    %c0_i32_0 = arith.constant 0 : i32
    %c0_i32_1 = arith.constant 0 : i32
    return %c0_i32, %c0_i32_0 : i32, i32
  }
  func.func @transform_3(%arg0: i32) -> (i32, i32) {
    %c0_i32 = arith.constant 0 : i32
    %c0_i32_0 = arith.constant 0 : i32
    %c0_i32_1 = arith.constant 0 : i32
    return %c0_i32, %c0_i32_0 : i32, i32
  }
  func.func @transform_4(%arg0: i32) -> (i32, i32) {
    %c0_i32 = arith.constant 0 : i32
    %c0_i32_0 = arith.constant 0 : i32
    %c0_i32_1 = arith.constant 0 : i32
    return %c0_i32, %c0_i32_0 : i32, i32
  }
  func.func @transform_5(%arg0: i32) -> (i32, i32) {
    %c0_i32 = arith.constant 0 : i32
    %c0_i32_0 = arith.constant 0 : i32
    %c0_i32_1 = arith.constant 0 : i32
    return %c0_i32, %c0_i32_0 : i32, i32
  }
  func.func @transform_6(%arg0: i32) -> (i32, i32) {
    %c0_i32 = arith.constant 0 : i32
    %c0_i32_0 = arith.constant 0 : i32
    %c0_i32_1 = arith.constant 0 : i32
    return %c0_i32, %c0_i32_0 : i32, i32
  }
  func.func @transform_7(%arg0: i32) -> (i32, i32) {
    %c0_i32 = arith.constant 0 : i32
    %c0_i32_0 = arith.constant 0 : i32
    %c0_i32_1 = arith.constant 0 : i32
    return %c0_i32, %c0_i32_0 : i32, i32
  }
  func.func @transform_8(%arg0: i32) -> (i32, i32) {
    %c0_i32 = arith.constant 0 : i32
    %c0_i32_0 = arith.constant 0 : i32
    %c0_i32_1 = arith.constant 0 : i32
    return %c0_i32, %c0_i32_0 : i32, i32
  }
  func.func @transform_9(%arg0: i32) -> (i32, i32) {
    %c0_i32 = arith.constant 0 : i32
    %c0_i32_0 = arith.constant 0 : i32
    %c0_i32_1 = arith.constant 0 : i32
    return %c0_i32, %c0_i32_0 : i32, i32
  }
  func.func @transform_10(%arg0: i32) -> (i32, i32) {
    %c0_i32 = arith.constant 0 : i32
    %c0_i32_0 = arith.constant 0 : i32
    %c0_i32_1 = arith.constant 0 : i32
    return %c0_i32, %c0_i32_0 : i32, i32
  }
  func.func @transform_11(%arg0: i32) -> (i32, i32) {
    %c0_i32 = arith.constant 0 : i32
    %c0_i32_0 = arith.constant 0 : i32
    %c0_i32_1 = arith.constant 0 : i32
    return %c0_i32, %c0_i32_0 : i32, i32
  }
  func.func @transform_12(%arg0: i32) -> (i32, i32, i32) {
    %c0_i32 = arith.constant 0 : i32
    %c0_i32_0 = arith.constant 0 : i32
    %c0_i32_1 = arith.constant 0 : i32
    %c0_i32_2 = arith.constant 0 : i32
    return %c0_i32, %c0_i32_0, %c0_i32_1 : i32, i32, i32
  }
  func.func @transform_13(%arg0: i32) -> (i32, i32) {
    %c0_i32 = arith.constant 0 : i32
    %c0_i32_0 = arith.constant 0 : i32
    %c0_i32_1 = arith.constant 0 : i32
    return %c0_i32, %c0_i32_0 : i32, i32
  }
  func.func @transform_14(%arg0: i32) -> (i32, i32) {
    %c0_i32 = arith.constant 0 : i32
    %c0_i32_0 = arith.constant 0 : i32
    %c0_i32_1 = arith.constant 0 : i32
    return %c0_i32, %c0_i32_0 : i32, i32
  }
  func.func @transform_15(%arg0: i32) -> (i32, i32) {
    %c0_i32 = arith.constant 0 : i32
    %c0_i32_0 = arith.constant 0 : i32
    %c0_i32_1 = arith.constant 0 : i32
    return %c0_i32, %c0_i32_0 : i32, i32
  }
  func.func @transform_16(%arg0: i32) -> (i32, i32) {
    %c0_i32 = arith.constant 0 : i32
    %c0_i32_0 = arith.constant 0 : i32
    %c0_i32_1 = arith.constant 0 : i32
    return %c0_i32, %c0_i32_0 : i32, i32
  }
  func.func @transform_17(%arg0: i32) -> (i32, i32) {
    %c0_i32 = arith.constant 0 : i32
    %c0_i32_0 = arith.constant 0 : i32
    %c0_i32_1 = arith.constant 0 : i32
    return %c0_i32, %c0_i32_0 : i32, i32
  }
  func.func @transform_18(%arg0: i32) -> (i32, i32) {
    %c0_i32 = arith.constant 0 : i32
    %c0_i32_0 = arith.constant 0 : i32
    return %arg0, %c0_i32 : i32, i32
  }
}

</mosaic_0001>

<bundles_post_ra>
// kernel: tpu_custom_call.1
= control target key start
LH: loop header
LB: loop body
LE: loop exit
PB: predicated region body
PF: predicated region fallthrough
CT: control target
= control target key end

     0   :  { %s5000_s0 = inlined_call_operand.hbm [shape: f32[8,32], index: 0, kind: input, shape index: {}]   ;;  %s5001_s1 = inlined_call_operand.hbm [shape: f32[8,16], index: 1, kind: input, shape index: {}]   ;;  %s5002_s2 = inlined_call_operand.hbm [shape: bf16[32,256], index: 2, kind: input, shape index: {}]   ;;  %s5003_s3 = inlined_call_operand.hbm [shape: f32[1,256], index: 3, kind: input, shape index: {}]   ;;  %s5004_s4 = inlined_call_operand.hbm [shape: bf16[256,256], index: 4, kind: input, shape index: {}]   ;;  %s5005_s5 = inlined_call_operand.hbm [shape: f32[1,256], index: 5, kind: input, shape index: {}]   ;;  %s5006_s6 = inlined_call_operand.hbm [shape: bf16[256,768], index: 6, kind: input, shape index: {}]   ;;  %s5007_s7 = inlined_call_operand.hbm [shape: f32[1,768], index: 7, kind: input, shape index: {}]   ;;  %s5008_s8 = inlined_call_operand.hbm [shape: bf16[16,128], index: 8, kind: input, shape index: {}]   ;;  %s5009_s9 = inlined_call_operand.vmem [shape: f32[1,128], index: 9, kind: input, shape index: {}]   ;;  %s5010_s10 = inlined_call_operand.vmem [shape: bf16[16,128], index: 10, kind: input, shape index: {}]   ;;  %s5011_s11 = inlined_call_operand.vmem [shape: f32[1,128], index: 11, kind: input, shape index: {}]   ;;  %s5012_s12 = inlined_call_operand.hbm [shape: bf16[5,128,128], index: 12, kind: input, shape index: {}]   ;;  %s5013_s13 = inlined_call_operand.hbm [shape: f32[5,128], index: 13, kind: input, shape index: {}]   ;;  %s5014_s14 = inlined_call_operand.hbm [shape: f32[6,128], index: 14, kind: input, shape index: {}]   ;;  %s5015_s15 = inlined_call_operand.hbm [shape: f32[6,128], index: 15, kind: input, shape index: {}]   ;;  %s5016_s16 = inlined_call_operand.hbm [shape: bf16[128,128], index: 16, kind: input, shape index: {}]   ;;  %s5017_s17 = inlined_call_operand.vmem [shape: f32[1,128], index: 17, kind: input, shape index: {}]   ;;  %s5018_s18 = inlined_call_operand.hbm [shape: f32[8,128], index: 18, kind: output, shape index: {}]  }
   0x1   :  { %5019 = sst [smem:[#allocation35_spill]] %s5000_s0 }
   0x2   :  { %5020 = sst [smem:[#allocation36_spill]] %s5001_s1 }
   0x3   :  { %5021 = sst [smem:[#allocation37_spill]] %s5002_s2 }
   0x4   :  { %23 = vsyncpa [#allocation3], 0 }
   0x5   :  { %24 = vsyncpa [#allocation6], 0 }
   0x6   :  { %25 = vsyncpa [#allocation9], 0 }
   0x7   :  { %26 = vsyncpa [#allocation12], 0 }
   0x8   :  { %27 = vsyncpa [#allocation15], 0 }
   0x9   :  { %28 = vsyncpa [#allocation18], 0 }
   0xa   :  { %29 = vsyncpa [#allocation21], 0 }
   0xb   :  { %30 = vsyncpa [#allocation24], 0  ;;  %s5022_s29 = sld [smem:[#allocation36_spill]] }
  0x11   :  { %s48_s30 = sshll.u32 %s5022_s29, 4  ;;  %s49_s30 = int_to_ptr.hbm [resolvable:$true] %s48_s30 }
  0x12   :  { %31 = vsyncpa [#allocation4], 0  ;;  %s4371_s0 = smov [#allocation5]   ;;  %s72_s21 = sshll.u32 %s5003_s3, 4  ;;  %s73_s21 = int_to_ptr.hbm [resolvable:$true] %s72_s21 }
  0x13   :  { %s50_s19 = sshll.u32 %s4371_s0, 4  ;;  %s4372_s22 = smov [#allocation8]   ;;  %s51_s19 = int_to_ptr.vmem [resolvable:$true] %s50_s19 }
  0x14   :  { %53 = dma.hbm_to_vmem [thread:$0]  %s49_s30, 128, %s51_s19, [#allocation6]  }
  0x15   :  { %s74_s2 = sshll.u32 %s4372_s22, 4  ;;  %s96_s25 = sshll.u32 %s5005_s5, 4  ;;  %s75_s2 = int_to_ptr.vmem [resolvable:$true] %s74_s2  ;;  %s97_s25 = int_to_ptr.hbm [resolvable:$true] %s96_s25 }
  0x16   :  { %77 = dma.hbm_to_vmem [thread:$0]  %s73_s21, 32, %s75_s2, [#allocation9]  }
  0x17   :  { %s120_s28 = sshll.u32 %s5007_s7, 4  ;;  %s4373_s29 = smov [#allocation11]   ;;  %s121_s28 = int_to_ptr.hbm [resolvable:$true] %s120_s28 }
  0x18   :  { %s98_s0 = sshll.u32 %s4373_s29, 4  ;;  %s4374_s3 = smov [#allocation14]   ;;  %s99_s0 = int_to_ptr.vmem [resolvable:$true] %s98_s0 }
  0x19   :  { %101 = dma.hbm_to_vmem [thread:$0]  %s97_s25, 32, %s99_s0, [#allocation12]  }
  0x1a   :  { %s122_s30 = sshll.u32 %s4374_s3, 4  ;;  %s149_s5 = sshll.u32 %s5012_s12, 4  ;;  %s123_s30 = int_to_ptr.vmem [resolvable:$true] %s122_s30  ;;  %s150_s5 = int_to_ptr.hbm [resolvable:$true] %s149_s5 }
  0x1b   :  { %125 = dma.hbm_to_vmem [thread:$0]  %s121_s28, 96, %s123_s30, [#allocation15]  }
  0x1c   :  { %s4375_s20 = smov [#allocation17]   ;;  %s174_s7 = sshll.u32 %s5014_s14, 4  ;;  %s175_s7 = int_to_ptr.hbm [resolvable:$true] %s174_s7 }
  0x1d   :  { %s151_s21 = sshll.u32 %s4375_s20, 4  ;;  %s4376_s23 = smov 64   ;;  %s152_s21 = int_to_ptr.vmem [resolvable:$true] %s151_s21 }
  0x1e   :  { %s4377_s24 = smov 4   ;;  %s4378_s25 = smov [#allocation20]  }
  0x1f   :  { %157 = dma.hbm_to_vmem [thread:$0]  %s150_s5, 5120, %s152_s21, [#allocation18], %s4376_s23, %s4376_s23, %s4377_s24  }
  0x20   :  { %s176_s26 = sshll.u32 %s4378_s25, 4  ;;  %s5023_s12 = sld [smem:[#allocation35_spill]]  ;;  %s177_s26 = int_to_ptr.vmem [resolvable:$true] %s176_s26 }
  0x21   :  { %179 = dma.hbm_to_vmem [thread:$0]  %s175_s7, 128, %s177_s26, [#allocation21]  }
  0x22   :  { %s5024_s30 = sld [smem:[#allocation37_spill]]  ;;  %s4379_s19 = smov [#allocation2]  }
  0x23   :  { %s39_s1 = sshll.u32 %s4379_s19, 4  ;;  %s4380_s5 = smov [#allocation7]   ;;  %s40_s1 = int_to_ptr.vmem [resolvable:$true] %s39_s1 }
  0x24   :  { %s60_s20 = sshll.u32 %s4380_s5, 4  ;;  %s4381_s21 = smov 128   ;;  %s61_s20 = int_to_ptr.vmem [resolvable:$true] %s60_s20 }
  0x25   :  { %s4382_s22 = smov 8   ;;  %s82_s27 = sshll.u32 %s5004_s4, 4  ;;  %s83_s27 = int_to_ptr.hbm [resolvable:$true] %s82_s27 }
  0x26   :  { %s37_s29 = sshll.u32 %s5023_s12, 4  ;;  %s4383_s7 = smov [#allocation10]   ;;  %s38_s29 = int_to_ptr.hbm [resolvable:$true] %s37_s29 }
  0x27   :  { %42 = dma.hbm_to_vmem [thread:$0]  %s38_s29, 128, %s40_s1, [#allocation3]  }
  0x28   :  { %s58_s14 = sshll.u32 %s5024_s30, 4  ;;  %s84_s26 = sshll.u32 %s4383_s7, 4  ;;  %s59_s14 = int_to_ptr.hbm [resolvable:$true] %s58_s14  ;;  %s85_s26 = int_to_ptr.vmem [resolvable:$true] %s84_s26 }
  0x29   :  { %66 = dma.hbm_to_vmem [thread:$0]  %s59_s14, 512, %s61_s20, [#allocation6], %s4381_s21, %s4381_s21, %s4382_s22  }
  0x2a   :  { %s106_s0 = sshll.u32 %s5006_s6, 4  ;;  %s4384_s29 = smov [#allocation13]   ;;  %s107_s0 = int_to_ptr.hbm [resolvable:$true] %s106_s0 }
  0x2b   :  { %90 = dma.hbm_to_vmem [thread:$0]  %s83_s27, 4096, %s85_s26, [#allocation9], %s4381_s21, %s4381_s21, %s4382_s22  }
  0x2c   :  { %s108_s3 = sshll.u32 %s4384_s29, 4  ;;  %s4385_s30 = smov 384   ;;  %s109_s3 = int_to_ptr.vmem [resolvable:$true] %s108_s3 }
  0x2d   :  { %s4386_s19 = smov 24   ;;  %s130_s4 = sshll.u32 %s5008_s8, 4  ;;  %s131_s4 = int_to_ptr.hbm [resolvable:$true] %s130_s4 }
  0x2e   :  { %114 = dma.hbm_to_vmem [thread:$0]  %s107_s0, 12288, %s109_s3, [#allocation12], %s4385_s30, %s4385_s30, %s4386_s19  }
  0x2f   :  { %s4387_s5 = smov [#allocation16]   ;;  %s163_s6 = sshll.u32 %s5013_s13, 4  ;;  %s164_s6 = int_to_ptr.hbm [resolvable:$true] %s163_s6 }
  0x30   :  { %s132_s20 = sshll.u32 %s4387_s5, 4  ;;  %s4388_s21 = smov [#allocation19]   ;;  %s133_s20 = int_to_ptr.vmem [resolvable:$true] %s132_s20 }
  0x31   :  { %138 = dma.hbm_to_vmem [thread:$0]  %s131_s4, 128, %s133_s20, [#allocation15], %s4376_s23, %s4376_s23, %s4377_s24  }
  0x32   :  { %s165_s22 = sshll.u32 %s4388_s21, 4  ;;  %s185_s26 = sshll.u32 %s5015_s15, 4  ;;  %s166_s22 = int_to_ptr.vmem [resolvable:$true] %s165_s22  ;;  %s186_s26 = int_to_ptr.hbm [resolvable:$true] %s185_s26 }
  0x33   :  { %168 = dma.hbm_to_vmem [thread:$0]  %s164_s6, 128, %s166_s22, [#allocation18]  }
  0x34   :  { %s195_s12 = sshll.u32 %s5016_s16, 4  ;;  %s4389_s0 = smov [#allocation22]   ;;  %s196_s12 = int_to_ptr.hbm [resolvable:$true] %s195_s12 }
  0x35   :  { %s187_s13 = sshll.u32 %s4389_s0, 4  ;;  %s4390_s29 = smov [#allocation23]   ;;  %s188_s13 = int_to_ptr.vmem [resolvable:$true] %s187_s13 }
  0x36   :  { %190 = dma.hbm_to_vmem [thread:$0]  %s186_s26, 128, %s188_s13, [#allocation21]  }
  0x37   :  { %s197_s3 = sshll.u32 %s4390_s29, 4  ;;  %s198_s3 = int_to_ptr.vmem [resolvable:$true] %s197_s3 }
  0x38   :  { %203 = dma.hbm_to_vmem [thread:$0]  %s196_s12, 1024, %s198_s3, [#allocation24], %s4376_s23, %s4376_s23, %s4377_s24  }
  0x39   :  { %4353 = dma.done.wait [#allocation3], 128  }
  0x3a   :  { %4354 = vsyncadd [#allocation3], 4294967168 }
  0x3b   :  { %4355 = dma.done.wait [#allocation6], 640  }
  0x3c   :  { %4356 = vsyncadd [#allocation6], 4294966656 }
  0x3d   :  { %4357 = dma.done.wait [#allocation9], 4128  }
  0x3e   :  { %4358 = vsyncadd [#allocation9], 4294963168 }
  0x3f   :  { %4359 = dma.done.wait [#allocation12], 12320  }
  0x40   :  { %4360 = vsyncadd [#allocation12], 4294954976 }
  0x41   :  { %4361 = dma.done.wait [#allocation15], 224  }
  0x42   :  { %4362 = vsyncadd [#allocation15], 4294967072 }
  0x43   :  { %4363 = dma.done.wait [#allocation18], 5248  }
  0x44   :  { %4364 = vsyncadd [#allocation18], 4294962048 }
  0x45   :  { %4365 = dma.done.wait [#allocation21], 256  }
  0x46   :  { %4366 = vsyncadd [#allocation21], 4294967040 }
  0x47   :  { %4367 = dma.done.wait [#allocation24], 1024  }
  0x48   :  { %4368 = vsyncadd [#allocation24], 4294966272  ;;  %v3008_v0 = vld [vmem:[#allocation7 + $0x10] sm:$0xf]  ;;  %v3751_v1 = vld [vmem:[#allocation7 + $0x14] sm:$0xf0] }
  0x49   :  { %v3750_v2 = vld [vmem:[#allocation7 + $0x14] sm:$0xf]  ;;  %v3009_v3 = vor.u32 %v3751_v1, %v3008_v0  ;;  %v3010_v4 = vld [vmem:[#allocation7 + $0x18] sm:$0xf0]  ;;  %v3000_v5 = vld [vmem:[#allocation7] sm:$0xf] }
  0x4a   :  { %v3749_v6 = vld [vmem:[#allocation7 + $0x4] sm:$0xf0]  ;;  %v3013_v7 = vor.u32 %v3750_v2, %v3010_v4  ;;  %v3748_v8 = vld [vmem:[#allocation7 + $0x4] sm:$0xf]  ;;  %v3002_v9 = vld [vmem:[#allocation7 + $0x8] sm:$0xf0] }
  0x4b   :  { %v263_v10 = vld [vmem:[#allocation2] sm:$0xff]  ;;  %vm295_vm0 = vcmask 261120   ;;  %305 = vmatpush.bf16.msra.mxu2 %v3009_v3  ;;  %v3001_v11 = vor.u32 %v3749_v6, %v3000_v5  ;;  %v3767_v13 = vld [vmem:[#allocation10 + $0x74] sm:$0xf0]  ;;  %v3005_v15 = vor.u32 %v3748_v8, %v3002_v9  ;;  %v3076_v19 = vld [vmem:[#allocation10 + $0x78] sm:$0xf0] }
  0x4c   :  { %v3074_v12 = vld [vmem:[#allocation10 + $0x70] sm:$0xf]  ;;  %318 = vmatpush.bf16.msra.mxu3 %v3013_v7  ;;  %v3783_v17 = vld [vmem:[#allocation10 + $0xf4] sm:$0xf0]  ;;  %v3766_v18 = vld [vmem:[#allocation10 + $0x74] sm:$0xf]  ;;  %v268_v25 = vpack.c.bf16 %v263_v10, %v263_v10 }
  0x4d   :  { %v3138_v14 = vld [vmem:[#allocation10 + $0xf0] sm:$0xf]  ;;  %v3075_v16 = vor.u32 %v3767_v13, %v3074_v12  ;;  %v3079_v21 = vor.u32 %v3766_v18, %v3076_v19  ;;  %v3782_v22 = vld [vmem:[#allocation10 + $0xf4] sm:$0xf]  ;;  %v3140_v23 = vld [vmem:[#allocation10 + $0xf8] sm:$0xf0] }
  0x4e   :  { %v3139_v20 = vor.u32 %v3783_v17, %v3138_v14  ;;  %v3066_v24 = vld [vmem:[#allocation10 + $0x60] sm:$0xf]  ;;  %v3143_v26 = vor.u32 %v3782_v22, %v3140_v23  ;;  %v3765_v27 = vld [vmem:[#allocation10 + $0x64] sm:$0xf0]  ;;  %v3764_v30 = vld [vmem:[#allocation10 + $0x64] sm:$0xf] }
  0x4f   :  { %v3130_v28 = vld [vmem:[#allocation10 + $0xe0] sm:$0xf]  ;;  %v3781_v29 = vld [vmem:[#allocation10 + $0xe4] sm:$0xf0]  ;;  %306 = vmatpush.bf16.msra.mxu2 %v3001_v11  ;;  %553 = vmatpush.bf16.msra.mxu0 %v3079_v21  ;;  %v3068_v31 = vld [vmem:[#allocation10 + $0x68] sm:$0xf0]  ;;  %v3067_v33 = vor.u32 %v3765_v27, %v3066_v24 }
  0x50   :  { %v3780_v32 = vld [vmem:[#allocation10 + $0xe4] sm:$0xf]  ;;  %319 = vmatpush.bf16.msra.mxu3 %v3005_v15  ;;  %v3071_v34 = vor.u32 %v3764_v30, %v3068_v31  ;;  %v3132_v35 = vld [vmem:[#allocation10 + $0xe8] sm:$0xf0]  ;;  %v3058_v36 = vld [vmem:[#allocation10 + $0x50] sm:$0xf]  ;;  %566 = vmatpush.bf16.msra.mxu1 %v3143_v26  ;;  %v3131_v38 = vor.u32 %v3781_v29, %v3130_v28 }
  0x51   :  { %v3763_v37 = vld [vmem:[#allocation10 + $0x54] sm:$0xf0]  ;;  %v3135_v39 = vor.u32 %v3780_v32, %v3132_v35  ;;  %v3122_v40 = vld [vmem:[#allocation10 + $0xd0] sm:$0xf]  ;;  %v3762_v42 = vld [vmem:[#allocation10 + $0x54] sm:$0xf] }
  0x52   :  { %v3779_v41 = vld [vmem:[#allocation10 + $0xd4] sm:$0xf0]  ;;  %3014 = vmatmul.msk.bf16.vlgmr.msra.gmra.mxu2 %vm295_vm0, %v268_v25  ;;  %v3060_v43 = vld [vmem:[#allocation10 + $0x58] sm:$0xf0]  ;;  %v3778_v44 = vld [vmem:[#allocation10 + $0xd4] sm:$0xf]  ;;  %v3059_v47 = vor.u32 %v3763_v37, %v3058_v36 }
  0x53   :  { %527 = vmatpush.bf16.msrb.mxu2 %v3075_v16  ;;  %v3124_v45 = vld [vmem:[#allocation10 + $0xd8] sm:$0xf0]  ;;  %3015 = vmatmul.msk.bf16.vlgmr.msra.gmra.mxu3 %vm295_vm0, %v268_v25  ;;  %v3063_v46 = vor.u32 %v3762_v42, %v3060_v43  ;;  %v3760_v48 = vld [vmem:[#allocation10 + $0x44] sm:$0xf]  ;;  %v3052_v49 = vld [vmem:[#allocation10 + $0x48] sm:$0xf0]  ;;  %v3123_v50 = vor.u32 %v3779_v41, %v3122_v40 }
  0x54   :  { %540 = vmatpush.bf16.msrb.mxu3 %v3139_v20  ;;  %554 = vmatpush.bf16.msra.mxu0 %v3071_v34  ;;  %v3127_v51 = vor.u32 %v3778_v44, %v3124_v45  ;;  %v3050_v52 = vld [vmem:[#allocation10 + $0x40] sm:$0xf]  ;;  %v3761_v53 = vld [vmem:[#allocation10 + $0x44] sm:$0xf0]  ;;  %v3776_v56 = vld [vmem:[#allocation10 + $0xc4] sm:$0xf]  ;;  %v3055_v58 = vor.u32 %v3760_v48, %v3052_v49 }
  0x55   :  { %567 = vmatpush.bf16.msra.mxu1 %v3135_v39  ;;  %v3114_v54 = vld [vmem:[#allocation10 + $0xc0] sm:$0xf]  ;;  %v3777_v55 = vld [vmem:[#allocation10 + $0xc4] sm:$0xf0]  ;;  %v3116_v57 = vld [vmem:[#allocation10 + $0xc8] sm:$0xf0]  ;;  %v3051_v59 = vor.u32 %v3761_v53, %v3050_v52 }
  0x56   :  { %v3042_v60 = vld [vmem:[#allocation10 + $0x30] sm:$0xf]  ;;  %v3758_v61 = vld [vmem:[#allocation10 + $0x34] sm:$0xf]  ;;  %v3044_v62 = vld [vmem:[#allocation10 + $0x38] sm:$0xf0]  ;;  %v3115_v63 = vor.u32 %v3777_v55, %v3114_v54  ;;  %v3119_v0 = vor.u32 %v3776_v56, %v3116_v57 }
  0x57   :  { %528 = vmatpush.bf16.msrb.mxu2 %v3067_v33  ;;  %v3759_v1 = vld [vmem:[#allocation10 + $0x34] sm:$0xf0]  ;;  %v3106_v2 = vld [vmem:[#allocation10 + $0xb0] sm:$0xf]  ;;  %v3774_v4 = vld [vmem:[#allocation10 + $0xb4] sm:$0xf]  ;;  %v3047_v7 = vor.u32 %v3758_v61, %v3044_v62 }
  0x58   :  { %541 = vmatpush.bf16.msrb.mxu3 %v3131_v38  ;;  %555 = vmatpush.bf16.msra.mxu0 %v3063_v46  ;;  %v3775_v3 = vld [vmem:[#allocation10 + $0xb4] sm:$0xf0]  ;;  %v3108_v5 = vld [vmem:[#allocation10 + $0xb8] sm:$0xf0]  ;;  %v3756_v6 = vld [vmem:[#allocation10 + $0x24] sm:$0xf]  ;;  %v3043_v11 = vor.u32 %v3759_v1, %v3042_v60 }
  0x59   :  { %568 = vmatpush.bf16.msra.mxu1 %v3127_v51  ;;  %v3034_v8 = vld [vmem:[#allocation10 + $0x20] sm:$0xf]  ;;  %v3757_v9 = vld [vmem:[#allocation10 + $0x24] sm:$0xf0]  ;;  %v3036_v10 = vld [vmem:[#allocation10 + $0x28] sm:$0xf0]  ;;  %v3107_v16 = vor.u32 %v3775_v3, %v3106_v2  ;;  %v3111_v17 = vor.u32 %v3774_v4, %v3108_v5 }
  0x5a   :  { %v3098_v12 = vld [vmem:[#allocation10 + $0xa0] sm:$0xf]  ;;  %v3773_v13 = vld [vmem:[#allocation10 + $0xa4] sm:$0xf0]  ;;  %v3772_v14 = vld [vmem:[#allocation10 + $0xa4] sm:$0xf]  ;;  %v3039_v18 = vor.u32 %v3756_v6, %v3036_v10  ;;  %v3035_v19 = vor.u32 %v3757_v9, %v3034_v8 }
  0x5b   :  { %529 = vmatpush.bf16.msrb.mxu2 %v3059_v47  ;;  %v3100_v15 = vld [vmem:[#allocation10 + $0xa8] sm:$0xf0]  ;;  %v3099_v20 = vor.u32 %v3773_v13, %v3098_v12  ;;  %v3026_v22 = vld [vmem:[#allocation10 + $0x10] sm:$0xf]  ;;  %v3755_v23 = vld [vmem:[#allocation10 + $0x14] sm:$0xf0] }
  0x5c   :  { %542 = vmatpush.bf16.msrb.mxu3 %v3123_v50  ;;  %556 = vmatpush.bf16.msra.mxu0 %v3055_v58  ;;  %v3103_v21 = vor.u32 %v3772_v14, %v3100_v15  ;;  %v3090_v24 = vld [vmem:[#allocation10 + $0x90] sm:$0xf]  ;;  %v3027_v25 = vor.u32 %v3755_v23, %v3026_v22  ;;  %v3771_v26 = vld [vmem:[#allocation10 + $0x94] sm:$0xf0]  ;;  %v3754_v27 = vld [vmem:[#allocation10 + $0x14] sm:$0xf] }
  0x5d   :  { %569 = vmatpush.bf16.msra.mxu1 %v3119_v0  ;;  %v3028_v28 = vld [vmem:[#allocation10 + $0x18] sm:$0xf0]  ;;  %v3091_v29 = vor.u32 %v3771_v26, %v3090_v24  ;;  %v3770_v31 = vld [vmem:[#allocation10 + $0x94] sm:$0xf]  ;;  %v3018_v34 = vld [vmem:[#allocation10] sm:$0xf] }
  0x5e   :  { %v3031_v30 = vor.u32 %v3754_v27, %v3028_v28  ;;  %v3092_v32 = vld [vmem:[#allocation10 + $0x98] sm:$0xf0]  ;;  %v3753_v35 = vld [vmem:[#allocation10 + $0x4] sm:$0xf0]  ;;  %v3082_v36 = vld [vmem:[#allocation10 + $0x80] sm:$0xf] }
  0x5f   :  { %530 = vmatpush.bf16.msrb.mxu2 %v3051_v59  ;;  %v3095_v33 = vor.u32 %v3770_v31, %v3092_v32  ;;  %v3019_v37 = vor.u32 %v3753_v35, %v3018_v34  ;;  %v3769_v38 = vld [vmem:[#allocation10 + $0x84] sm:$0xf0]  ;;  %v3752_v39 = vld [vmem:[#allocation10 + $0x4] sm:$0xf]  ;;  %v3020_v40 = vld [vmem:[#allocation10 + $0x8] sm:$0xf0] }
  0x60   :  { %543 = vmatpush.bf16.msrb.mxu3 %v3115_v63  ;;  %557 = vmatpush.bf16.msra.mxu0 %v3047_v7  ;;  %v3083_v41 = vor.u32 %v3769_v38, %v3082_v36  ;;  %v3023_v42 = vor.u32 %v3752_v39, %v3020_v40  ;;  %v3768_v43 = vld [vmem:[#allocation10 + $0x84] sm:$0xf]  ;;  %v3084_v44 = vld [vmem:[#allocation10 + $0x88] sm:$0xf0]  ;;  %v3506_v46 = vld [vmem:[#allocation13 + $0x2d0] sm:$0xf] }
  0x61   :  { %570 = vmatpush.bf16.msra.mxu1 %v3111_v17  ;;  %v3087_v45 = vor.u32 %v3768_v43, %v3084_v44  ;;  %v3877_v47 = vld [vmem:[#allocation13 + $0x2e4] sm:$0xf0]  ;;  %v3874_v48 = vld [vmem:[#allocation13 + $0x2d4] sm:$0xf]  ;;  %v3508_v50 = vld [vmem:[#allocation13 + $0x2e8] sm:$0xf0] }
  0x62   :  { %v3507_v49 = vor.u32 %v3877_v47, %v3506_v46  ;;  %v3482_v51 = vld [vmem:[#allocation13 + $0x2a0] sm:$0xf]  ;;  %v3871_v52 = vld [vmem:[#allocation13 + $0x2b4] sm:$0xf0]  ;;  %v3511_v53 = vor.u32 %v3874_v48, %v3508_v50  ;;  %v3868_v54 = vld [vmem:[#allocation13 + $0x2a4] sm:$0xf] }
  0x63   :  { %531 = vmatpush.bf16.msrb.mxu2 %v3043_v11  ;;  %v3484_v55 = vld [vmem:[#allocation13 + $0x2b8] sm:$0xf0]  ;;  %v3314_v56 = vld [vmem:[#allocation13 + $0x150] sm:$0xf]  ;;  %v3483_v57 = vor.u32 %v3871_v52, %v3482_v51  ;;  %v3829_v58 = vld [vmem:[#allocation13 + $0x164] sm:$0xf0] }
  0x64   :  { %544 = vmatpush.bf16.msrb.mxu3 %v3107_v16  ;;  %558 = vmatpush.bf16.msra.mxu0 %v3039_v18  ;;  %v3826_v59 = vld [vmem:[#allocation13 + $0x154] sm:$0xf]  ;;  %v3316_v60 = vld [vmem:[#allocation13 + $0x168] sm:$0xf0]  ;;  %v3487_v61 = vor.u32 %v3868_v54, %v3484_v55  ;;  %v3315_v62 = vor.u32 %v3829_v58, %v3314_v56  ;;  %v3458_v0 = vld [vmem:[#allocation13 + $0x270] sm:$0xf] }
  0x65   :  { %571 = vmatpush.bf16.msra.mxu1 %v3103_v21  ;;  %v3319_v63 = vor.u32 %v3826_v59, %v3316_v60  ;;  %v3865_v1 = vld [vmem:[#allocation13 + $0x284] sm:$0xf0]  ;;  %v3862_v2 = vld [vmem:[#allocation13 + $0x274] sm:$0xf]  ;;  %v3460_v3 = vld [vmem:[#allocation13 + $0x288] sm:$0xf0] }
  0x66   :  { %v3290_v4 = vld [vmem:[#allocation13 + $0x120] sm:$0xf]  ;;  %v3823_v5 = vld [vmem:[#allocation13 + $0x134] sm:$0xf0]  ;;  %v3820_v7 = vld [vmem:[#allocation13 + $0x124] sm:$0xf]  ;;  %v3459_v9 = vor.u32 %v3865_v1, %v3458_v0  ;;  %v3463_v13 = vor.u32 %v3862_v2, %v3460_v3 }
  0x67   :  { %532 = vmatpush.bf16.msrb.mxu2 %v3035_v19  ;;  %v3291_v6 = vor.u32 %v3823_v5, %v3290_v4  ;;  %v3292_v8 = vld [vmem:[#allocation13 + $0x138] sm:$0xf0]  ;;  %v3434_v11 = vld [vmem:[#allocation13 + $0x240] sm:$0xf]  ;;  %v3859_v12 = vld [vmem:[#allocation13 + $0x254] sm:$0xf0] }
  0x68   :  { %545 = vmatpush.bf16.msrb.mxu3 %v3099_v20  ;;  %559 = vmatpush.bf16.msra.mxu0 %v3031_v30  ;;  %v3295_v10 = vor.u32 %v3820_v7, %v3292_v8  ;;  %v3266_v14 = vld [vmem:[#allocation13 + $0xf0] sm:$0xf]  ;;  %v3817_v15 = vld [vmem:[#allocation13 + $0x104] sm:$0xf0]  ;;  %v3814_v16 = vld [vmem:[#allocation13 + $0xf4] sm:$0xf]  ;;  %v3435_v23 = vor.u32 %v3859_v12, %v3434_v11 }
  0x69   :  { %572 = vmatpush.bf16.msra.mxu1 %v3095_v33  ;;  %v3856_v17 = vld [vmem:[#allocation13 + $0x244] sm:$0xf]  ;;  %v3436_v18 = vld [vmem:[#allocation13 + $0x258] sm:$0xf0]  ;;  %v3268_v19 = vld [vmem:[#allocation13 + $0x108] sm:$0xf0]  ;;  %v3267_v20 = vor.u32 %v3817_v15, %v3266_v14 }
  0x6a   :  { %v3271_v21 = vor.u32 %v3814_v16, %v3268_v19  ;;  %v3242_v22 = vld [vmem:[#allocation13 + $0xc0] sm:$0xf]  ;;  %v3811_v24 = vld [vmem:[#allocation13 + $0xd4] sm:$0xf0]  ;;  %v3244_v26 = vld [vmem:[#allocation13 + $0xd8] sm:$0xf0]  ;;  %v3439_v27 = vor.u32 %v3856_v17, %v3436_v18 }
  0x6b   :  { %533 = vmatpush.bf16.msrb.mxu2 %v3027_v25  ;;  %v3808_v25 = vld [vmem:[#allocation13 + $0xc4] sm:$0xf]  ;;  %v3410_v28 = vld [vmem:[#allocation13 + $0x210] sm:$0xf]  ;;  %v3850_v30 = vld [vmem:[#allocation13 + $0x214] sm:$0xf]  ;;  %v3243_v32 = vor.u32 %v3811_v24, %v3242_v22 }
  0x6c   :  { %546 = vmatpush.bf16.msrb.mxu3 %v3091_v29  ;;  %560 = vmatpush.bf16.msra.mxu0 %v3023_v42  ;;  %v3853_v29 = vld [vmem:[#allocation13 + $0x224] sm:$0xf0]  ;;  %v3412_v31 = vld [vmem:[#allocation13 + $0x228] sm:$0xf0]  ;;  %v3247_v33 = vor.u32 %v3808_v25, %v3244_v26  ;;  %v3218_v34 = vld [vmem:[#allocation13 + $0x90] sm:$0xf] }
  0x6d   :  { %573 = vmatpush.bf16.msra.mxu1 %v3087_v45  ;;  %v3411_v35 = vor.u32 %v3853_v29, %v3410_v28  ;;  %v3805_v36 = vld [vmem:[#allocation13 + $0xa4] sm:$0xf0]  ;;  %v3220_v38 = vld [vmem:[#allocation13 + $0xa8] sm:$0xf0]  ;;  %v3415_v39 = vor.u32 %v3850_v30, %v3412_v31  ;;  %v3386_v40 = vld [vmem:[#allocation13 + $0x1e0] sm:$0xf] }
  0x6e   :  { %v269_v42 = vld [vmem:[#allocation8] sm:$0x3]  ;;  %v3844_v43 = vld [vmem:[#allocation13 + $0x1e4] sm:$0xf]  ;;  %v3219_v45 = vor.u32 %v3805_v36, %v3218_v34  ;;  %v3194_v47 = vld [vmem:[#allocation13 + $0x60] sm:$0xf] }
  0x6f   :  { %534 = vmatpush.bf16.msrb.mxu2 %v3019_v37  ;;  %v3802_v37 = vld [vmem:[#allocation13 + $0x94] sm:$0xf]  ;;  %v3388_v44 = vld [vmem:[#allocation13 + $0x1f8] sm:$0xf0]  ;;  %v3796_v50 = vld [vmem:[#allocation13 + $0x64] sm:$0xf] }
  0x70   :  { %547 = vmatpush.bf16.msrb.mxu3 %v3083_v41  ;;  %1199 = vmatpush.bf16.msrb.mxu0 %v3319_v63  ;;  %v3847_v41 = vld [vmem:[#allocation13 + $0x1f4] sm:$0xf0]  ;;  %v3223_v46 = vor.u32 %v3802_v37, %v3220_v38  ;;  %v3196_v51 = vld [vmem:[#allocation13 + $0x78] sm:$0xf0]  ;;  %v271_v52 = vperm.slane %v269_v42, 0  ;;  %v272_v56 = vperm.slane %v269_v42, 1 }
  0x71   :  { %1212 = vmatpush.bf16.msrb.mxu1 %v3511_v53  ;;  %v3387_v48 = vor.u32 %v3847_v41, %v3386_v40  ;;  %v3391_v53 = vor.u32 %v3844_v43, %v3388_v44  ;;  %v3362_v54 = vld [vmem:[#allocation13 + $0x1b0] sm:$0xf]  ;;  %v3841_v55 = vld [vmem:[#allocation13 + $0x1c4] sm:$0xf0]  ;;  %v3364_v58 = vld [vmem:[#allocation13 + $0x1c8] sm:$0xf0]  ;;  %v3199_v60 = vor.u32 %v3796_v50, %v3196_v51 }
  0x72   :  { %v3338_v63 = vld [vmem:[#allocation13 + $0x180] sm:$0xf]  ;;  %v3835_v0 = vld [vmem:[#allocation13 + $0x194] sm:$0xf0]  ;;  %v3832_v4 = vld [vmem:[#allocation13 + $0x184] sm:$0xf] }
  0x73   :  { %1173 = vmatpush.bf16.msra.mxu2 %v3315_v62  ;;  %v3363_v62 = vor.u32 %v3841_v55, %v3362_v54  ;;  %v3340_v5 = vld [vmem:[#allocation13 + $0x198] sm:$0xf0]  ;;  %v3878_v8 = vld [vmem:[#allocation13 + $0x2ec] sm:$0xf0]  ;;  %v3790_v15 = vld [vmem:[#allocation13 + $0x34] sm:$0xf]  ;;  %v3339_v18 = vor.u32 %v3835_v0, %v3338_v63 }
  0x74   :  { %1186 = vmatpush.bf16.msra.mxu3 %v3507_v49  ;;  %1200 = vmatpush.bf16.msrb.mxu0 %v3295_v10  ;;  %v3799_v49 = vld [vmem:[#allocation13 + $0x74] sm:$0xf0]  ;;  %v3516_v10 = vld [vmem:[#allocation13 + $0x2f0] sm:$0xf0]  ;;  %v3170_v12 = vld [vmem:[#allocation13 + $0x30] sm:$0xf]  ;;  %v3343_v19 = vor.u32 %v3832_v4, %v3340_v5 }
  0x75   :  { %1213 = vmatpush.bf16.msrb.mxu1 %v3487_v61  ;;  %v3195_v59 = vor.u32 %v3799_v49, %v3194_v47  ;;  %v3172_v16 = vld [vmem:[#allocation13 + $0x48] sm:$0xf0]  ;;  %v3872_v24 = vld [vmem:[#allocation13 + $0x2bc] sm:$0xf0]  ;;  %v3492_v28 = vld [vmem:[#allocation13 + $0x2c0] sm:$0xf0] }
  0x76   :  { %v3869_v25 = vld [vmem:[#allocation13 + $0x2ac] sm:$0xf]  ;;  %v3146_v29 = vld [vmem:[#allocation13] sm:$0xf]  ;;  %v3787_v30 = vld [vmem:[#allocation13 + $0x14] sm:$0xf0] }
  0x77   :  { %1174 = vmatpush.bf16.msra.mxu2 %v3291_v6  ;;  %v3514_v6 = vld [vmem:[#allocation13 + $0x2d8] sm:$0xf]  ;;  %v3830_v36 = vld [vmem:[#allocation13 + $0x16c] sm:$0xf0]  ;;  %v3827_v37 = vld [vmem:[#allocation13 + $0x15c] sm:$0xf]  ;;  %v3495_v40 = vor.u32 %v3869_v25, %v3492_v28  ;;  %v3147_v42 = vor.u32 %v3787_v30, %v3146_v29 }
  0x78   :  { %1187 = vmatpush.bf16.msra.mxu3 %v3483_v57  ;;  %1201 = vmatpush.bf16.msrb.mxu0 %v3271_v21  ;;  %v3838_v57 = vld [vmem:[#allocation13 + $0x1b4] sm:$0xf]  ;;  %v3515_v21 = vor.u32 %v3878_v8, %v3514_v6  ;;  %v3322_v34 = vld [vmem:[#allocation13 + $0x158] sm:$0xf]  ;;  %v3866_v44 = vld [vmem:[#allocation13 + $0x28c] sm:$0xf0] }
  0x79   :  { %1214 = vmatpush.bf16.msrb.mxu1 %v3463_v13  ;;  %v3367_v3 = vor.u32 %v3838_v57, %v3364_v58  ;;  %v3793_v13 = vld [vmem:[#allocation13 + $0x44] sm:$0xf0]  ;;  %v3324_v38 = vld [vmem:[#allocation13 + $0x170] sm:$0xf0]  ;;  %v3466_v41 = vld [vmem:[#allocation13 + $0x278] sm:$0xf]  ;;  %v3323_v47 = vor.u32 %v3830_v36, %v3322_v34 }
  0x7a   :  { %v3171_v26 = vor.u32 %v3793_v13, %v3170_v12  ;;  %v3298_v49 = vld [vmem:[#allocation13 + $0x128] sm:$0xf]  ;;  %v3824_v50 = vld [vmem:[#allocation13 + $0x13c] sm:$0xf0]  ;;  %v3821_v51 = vld [vmem:[#allocation13 + $0x12c] sm:$0xf] }
  0x7b   :  { %1175 = vmatpush.bf16.msra.mxu2 %v3267_v20  ;;  %v3442_v55 = vld [vmem:[#allocation13 + $0x248] sm:$0xf]  ;;  %v3857_v57 = vld [vmem:[#allocation13 + $0x24c] sm:$0xf]  ;;  %v3444_v58 = vld [vmem:[#allocation13 + $0x260] sm:$0xf0] }
  0x7c   :  { %1188 = vmatpush.bf16.msra.mxu3 %v3459_v9  ;;  %1202 = vmatpush.bf16.msrb.mxu0 %v3247_v33  ;;  %v3875_v9 = vld [vmem:[#allocation13 + $0x2dc] sm:$0xf]  ;;  %v3276_v0 = vld [vmem:[#allocation13 + $0x110] sm:$0xf0]  ;;  %v3854_v4 = vld [vmem:[#allocation13 + $0x22c] sm:$0xf0] }
  0x7d   :  { %1215 = vmatpush.bf16.msrb.mxu1 %v3439_v27  ;;  %v3519_v22 = vor.u32 %v3875_v9, %v3516_v10  ;;  %v3175_v27 = vor.u32 %v3790_v15, %v3172_v16  ;;  %v3148_v33 = vld [vmem:[#allocation13 + $0x18] sm:$0xf0]  ;;  %v3420_v6 = vld [vmem:[#allocation13 + $0x230] sm:$0xf0]  ;;  %v3250_v9 = vld [vmem:[#allocation13 + $0xc8] sm:$0xf] }
  0x7e   :  { %v3815_v63 = vld [vmem:[#allocation13 + $0xfc] sm:$0xf]  ;;  %v3812_v10 = vld [vmem:[#allocation13 + $0xdc] sm:$0xf0]  ;;  %v3252_v12 = vld [vmem:[#allocation13 + $0xe0] sm:$0xf0] }
  0x7f   :  { %1176 = vmatpush.bf16.msra.mxu2 %v3243_v32  ;;  %v3784_v32 = vld [vmem:[#allocation13 + $0x4] sm:$0xf]  ;;  %v3851_v5 = vld [vmem:[#allocation13 + $0x21c] sm:$0xf]  ;;  %v3279_v8 = vor.u32 %v3815_v63, %v3276_v0  ;;  %v3251_v15 = vor.u32 %v3812_v10, %v3250_v9  ;;  %v3370_v29 = vld [vmem:[#allocation13 + $0x1b8] sm:$0xf] }
  0x80   :  { %1189 = vmatpush.bf16.msra.mxu3 %v3435_v23  ;;  %1203 = vmatpush.bf16.msrb.mxu0 %v3223_v46  ;;  %v3490_v23 = vld [vmem:[#allocation13 + $0x2a8] sm:$0xf]  ;;  %v3151_v43 = vor.u32 %v3784_v32, %v3148_v33  ;;  %v3468_v46 = vld [vmem:[#allocation13 + $0x290] sm:$0xf0]  ;;  %v3803_v25 = vld [vmem:[#allocation13 + $0x9c] sm:$0xf] }
  0x81   :  { %1216 = vmatpush.bf16.msrb.mxu1 %v3415_v39  ;;  %v3491_v39 = vor.u32 %v3872_v24, %v3490_v23  ;;  %v3226_v23 = vld [vmem:[#allocation13 + $0x98] sm:$0xf]  ;;  %v3806_v24 = vld [vmem:[#allocation13 + $0xac] sm:$0xf0]  ;;  %v3372_v33 = vld [vmem:[#allocation13 + $0x1d0] sm:$0xf0] }
  0x82   :  { %v3842_v30 = vld [vmem:[#allocation13 + $0x1cc] sm:$0xf0]  ;;  %v3800_v36 = vld [vmem:[#allocation13 + $0x7c] sm:$0xf0]  ;;  %vm1343_vm1 = vcmask 130048   ;;  %s4399_s19 = smov [#allocation25]  }
  0x83   :  { %1177 = vmatpush.bf16.msra.mxu2 %v3219_v45  ;;  %v3863_v45 = vld [vmem:[#allocation13 + $0x27c] sm:$0xf]  ;;  %v3371_v32 = vor.u32 %v3842_v30, %v3370_v29  ;;  %v3498_v10 = vld [vmem:[#allocation13 + $0x2b0] sm:$0xf]  ;;  %v3864_v29 = vld [vmem:[#allocation13 + $0x284] sm:$0xf] }
  0x84   :  { %1190 = vmatpush.bf16.msra.mxu3 %v3411_v35  ;;  %1204 = vmatpush.bf16.msrb.mxu0 %v3199_v60  ;;  %v3471_v54 = vor.u32 %v3863_v45, %v3468_v46  ;;  %v3348_v45 = vld [vmem:[#allocation13 + $0x1a0] sm:$0xf0]  ;;  %v3476_v30 = vld [vmem:[#allocation13 + $0x298] sm:$0xf0]  ;;  %s2979_s14 = sshll.u32 %s4399_s19, 4  ;;  %s2981_s5 = sshll.u32 %s5018_s18, 4  ;;  %s2980_s14 = int_to_ptr.vmem [resolvable:$true] %s2979_s14  ;;  %s2982_s5 = int_to_ptr.hbm [resolvable:$true] %s2981_s5 }
  0x85   :  { %1217 = vmatpush.bf16.msrb.mxu1 %v3391_v53  ;;  %v3467_v53 = vor.u32 %v3866_v44, %v3466_v41  ;;  %v3346_v41 = vld [vmem:[#allocation13 + $0x188] sm:$0xf] }
  0x87   :  { %1178 = vmatpush.bf16.msra.mxu2 %v3195_v59  ;;  %v3299_v59 = vor.u32 %v3824_v50, %v3298_v49  ;;  %v3791_v49 = vld [vmem:[#allocation13 + $0x3c] sm:$0xf]  ;;  %v3180_v50 = vld [vmem:[#allocation13 + $0x50] sm:$0xf0] }
  0x88   :  { %1191 = vmatpush.bf16.msra.mxu3 %v3387_v48  ;;  %1205 = vmatpush.bf16.msrb.mxu0 %v3175_v27  ;;  %v3327_v48 = vor.u32 %v3827_v37, %v3324_v38  ;;  %v3228_v27 = vld [vmem:[#allocation13 + $0xb0] sm:$0xf0]  ;;  %v3797_v37 = vld [vmem:[#allocation13 + $0x6c] sm:$0xf] }
  0x89   :  { %1218 = vmatpush.bf16.msrb.mxu1 %v3367_v3  ;;  %v3418_v3 = vld [vmem:[#allocation13 + $0x218] sm:$0xf]  ;;  %v3231_v28 = vor.u32 %v3803_v25, %v3228_v27 }
  0x8a   :  { %v3419_v13 = vor.u32 %v3854_v4, %v3418_v3  ;;  %v3879_v3 = vld [vmem:[#allocation13 + $0x2f4] sm:$0xf0]  ;;  %v3876_v4 = vld [vmem:[#allocation13 + $0x2e4] sm:$0xf] }
  0x8b   :  { %1179 = vmatpush.bf16.msra.mxu2 %v3171_v26  ;;  %v3227_v26 = vor.u32 %v3806_v24, %v3226_v23  ;;  %v3332_v23 = vld [vmem:[#allocation13 + $0x178] sm:$0xf0]  ;;  %v3867_v27 = vld [vmem:[#allocation13 + $0x294] sm:$0xf0] }
  0x8c   :  { %1192 = vmatpush.bf16.msra.mxu3 %v3363_v62  ;;  %1206 = vmatpush.bf16.msrb.mxu0 %v3151_v43  ;;  %v3818_v62 = vld [vmem:[#allocation13 + $0x10c] sm:$0xf0]  ;;  %v3833_v43 = vld [vmem:[#allocation13 + $0x18c] sm:$0xf] }
  0x8d   :  { %1219 = vmatpush.bf16.msrb.mxu1 %v3343_v19  ;;  %v3845_v19 = vld [vmem:[#allocation13 + $0x1ec] sm:$0xf]  ;;  %v3351_v46 = vor.u32 %v3833_v43, %v3348_v45  ;;  %v3861_v43 = vld [vmem:[#allocation13 + $0x264] sm:$0xf0] }
  0x8e   :  { %v3452_v45 = vld [vmem:[#allocation13 + $0x268] sm:$0xf0] }
  0x8f   :  { %1180 = vmatpush.bf16.msra.mxu2 %v3147_v42  ;;  %v3836_v42 = vld [vmem:[#allocation13 + $0x19c] sm:$0xf0] }
  0x90   :  { %1193 = vmatpush.bf16.msra.mxu3 %v3339_v18  ;;  %v3848_v18 = vld [vmem:[#allocation13 + $0x1fc] sm:$0xf0]  ;;  %v3347_v44 = vor.u32 %v3836_v42, %v3346_v41  ;;  %v3450_v41 = vld [vmem:[#allocation13 + $0x250] sm:$0xf] }
  0xd5   :  { %v308_v61 = vpop.f32.mrf.mxu2 }
  0xd6   :  { %v309_v1 = vadd.f32 %v308_v61, %v271_v52  ;;  %v321_v2 = vpop.f32.mrf.mxu3  ;;  %v3300_v52 = vld [vmem:[#allocation13 + $0x140] sm:$0xf0]  ;;  %v3274_v61 = vld [vmem:[#allocation13 + $0xf8] sm:$0xf] }
  0xd7   :  { %v322_v7 = vadd.f32 %v321_v2, %v272_v56  ;;  %v3860_v56 = vld [vmem:[#allocation13 + $0x25c] sm:$0xf0]  ;;  %v3303_v60 = vor.u32 %v3821_v51, %v3300_v52  ;;  %v3447_v2 = vor.u32 %v3857_v57, %v3444_v58  ;;  %v3183_v52 = vor.u32 %v3791_v49, %v3180_v50  ;;  %v3156_v57 = vld [vmem:[#allocation13 + $0x20] sm:$0xf0]  ;;  %v3819_v49 = vld [vmem:[#allocation13 + $0x114] sm:$0xf0] }
  0xd8   :  { %v325_v11 = vmax.f32 %v309_v1, 0.0  ;;  %v3443_v1 = vor.u32 %v3860_v56, %v3442_v55  ;;  %v3785_v56 = vld [vmem:[#allocation13 + $0xc] sm:$0xf]  ;;  %v3816_v50 = vld [vmem:[#allocation13 + $0x104] sm:$0xf] }
  0xd9   :  { %v326_v14 = vmax.f32 %v322_v7, 0.0  ;;  %v3275_v7 = vor.u32 %v3818_v62, %v3274_v61  ;;  %v3159_v58 = vor.u32 %v3785_v56, %v3156_v57  ;;  %v3852_v56 = vld [vmem:[#allocation13 + $0x224] sm:$0xf]  ;;  %v3428_v57 = vld [vmem:[#allocation13 + $0x238] sm:$0xf0] }
  0xda   :  { %v359_v17 = vpack.c.bf16 %v325_v11, %v325_v11  ;;  %v3809_v11 = vld [vmem:[#allocation13 + $0xcc] sm:$0xf] }
  0xdb   :  { %v360_v20 = vpack.c.bf16 %v326_v14, %v326_v14  ;;  %v3423_v14 = vor.u32 %v3851_v5, %v3420_v6  ;;  %v3255_v16 = vor.u32 %v3809_v11, %v3252_v12  ;;  %v3524_v5 = vld [vmem:[#allocation13 + $0x2f8] sm:$0xf0] }
  0xdc   :  { %535 = vmatmul.bf16.vlgmr.msrb.gmra.mxu2 %v359_v17  ;;  %561 = vmatmul.bf16.vlgmr.msra.gmra.mxu0 %v359_v17  ;;  %v3394_v17 = vld [vmem:[#allocation13 + $0x1e8] sm:$0xf]  ;;  %v3527_v9 = vor.u32 %v3876_v4, %v3524_v5  ;;  %v3846_v4 = vld [vmem:[#allocation13 + $0x1f4] sm:$0xf]  ;;  %v3404_v5 = vld [vmem:[#allocation13 + $0x208] sm:$0xf0] }
  0xdd   :  { %548 = vmatmul.bf16.vlgmr.msrb.gmra.mxu3 %v360_v20  ;;  %574 = vmatmul.bf16.vlgmr.msra.gmra.mxu1 %v360_v20  ;;  %v310_v31 = vpop.f32.mrf.mxu2  ;;  %v3395_v20 = vor.u32 %v3848_v18, %v3394_v17  ;;  %v3330_v18 = vld [vmem:[#allocation13 + $0x160] sm:$0xf] }
  0xde   :  { %v323_v35 = vpop.f32.mrf.mxu3  ;;  %1238 = vmatpush.bf16.msrb.mxu3 %v3515_v21  ;;  %1264 = vmatpush.bf16.msra.mxu1 %v3519_v22  ;;  %v3396_v21 = vld [vmem:[#allocation13 + $0x200] sm:$0xf0]  ;;  %v3839_v31 = vld [vmem:[#allocation13 + $0x1bc] sm:$0xf] }
  0xdf   :  { %1225 = vmatpush.bf16.msrb.mxu2 %v3323_v47  ;;  %1251 = vmatpush.bf16.msra.mxu0 %v3327_v48  ;;  %v3399_v22 = vor.u32 %v3845_v19, %v3396_v21  ;;  %v3375_v34 = vor.u32 %v3839_v31, %v3372_v33  ;;  %v3202_v35 = vld [vmem:[#allocation13 + $0x68] sm:$0xf]  ;;  %v3178_v47 = vld [vmem:[#allocation13 + $0x38] sm:$0xf]  ;;  %v3794_v48 = vld [vmem:[#allocation13 + $0x4c] sm:$0xf0] }
  0xe0   :  { %v3203_v38 = vor.u32 %v3800_v36, %v3202_v35  ;;  %v3179_v51 = vor.u32 %v3794_v48, %v3178_v47  ;;  %v3831_v21 = vld [vmem:[#allocation13 + $0x174] sm:$0xf0]  ;;  %v3306_v33 = vld [vmem:[#allocation13 + $0x130] sm:$0xf]  ;;  %v3825_v35 = vld [vmem:[#allocation13 + $0x144] sm:$0xf0] }
  0xe1   :  { %v3331_v31 = vor.u32 %v3831_v21, %v3330_v18  ;;  %v3822_v36 = vld [vmem:[#allocation13 + $0x134] sm:$0xf]  ;;  %v3282_v48 = vld [vmem:[#allocation13 + $0x100] sm:$0xf]  ;;  %v3380_v18 = vld [vmem:[#allocation13 + $0x1d8] sm:$0xf0] }
  0xe2   :  { %1239 = vmatpush.bf16.msrb.mxu3 %v3491_v39  ;;  %1265 = vmatpush.bf16.msra.mxu1 %v3495_v40  ;;  %v3204_v39 = vld [vmem:[#allocation13 + $0x80] sm:$0xf0]  ;;  %v3210_v21 = vld [vmem:[#allocation13 + $0x70] sm:$0xf] }
  0xe3   :  { %1226 = vmatpush.bf16.msrb.mxu2 %v3299_v59  ;;  %1252 = vmatpush.bf16.msra.mxu0 %v3303_v60  ;;  %v3207_v40 = vor.u32 %v3797_v37, %v3204_v39  ;;  %v361_v59 = vld [vmem:[#allocation11] sm:$0x3]  ;;  %v3308_v37 = vld [vmem:[#allocation13 + $0x148] sm:$0xf0] }
  0xe4   :  { %v364_v60 = vperm.slane %v361_v59, 1  ;;  %v363_v0 = vperm.slane %v361_v59, 0  ;;  %v3311_v47 = vor.u32 %v3822_v36, %v3308_v37  ;;  %v3792_v36 = vld [vmem:[#allocation13 + $0x44] sm:$0xf]  ;;  %v3188_v37 = vld [vmem:[#allocation13 + $0x58] sm:$0xf0] }
  0xe6   :  { %1240 = vmatpush.bf16.msrb.mxu3 %v3467_v53  ;;  %1266 = vmatpush.bf16.msra.mxu1 %v3471_v54  ;;  %v3154_v53 = vld [vmem:[#allocation13 + $0x8] sm:$0xf]  ;;  %v3788_v54 = vld [vmem:[#allocation13 + $0x1c] sm:$0xf0] }
  0xe7   :  { %1227 = vmatpush.bf16.msrb.mxu2 %v3275_v7  ;;  %1253 = vmatpush.bf16.msra.mxu0 %v3279_v8  ;;  %v3155_v55 = vor.u32 %v3788_v54, %v3154_v53  ;;  %v3426_v54 = vld [vmem:[#allocation13 + $0x220] sm:$0xf] }
  0xea   :  { %1241 = vmatpush.bf16.msrb.mxu3 %v3443_v1  ;;  %1267 = vmatpush.bf16.msra.mxu1 %v3447_v2  ;;  %v3522_v1 = vld [vmem:[#allocation13 + $0x2e0] sm:$0xf] }
  0xeb   :  { %1228 = vmatpush.bf16.msrb.mxu2 %v3251_v15  ;;  %1254 = vmatpush.bf16.msra.mxu0 %v3255_v16  ;;  %v3523_v8 = vor.u32 %v3879_v3, %v3522_v1  ;;  %v3870_v15 = vld [vmem:[#allocation13 + $0x2b4] sm:$0xf]  ;;  %v3500_v16 = vld [vmem:[#allocation13 + $0x2c8] sm:$0xf0]  ;;  %v3431_v1 = vor.u32 %v3852_v56, %v3428_v57  ;;  %v3849_v3 = vld [vmem:[#allocation13 + $0x204] sm:$0xf0] }
  0xec   :  { %v3503_v25 = vor.u32 %v3870_v15, %v3500_v16  ;;  %v3378_v15 = vld [vmem:[#allocation13 + $0x1c0] sm:$0xf]  ;;  %v3843_v16 = vld [vmem:[#allocation13 + $0x1d4] sm:$0xf0] }
  0xee   :  { %1242 = vmatpush.bf16.msrb.mxu3 %v3419_v13  ;;  %1268 = vmatpush.bf16.msra.mxu1 %v3423_v14  ;;  %v3873_v14 = vld [vmem:[#allocation13 + $0x2c4] sm:$0xf0] }
  0xef   :  { %1229 = vmatpush.bf16.msrb.mxu2 %v3227_v26  ;;  %1255 = vmatpush.bf16.msra.mxu0 %v3231_v28  ;;  %v3499_v24 = vor.u32 %v3873_v14, %v3498_v10  ;;  %v3474_v26 = vld [vmem:[#allocation13 + $0x280] sm:$0xf]  ;;  %v3804_v10 = vld [vmem:[#allocation13 + $0xa4] sm:$0xf]  ;;  %v3407_v14 = vor.u32 %v3846_v4, %v3404_v5 }
  0xf0   :  { %v3475_v39 = vor.u32 %v3867_v27, %v3474_v26  ;;  %v3354_v27 = vld [vmem:[#allocation13 + $0x190] sm:$0xf] }
  0xf2   :  { %1243 = vmatpush.bf16.msrb.mxu3 %v3395_v20  ;;  %1269 = vmatpush.bf16.msra.mxu1 %v3399_v22  ;;  %v3828_v22 = vld [vmem:[#allocation13 + $0x164] sm:$0xf] }
  0xf3   :  { %1230 = vmatpush.bf16.msrb.mxu2 %v3203_v38  ;;  %1256 = vmatpush.bf16.msra.mxu0 %v3207_v40  ;;  %v3479_v40 = vor.u32 %v3864_v29, %v3476_v30  ;;  %v3834_v29 = vld [vmem:[#allocation13 + $0x194] sm:$0xf]  ;;  %v3356_v30 = vld [vmem:[#allocation13 + $0x1a8] sm:$0xf0] }
  0xf6   :  { %1244 = vmatpush.bf16.msrb.mxu3 %v3371_v32  ;;  %1270 = vmatpush.bf16.msra.mxu1 %v3375_v34  ;;  %v3335_v32 = vor.u32 %v3828_v22, %v3332_v23  ;;  %v3801_v22 = vld [vmem:[#allocation13 + $0x84] sm:$0xf0]  ;;  %v3798_v23 = vld [vmem:[#allocation13 + $0x74] sm:$0xf] }
  0xf7   :  { %1231 = vmatpush.bf16.msrb.mxu2 %v3179_v51  ;;  %1257 = vmatpush.bf16.msra.mxu0 %v3183_v52  ;;  %v3284_v51 = vld [vmem:[#allocation13 + $0x118] sm:$0xf0]  ;;  %v3451_v52 = vor.u32 %v3861_v43, %v3450_v41  ;;  %v3191_v41 = vor.u32 %v3792_v36, %v3188_v37  ;;  %v3789_v43 = vld [vmem:[#allocation13 + $0x24] sm:$0xf0] }
  0xf8   :  { %v3287_v59 = vor.u32 %v3816_v50, %v3284_v51 }
  0xfa   :  { %1245 = vmatpush.bf16.msrb.mxu3 %v3347_v44  ;;  %1271 = vmatpush.bf16.msra.mxu1 %v3351_v46  ;;  %v3858_v44 = vld [vmem:[#allocation13 + $0x254] sm:$0xf]  ;;  %v3307_v46 = vor.u32 %v3825_v35, %v3306_v33  ;;  %v3186_v33 = vld [vmem:[#allocation13 + $0x40] sm:$0xf]  ;;  %v3795_v35 = vld [vmem:[#allocation13 + $0x54] sm:$0xf0] }
  0xfb   :  { %1232 = vmatpush.bf16.msrb.mxu2 %v3155_v55  ;;  %1258 = vmatpush.bf16.msra.mxu0 %v3159_v58  ;;  %v3455_v53 = vor.u32 %v3858_v44, %v3452_v45  ;;  %v3855_v55 = vld [vmem:[#allocation13 + $0x234] sm:$0xf0]  ;;  %v3283_v58 = vor.u32 %v3819_v49, %v3282_v48  ;;  %v3786_v44 = vld [vmem:[#allocation13 + $0x14] sm:$0xf]  ;;  %v3164_v45 = vld [vmem:[#allocation13 + $0x28] sm:$0xf0] }
  0xfc   :  { %v3880_v48 = vld [vmem:[#allocation16] sm:$0xff]  ;;  %v1329_v49 = vld [vmem:[#allocation5] sm:$0xff] }
  0xfd   :  { %v1332_v50 = vpack.c.bf16 %v1329_v49, %v1329_v49  ;;  %v3889_v49 = vld [vmem:[#allocation17 + $0x38] sm:$0xff] }
 0x159   :  { %v562_v61 = vpop.f32.mrf.mxu0 }
 0x15a   :  { %v563_v62 = vadd.f32 %v562_v61, %v364_v60  ;;  %v575_v63 = vpop.f32.mrf.mxu1  ;;  %v3258_v60 = vld [vmem:[#allocation13 + $0xd0] sm:$0xf]  ;;  %v3813_v61 = vld [vmem:[#allocation13 + $0xe4] sm:$0xf0] }
 0x15c   :  { %v576_v2 = vadd.f32 %v575_v63, %v563_v62  ;;  %v3810_v62 = vld [vmem:[#allocation13 + $0xd4] sm:$0xf]  ;;  %v3260_v63 = vld [vmem:[#allocation13 + $0xe8] sm:$0xf0] }
 0x15e   :  { %v580_v6 = vmax.f32 %v576_v2, 0.0  ;;  %v3402_v2 = vld [vmem:[#allocation13 + $0x1f0] sm:$0xf] }
 0x15f   :  { %v536_v7 = vpop.f32.mrf.mxu2 }
 0x160   :  { %v4548_v11 = vpack.c.bf16 %v580_v6, %v580_v6  ;;  %v537_v12 = vadd.f32 %v536_v7, %v363_v0  ;;  %v549_v13 = vpop.f32.mrf.mxu3  ;;  %v3427_v0 = vor.u32 %v3855_v55, %v3426_v54  ;;  %v3259_v6 = vor.u32 %v3813_v61, %v3258_v60 }
 0x161   :  { %v564_v17 = vpop.f32.mrf.mxu0  ;;  %v3263_v7 = vor.u32 %v3810_v62, %v3260_v63 }
 0x162   :  { %v550_v19 = vadd.f32 %v549_v13, %v537_v12  ;;  %v577_v20 = vpop.f32.mrf.mxu1  ;;  %1194 = vmatmul.bf16.vlgmr.msra.gmra.mxu3 %v4548_v11  ;;  %1220 = vmatmul.bf16.vlgmr.msrb.gmra.mxu1 %v4548_v11  ;;  %v3236_v12 = vld [vmem:[#allocation13 + $0xb8] sm:$0xf0]  ;;  %v3403_v13 = vor.u32 %v3849_v3, %v3402_v2  ;;  %v3840_v17 = vld [vmem:[#allocation13 + $0x1c4] sm:$0xf] }
 0x163   :  { %1290 = vmatpush.bf16.msra.mxu3 %v3523_v8  ;;  %1316 = vmatpush.bf16.msrb.mxu1 %v3527_v9  ;;  %v3234_v8 = vld [vmem:[#allocation13 + $0xa0] sm:$0xf]  ;;  %v3807_v9 = vld [vmem:[#allocation13 + $0xb4] sm:$0xf0]  ;;  %v3239_v20 = vor.u32 %v3804_v10, %v3236_v12  ;;  %v3383_v26 = vor.u32 %v3840_v17, %v3380_v18 }
 0x164   :  { %v579_v28 = vmax.f32 %v550_v19, 0.0  ;;  %v3235_v19 = vor.u32 %v3807_v9, %v3234_v8 }
 0x166   :  { %v4552_v34 = vpack.c.bf16 %v579_v28, %v579_v28  ;;  %v3837_v28 = vld [vmem:[#allocation13 + $0x1a4] sm:$0xf0] }
 0x167   :  { %v538_v38 = vpop.f32.mrf.mxu2  ;;  %1291 = vmatpush.bf16.msra.mxu3 %v3499_v24  ;;  %1317 = vmatpush.bf16.msrb.mxu1 %v3503_v25  ;;  %v3212_v24 = vld [vmem:[#allocation13 + $0x88] sm:$0xf0]  ;;  %v3379_v25 = vor.u32 %v3843_v16, %v3378_v15 }
 0x168   :  { %v551_v42 = vpop.f32.mrf.mxu3  ;;  %1181 = vmatmul.bf16.vlgmr.msra.gmra.mxu2 %v4552_v34  ;;  %1207 = vmatmul.bf16.vlgmr.msrb.gmra.mxu0 %v4552_v34  ;;  %v3355_v38 = vor.u32 %v3837_v28, %v3354_v27 }
 0x169   :  { %1277 = vmatpush.bf16.msra.mxu2 %v3331_v31  ;;  %1303 = vmatpush.bf16.msrb.mxu0 %v3335_v32  ;;  %v3211_v31 = vor.u32 %v3801_v22, %v3210_v21  ;;  %v3215_v32 = vor.u32 %v3798_v23, %v3212_v24  ;;  %v3162_v42 = vld [vmem:[#allocation13 + $0x10] sm:$0xf] }
 0x16b   :  { %1292 = vmatpush.bf16.msra.mxu3 %v3475_v39  ;;  %1318 = vmatpush.bf16.msrb.mxu1 %v3479_v40  ;;  %v3359_v39 = vor.u32 %v3834_v29, %v3356_v30  ;;  %v3187_v40 = vor.u32 %v3795_v35, %v3186_v33  ;;  %v3959_v29 = vld [vmem:[%s5009_s9] ss:$0 sm:$0xff]  ;;  %v4391_v33 = vmov 128.0  }
 0x16c   :  { %3979 = vrcp.f32 %v4391_v33  ;;  %v3881_v35 = vld [vmem:[%s5010_s10] sm:$0xff]  ;;  %v4397_v33 = vmov 1326507024  }
 0x16d   :  { %1278 = vmatpush.bf16.msra.mxu2 %v3307_v46  ;;  %1304 = vmatpush.bf16.msrb.mxu0 %v3311_v47  ;;  %v3163_v46 = vor.u32 %v3789_v43, %v3162_v42  ;;  %v3167_v47 = vor.u32 %v3786_v44, %v3164_v45 }
 0x16f   :  { %1293 = vmatpush.bf16.msra.mxu3 %v3451_v52  ;;  %1319 = vmatpush.bf16.msrb.mxu1 %v3455_v53  ;;  %v679_v52 = vld [vmem:[#allocation14] sm:$0x3f] }
 0x170   :  { %v682_v53 = vperm.slane %v679_v52, 1  ;;  %v686_v15 = vperm.slane %v679_v52, 5  ;;  %v685_v22 = vperm.slane %v679_v52, 4 }
 0x171   :  { %1279 = vmatpush.bf16.msra.mxu2 %v3283_v58  ;;  %1305 = vmatpush.bf16.msrb.mxu0 %v3287_v59  ;;  %v681_v58 = vperm.slane %v679_v52, 0 }
 0x172   :  { %1246 = vmatmul.bf16.vlgmr.msrb.gmra.mxu3 %v4548_v11  ;;  %1272 = vmatmul.bf16.vlgmr.msra.gmra.mxu1 %v4548_v11  ;;  %v3980_v36 = vpop.eup %3979 }
 0x173   :  { %1294 = vmatpush.bf16.msra.mxu3 %v3427_v0  ;;  %1320 = vmatpush.bf16.msrb.mxu1 %v3431_v1  ;;  %v684_v0 = vperm.slane %v679_v52, 3  ;;  %v1390_v37 = vmul.f32 128.0, %v3980_v36  ;;  %vm1394_vm2 = vweird.f32 %v3980_v36 }
 0x175   :  { %1280 = vmatpush.bf16.msra.mxu2 %v3259_v6  ;;  %1306 = vmatpush.bf16.msrb.mxu0 %v3263_v7  ;;  %v683_v7 = vperm.slane %v679_v52, 2  ;;  %v3888_v52 = vld [vmem:[#allocation17 + $0x30] sm:$0xff] }
 0x177   :  { %1295 = vmatpush.bf16.msra.mxu3 %v3403_v13  ;;  %1321 = vmatpush.bf16.msrb.mxu1 %v3407_v14 }
 0x178   :  { %1233 = vmatmul.bf16.vlgmr.msrb.gmra.mxu2 %v4552_v34  ;;  %1259 = vmatmul.bf16.vlgmr.msra.gmra.mxu0 %v4552_v34 }
 0x179   :  { %1281 = vmatpush.bf16.msra.mxu2 %v3235_v19  ;;  %1307 = vmatpush.bf16.msrb.mxu0 %v3239_v20 }
 0x17b   :  { %1296 = vmatpush.bf16.msra.mxu3 %v3379_v25  ;;  %1322 = vmatpush.bf16.msrb.mxu1 %v3383_v26 }
 0x17d   :  { %1282 = vmatpush.bf16.msra.mxu2 %v3211_v31  ;;  %1308 = vmatpush.bf16.msrb.mxu0 %v3215_v32 }
 0x17f   :  { %1297 = vmatpush.bf16.msra.mxu3 %v3355_v38  ;;  %1323 = vmatpush.bf16.msrb.mxu1 %v3359_v39  ;;  %v1391_v38 = vsub.f32 1.0, %v1390_v37 }
 0x181   :  { %1283 = vmatpush.bf16.msra.mxu2 %v3187_v40  ;;  %1309 = vmatpush.bf16.msrb.mxu0 %v3191_v41  ;;  %v1392_v39 = vmul.f32 %v3980_v36, %v1391_v38 }
 0x182   :  { %1298 = vmatmul.bf16.vlgmr.msra.gmra.mxu3 %v4548_v11  ;;  %1324 = vmatmul.bf16.vlgmr.msrb.gmra.mxu1 %v4548_v11 }
 0x183   :  { %1379 = vmatpush.bf16.msrb.mxu3 %v3881_v35  ;;  %v1393_v40 = vadd.f32 %v3980_v36, %v1392_v39 }
 0x185   :  { %1284 = vmatpush.bf16.msra.mxu2 %v3163_v46  ;;  %1310 = vmatpush.bf16.msrb.mxu0 %v3167_v47  ;;  %v4584_v41 = vsel %vm1394_vm2, %v3980_v36, %v1393_v40 }
 0x188   :  { %1285 = vmatmul.bf16.vlgmr.msra.gmra.mxu2 %v4552_v34  ;;  %1311 = vmatmul.bf16.vlgmr.msrb.gmra.mxu0 %v4552_v34 }
 0x189   :  { %1354 = vmatpush.bf16.msrb.mxu2 %v3880_v48  ;;  %1643 = vmatpush.bf16.msra.mxu0 %v3889_v49 }
 0x18d   :  { %1644 = vmatpush.bf16.msra.mxu0 %v3888_v52 }
 0x192   :  { %3537 = vmatmul.msk.bf16.vlgmr.msrb.gmra.mxu3 %vm1343_vm1, %v1332_v50 }
 0x198   :  { %3532 = vmatmul.msk.bf16.vlgmr.msrb.gmra.mxu2 %vm1343_vm1, %v1332_v50 }
 0x1df   :  { %v1221_v51 = vpop.f32.mrf.mxu1 }
 0x1e5   :  { %v1195_v54 = vpop.f32.mrf.mxu3  ;;  %v1208_v55 = vpop.f32.mrf.mxu0 }
 0x1e6   :  { %v1209_v56 = vadd.f32 %v1208_v55, %v682_v53  ;;  %v3887_v55 = vld [vmem:[#allocation17 + $0x28] sm:$0xff] }
 0x1e7   :  { %v1223_v11 = vpop.f32.mrf.mxu1  ;;  %1645 = vmatpush.bf16.msra.mxu0 %v3887_v55 }
 0x1e8   :  { %v4565_v57 = vadd.f32 %v1221_v51, %v1209_v56 }
 0x1eb   :  { %v1182_v59 = vpop.f32.mrf.mxu2 }
 0x1ec   :  { %v1183_v60 = vadd.f32 %v1182_v59, %v681_v58  ;;  %v3886_v59 = vld [vmem:[#allocation17 + $0x20] sm:$0xff] }
 0x1ed   :  { %v1197_v61 = vpop.f32.mrf.mxu3  ;;  %v1210_v62 = vpop.f32.mrf.mxu0  ;;  %1646 = vmatpush.bf16.msra.mxu0 %v3886_v59 }
 0x1ee   :  { %v4567_v34 = vadd.f32 %v1195_v54, %v1183_v60  ;;  %v3960_v61 = vld [vmem:[#allocation20] ss:$0 sm:$0xff] }
 0x1ef   :  { %v1273_v63 = vpop.f32.mrf.mxu1 }
 0x1f3   :  { %v1184_v1 = vpop.f32.mrf.mxu2 }
 0x1f5   :  { %v1247_v2 = vpop.f32.mrf.mxu3  ;;  %v1260_v3 = vpop.f32.mrf.mxu0 }
 0x1f6   :  { %v1261_v4 = vadd.f32 %v1260_v3, %v684_v0 }
 0x1f7   :  { %v1275_v5 = vpop.f32.mrf.mxu1 }
 0x1f8   :  { %v4569_v6 = vadd.f32 %v1273_v63, %v1261_v4  ;;  %v3961_v63 = vld [vmem:[#allocation22] ss:$0 sm:$0xff] }
 0x1fb   :  { %v1234_v8 = vpop.f32.mrf.mxu2 }
 0x1fc   :  { %v1235_v9 = vadd.f32 %v1234_v8, %v683_v7 }
 0x1fd   :  { %v1249_v10 = vpop.f32.mrf.mxu3  ;;  %v1262_v12 = vpop.f32.mrf.mxu0 }
 0x1fe   :  { %v4571_v13 = vadd.f32 %v1247_v2, %v1235_v9 }
 0x1ff   :  { %v1325_v14 = vpop.f32.mrf.mxu1 }
 0x203   :  { %v1236_v16 = vpop.f32.mrf.mxu2 }
 0x205   :  { %v1299_v17 = vpop.f32.mrf.mxu3  ;;  %v1312_v18 = vpop.f32.mrf.mxu0 }
 0x206   :  { %v1313_v19 = vadd.f32 %v1312_v18, %v686_v15 }
 0x207   :  { %v1327_v20 = vpop.f32.mrf.mxu1 }
 0x208   :  { %v4573_v21 = vadd.f32 %v1325_v14, %v1313_v19  ;;  %v4393_v19 = vmov 2475754826  }
 0x20b   :  { %v1286_v23 = vpop.f32.mrf.mxu2 }
 0x20c   :  { %v1287_v24 = vadd.f32 %v1286_v23, %v685_v22  ;;  %v4394_v23 = vmov 2131351028  }
 0x20d   :  { %v1301_v25 = vpop.f32.mrf.mxu3  ;;  %v1314_v26 = vpop.f32.mrf.mxu0 }
 0x20e   :  { %v4575_v27 = vadd.f32 %v1299_v17, %v1287_v24  ;;  %v4392_v17 = vmov 683565275   ;;  %v4395_v26 = vmov 2102212464  }
 0x213   :  { %v1288_v28 = vpop.f32.mrf.mxu2 }
 0x215   :  { %v4588_v50 = vpop.f32.mrf.mxu3 }
 0x21b   :  { %v1356_v30 = vpop.f32.mrf.mxu2 }
 0x21c   :  { %v1357_v31 = vadd.f32 %v3959_v29, %v1356_v30  ;;  %v4396_v30 = vmov 920167782  }
 0x21d   :  { %v1383_v11 = vpop.f32.mrf.mxu3 }
 0x21e   :  { %1387 = vadd.xlane.f32.xlu0 %v1357_v31 }
 0x223   :  { %v1358_v32 = vpop.f32.mrf.mxu2 }
 0x291   :  { %v1388_v42 = vpop.xlane.xlu0 %1387 }
 0x292   :  { %v1396_v43 = vmul.f32 %v4584_v41, %v1388_v42 }
 0x294   :  { %v1397_v44 = vsub.f32 %v1357_v31, %v1396_v43 }
 0x296   :  { %v1398_v45 = vmul.f32 %v1397_v44, %v1397_v44 }
 0x298   :  { %1399 = vadd.xlane.f32.xlu0 %v1398_v45 }
 0x30b   :  { %v1400_v46 = vpop.xlane.xlu0 %1399 }
 0x30c   :  { %v1401_v47 = vmul.f32 %v1400_v46, %v4584_v41 }
 0x30e   :  { %v1402_v48 = vadd.f32 1e-05, %v1401_v47 }
 0x310   :  { %3981 = vrsqrt.f32 %v1402_v48  ;;  %vm1409_vm4 = vweird.f32 %v1402_v48 }
 0x316   :  { %v3982_v51 = vpop.eup %3981 }
 0x317   :  { %v1404_v53 = vmul.f32 %v3982_v51, %v1402_v48  ;;  %vm1410_vm3 = vweird.f32 %v3982_v51 }
 0x318   :  { %vm1411_vm5 = vmor %vm1409_vm4, %vm1410_vm3 }
 0x319   :  { %v1405_v54 = vmul.f32 %v3982_v51, %v1404_v53 }
 0x31b   :  { %v1406_v56 = vmul.f32 0.5, %v1405_v54 }
 0x31d   :  { %v1407_v58 = vsub.f32 1.5, %v1406_v56 }
 0x31f   :  { %v1408_v60 = vmul.f32 %v3982_v51, %v1407_v58 }
 0x321   :  { %v1412_v62 = vsel %vm1411_vm5, %v3982_v51, %v1408_v60 }
 0x322   :  { %v1413_v0 = vmul.f32 %v1412_v62, %v1397_v44 }
 0x324   :  { %v1415_v1 = vmul.f32 %v3960_v61, %v1413_v0 }
 0x326   :  { %v4590_v2 = vadd.f32 %v3961_v63, %v1415_v1 }
 0x328   :  { %v1421_v3 = vand.u32 2139095040, %v4590_v2  ;;  %v1418_v7 = vand.u32 2147483647, %v4590_v2  ;;  %vm1420_vm2 = vcmp.lt.s32.totalorder %v4590_v2, 0 }
 0x32a   :  { %v1422_v4 = vshrl.u32 %v1421_v3, 23  ;;  %v1425_v10 = vand.u32 8388607, %v1418_v7  ;;  %vm1419_vm3 = vcmp.le.f32.partialorder %v1418_v7, 0.7853982 }
 0x32c   :  { %v3538_v5 = vadd.s32 4294967169, %v1422_v4  ;;  %v1426_v16 = vor.u32 8388608, %v1425_v10 }
 0x32e   :  { %v1428_v8 = vadd.s32 1, %v3538_v5  ;;  %v4616_v42 = vshll.u32 %v1426_v16, 8 }
 0x330   :  { %vm1429_vm6 = vcmp.gt.s32.totalorder %v1428_v8, 0  ;;  %v1467_v52 = vand.u32 65535, %v4616_v42  ;;  %v1468_v53 = vshrl.u32 %v4616_v42, 16 }
 0x331   :  { %v1430_v9 = vsel %vm1429_vm6, %v1428_v8, 0 }
 0x332   :  { %v1432_v12 = vand.u32 31, %v1430_v9  ;;  %v4598_v15 = vshrl.u32 %v1430_v9, 5  ;;  %v4398_v9 = vmov 0  }
 0x334   :  { %v4596_v14 = vsub.s32 32, %v1432_v12  ;;  %v1435_v18 = vshll.u32 %v4392_v17, %v1432_v12  ;;  %v1438_v20 = vshll.u32 %v4393_v19, %v1432_v12  ;;  %v1441_v25 = vshll.u32 %v4394_v23, %v1432_v12 }
 0x335   :  { %v1444_v29 = vshll.u32 %v4395_v26, %v1432_v12  ;;  %v1447_v32 = vshll.u32 %v4396_v30, %v1432_v12  ;;  %vm1450_vm7 = vcmp.lt.s32.totalorder %v4598_v15, 1  ;;  %vm1453_vm8 = vcmp.lt.s32.totalorder %v4598_v15, 4 }
 0x336   :  { %v1436_v22 = vshrl.u32 %v4393_v19, %v4596_v14  ;;  %v1439_v24 = vshrl.u32 %v4394_v23, %v4596_v14  ;;  %v1442_v28 = vshrl.u32 %v4395_v26, %v4596_v14  ;;  %v1445_v31 = vshrl.u32 %v4396_v30, %v4596_v14 }
 0x337   :  { %v1448_v35 = vshrl.u32 %v4397_v33, %v4596_v14  ;;  %vm1452_vm9 = vcmp.lt.s32.totalorder %v4598_v15, 3  ;;  %vm1451_vm10 = vcmp.lt.s32.totalorder %v4598_v15, 2 }
 0x338   :  { %v1437_v36 = vor.u32 %v1436_v22, %v1435_v18  ;;  %v1440_v37 = vor.u32 %v1439_v24, %v1438_v20  ;;  %v1443_v38 = vor.u32 %v1442_v28, %v1441_v25  ;;  %v1446_v39 = vor.u32 %v1445_v31, %v1444_v29 }
 0x339   :  { %v1449_v40 = vor.u32 %v1448_v35, %v1447_v32  ;;  %v1434_v28 = vshrl.u32 %v4392_v17, %v4596_v14 }
 0x33a   :  { %v1458_v43 = vsel %vm1450_vm7, %v1437_v36, %v1440_v37  ;;  %v1462_v44 = vsel %vm1450_vm7, %v1440_v37, %v1443_v38  ;;  %v1459_v45 = vsel %vm1453_vm8, %v1446_v39, 920167782  ;;  %v1455_v22 = vsel %vm1453_vm8, %v1443_v38, 2102212464 }
 0x33b   :  { %v1463_v46 = vsel %vm1453_vm8, %v1449_v40, 1326507024  ;;  %v1460_v47 = vsel %vm1452_vm9, %v1443_v38, %v1459_v45  ;;  %v1454_v40 = vsel %vm1450_vm7, %v1434_v28, %v1437_v36  ;;  %vm1561_vm7 = vweird.f32 %v4590_v2 }
 0x33c   :  { %v1464_v48 = vsel %vm1452_vm9, %v1446_v39, %v1463_v46  ;;  %v1461_v49 = vsel %vm1451_vm10, %v1458_v43, %v1460_v47  ;;  %v1456_v43 = vsel %vm1452_vm9, %v1440_v37, %v1455_v22 }
 0x33d   :  { %v1465_v51 = vsel %vm1451_vm10, %v1462_v44, %v1464_v48  ;;  %v1491_v56 = vand.u32 65535, %v1461_v49  ;;  %v1492_v11 = vshrl.u32 %v1461_v49, 16  ;;  %v1457_v14 = vsel %vm1451_vm10, %v1454_v40, %v1456_v43 }
 0x33e   :  { %v1469_v54 = vand.u32 65535, %v1465_v51  ;;  %v1470_v55 = vshrl.u32 %v1465_v51, 16 }
 0x33f   :  { %v1494_v60 = vmul.u32 %v1492_v11, %v1467_v52  ;;  %v1495_v61 = vmul.u32 %v1491_v56, %v1468_v53  ;;  %v1493_v1 = vmul.u32 %v1491_v56, %v1467_v52  ;;  %v1496_v8 = vmul.u32 %v1492_v11, %v1468_v53 }
 0x340   :  { %v1472_v58 = vmul.u32 %v1470_v55, %v1467_v52  ;;  %v1473_v59 = vmul.u32 %v1469_v54, %v1468_v53  ;;  %v1471_v62 = vmul.u32 %v1469_v54, %v1467_v52  ;;  %v1474_v0 = vmul.u32 %v1470_v55, %v1468_v53 }
 0x341   :  { %v1497_v3 = vshll.u32 %v1494_v60, 16  ;;  %v1499_v12 = vshll.u32 %v1495_v61, 16  ;;  %v1498_v35 = vshrl.u32 %v1494_v60, 16  ;;  %v1500_v45 = vshrl.u32 %v1495_v61, 16  ;;  %v3885_v61 = vld [vmem:[#allocation17 + $0x18] sm:$0xff] }
 0x342   :  { %v1475_v63 = vshll.u32 %v1472_v58, 16  ;;  %v1477_v4 = vshll.u32 %v1473_v59, 16  ;;  %v1476_v29 = vshrl.u32 %v1472_v58, 16  ;;  %v1478_v38 = vshrl.u32 %v1473_v59, 16  ;;  %1647 = vmatpush.bf16.msra.mxu0 %v3885_v61 }
 0x343   :  { %vm1501_vm12 = vc.u32 %v1493_v1, %v1497_v3  ;;  %v1503_v16 = vadd.s32 %v1497_v3, %v1493_v1  ;;  %v1511_v52 = vmul.u32 %v4616_v42, %v1457_v14  ;;  %v3884_v1 = vld [vmem:[#allocation17 + $0x10] sm:$0xff] }
 0x344   :  { %vm1479_vm11 = vc.u32 %v1471_v62, %v1475_v63  ;;  %v1481_v5 = vadd.s32 %v1475_v63, %v1471_v62  ;;  %v1502_v20 = vsel %vm1501_vm12, 1, %v4398_v9 }
 0x345   :  { %v1480_v10 = vsel %vm1479_vm11, 1, %v4398_v9  ;;  %v1504_v25 = vadd.s32 %v1502_v20, %v1496_v8  ;;  %vm1505_vm14 = vc.u32 %v1503_v16, %v1499_v12  ;;  %v1507_v48 = vadd.s32 %v1503_v16, %v1499_v12  ;;  %v3882_v20 = vld [vmem:[#allocation17] sm:$0xff] }
 0x346   :  { %v1482_v18 = vadd.s32 %v1480_v10, %v1474_v0  ;;  %vm1483_vm13 = vc.u32 %v1481_v5, %v1477_v4  ;;  %v1506_v32 = vsel %vm1505_vm14, 1, %v4398_v9  ;;  %1648 = vmatpush.bf16.msra.mxu0 %v3884_v1  ;;  %v3883_v10 = vld [vmem:[#allocation17 + $0x8] sm:$0xff] }
 0x347   :  { %v1484_v24 = vsel %vm1483_vm13, 1, %v4398_v9  ;;  %v1508_v39 = vadd.s32 %v1506_v32, %v1504_v25 }
 0x348   :  { %v1486_v31 = vadd.s32 %v1484_v24, %v1482_v18 }
 0x349   :  { %v1509_v46 = vadd.s32 %v1508_v39, %v1498_v35 }
 0x34a   :  { %v1487_v44 = vadd.s32 %v1486_v31, %v1476_v29  ;;  %1649 = vmatpush.bf16.msra.mxu0 %v3883_v10 }
 0x34b   :  { %v1510_v49 = vadd.s32 %v1509_v46, %v1500_v45 }
 0x34c   :  { %v1488_v47 = vadd.s32 %v1487_v44, %v1478_v38 }
 0x34d   :  { %v1514_v51 = vadd.s32 1, %v1510_v49 }
 0x34e   :  { %vm1513_vm15 = vc.u32 %v1488_v47, %v1507_v48  ;;  %v1512_v62 = vadd.s32 %v1507_v48, %v1488_v47  ;;  %1650 = vmatpush.bf16.msra.mxu0 %v3882_v20  ;;  %v3896_v20 = vld [vmem:[#allocation17 + $0x70] sm:$0xff] }
 0x34f   :  { %v1515_v53 = vsel %vm1513_vm15, %v1514_v51, %v1510_v49 }
 0x350   :  { %v1516_v54 = vadd.s32 %v1515_v53, %v1511_v52 }
 0x352   :  { %v1517_v36 = vadd.s32 536870912, %v1516_v54 }
 0x354   :  { %v1518_v55 = vshrl.u32 %v1517_v36, 30 }
 0x356   :  { %v1519_v56 = vshll.u32 %v1518_v55, 30  ;;  %v1542_v28 = vsub.s32 4, %v1518_v55 }
 0x358   :  { %v1520_v37 = vsub.s32 %v1516_v54, %v1519_v56  ;;  %v1543_v39 = vsel %vm1420_vm2, %v1542_v28, %v1518_v55  ;;  %v3962_v55 = vld [vmem:[%s5011_s11] ss:$0 sm:$0xff]  ;;  %v3895_v28 = vld [vmem:[#allocation17 + $0x68] sm:$0xff] }
 0x359   :  { %v1545_v38 = vsel %vm1419_vm3, 0, %v1543_v39  ;;  %v3894_v39 = vld [vmem:[#allocation17 + $0x60] sm:$0xff] }
 0x35a   :  { %vm1521_vm0 = vcmp.lt.s32.totalorder %v1520_v37, 0  ;;  %v1522_v11 = vsub.s32 0, %v1520_v37  ;;  %v1562_v48 = vadd.s32 3, %v1545_v38  ;;  %v3893_v38 = vld [vmem:[#allocation17 + $0x58] sm:$0xff] }
 0x35c   :  { %v1523_v58 = vsel %vm1521_vm0, %v1522_v11, %v1520_v37  ;;  %v1563_v52 = vand.u32 3, %v1562_v48 }
 0x35d   :  { %v1524_v59 = vclz %v1523_v58 }
 0x35e   :  { %vm1565_vm4 = vcmp.eq.s32.totalorder %v1563_v52, 0  ;;  %vm1568_vm5 = vcmp.eq.s32.totalorder %v1563_v52, 2  ;;  %vm1564_vm6 = vcmp.lt.s32.totalorder %v1563_v52, 2 }
 0x35f   :  { %v3539_v60 = vadd.s32 4294967294, %v1524_v59  ;;  %v1382_v59 = vadd.f32 %v3962_v55, %v4588_v50 }
 0x361   :  { %vm3540_vm1 = vcmp.lt.s32.totalorder %v3539_v60, 0 }
 0x362   :  { %v1527_v15 = vsel %vm3540_vm1, 0, %v3539_v60 }
 0x363   :  { %v1528_v63 = vsub.s32 32, %v1527_v15  ;;  %v1532_v0 = vsub.s32 4294967266, %v1527_v15  ;;  %v1529_v42 = vshll.u32 %v1520_v37, %v1527_v15 }
 0x365   :  { %v1530_v3 = vshrl.u32 %v1512_v62, %v1528_v63  ;;  %v1533_v4 = vadd.s32 127, %v1532_v0  ;;  %v3963_v63 = vld [vmem:[#allocation19] ss:$0 sm:$0xff] }
 0x367   :  { %v1531_v5 = vor.u32 %v1530_v3, %v1529_v42  ;;  %v1534_v8 = vshll.u32 %v1533_v4, 23 }
 0x369   :  { %v1535_v12 = vor.u32 4788187, %v1534_v8  ;;  %v1538_v18 = vcvt.s32.f32 %v1531_v5 }
 0x36b   :  { %v1536_v16 = vand.u32 2147483647, %v1535_v12 }
 0x36d   :  { %v1539_v22 = vmul.f32 %v1538_v18, %v1536_v16  ;;  %v3897_v16 = vld [vmem:[#allocation17 + $0x78] sm:$0xff] }
 0x36e   :  { %1908 = vmatpush.bf16.msra.mxu1 %v3897_v16 }
 0x36f   :  { %v1540_v24 = vxor.u32 2147483648, %v1539_v22 }
 0x371   :  { %v1541_v25 = vsel %vm1420_vm2, %v1540_v24, %v1539_v22 }
 0x372   :  { %v1544_v29 = vsel %vm1419_vm3, %v4590_v2, %v1541_v25  ;;  %v3964_v25 = vld [vmem:[#allocation20 + $0x1] ss:$0 sm:$0xff]  ;;  %1909 = vmatpush.bf16.msra.mxu1 %v3896_v20 }
 0x373   :  { %v1546_v31 = vmul.f32 %v1544_v29, %v1544_v29 }
 0x375   :  { %v1547_v32 = vmul.f32 -0.001358992, %v1546_v31  ;;  %v1554_v35 = vmul.f32 -0.00019511016, %v1546_v31 }
 0x376   :  { %1910 = vmatpush.bf16.msra.mxu1 %v3895_v28 }
 0x377   :  { %v1548_v40 = vadd.f32 0.041655596, %v1547_v32  ;;  %v1555_v43 = vadd.f32 0.008332121, %v1554_v35 }
 0x379   :  { %v1549_v44 = vmul.f32 %v1548_v40, %v1546_v31  ;;  %v1556_v45 = vmul.f32 %v1555_v43, %v1546_v31 }
 0x37a   :  { %1911 = vmatpush.bf16.msra.mxu1 %v3894_v39 }
 0x37b   :  { %v1550_v46 = vadd.f32 -0.4999988, %v1549_v44  ;;  %v1557_v47 = vadd.f32 -0.16666654, %v1556_v45 }
 0x37d   :  { %v1551_v14 = vmul.f32 %v1550_v46, %v1546_v31  ;;  %v1558_v49 = vmul.f32 %v1557_v47, %v1546_v31  ;;  %v3965_v31 = vld [vmem:[#allocation22 + $0x1] ss:$0 sm:$0xff] }
 0x37e   :  { %1912 = vmatpush.bf16.msra.mxu1 %v3893_v38  ;;  %v3892_v46 = vld [vmem:[#allocation17 + $0x50] sm:$0xff] }
 0x37f   :  { %v1552_v51 = vadd.f32 1.0, %v1551_v14  ;;  %v1559_v7 = vadd.f32 1.0, %v1558_v49  ;;  %v3891_v14 = vld [vmem:[#allocation17 + $0x48] sm:$0xff] }
 0x381   :  { %v1560_v53 = vmul.f32 %v1559_v7, %v1544_v29  ;;  %v1569_v54 = vxor.u32 2147483648, %v1552_v51 }
 0x382   :  { %1913 = vmatpush.bf16.msra.mxu1 %v3892_v46 }
 0x383   :  { %v1566_v36 = vxor.u32 2147483648, %v1560_v53  ;;  %v1570_v37 = vsel %vm1568_vm5, %v1569_v54, %v1560_v53  ;;  %v3890_v53 = vld [vmem:[#allocation17 + $0x40] sm:$0xff] }
 0x385   :  { %v1567_v56 = vsel %vm1565_vm4, %v1552_v51, %v1566_v36 }
 0x386   :  { %v1571_v11 = vsel %vm1564_vm6, %v1567_v56, %v1570_v37  ;;  %1914 = vmatpush.bf16.msra.mxu1 %v3891_v14 }
 0x387   :  { %v1572_v58 = vsel %vm1561_vm7, nan, %v1571_v11 }
 0x388   :  { %v1573_v60 = vmul.f32 %v1572_v58, %v4567_v34 }
 0x38a   :  { %v1574_v61 = vadd.f32 %v1573_v60, %v4569_v6  ;;  %1915 = vmatpush.bf16.msra.mxu1 %v3890_v53 }
 0x38c   :  { %v4665_v15 = vadd.f32 %v1574_v61, %v1382_v59 }
 0x38e   :  { %v1592_v62 = vpack.c.bf16 %v4665_v15, %v4665_v15 }
 0x390   :  { %1651 = vmatmul.bf16.vlgmr.msra.gmra.mxu0 %v1592_v62 }
 0x40d   :  { %v1652_v0 = vpop.f32.mrf.mxu0 }
 0x40e   :  { %v1653_v1 = vadd.f32 %v3963_v63, %v1652_v0 }
 0x410   :  { %1658 = vadd.xlane.f32.xlu1 %v1653_v1 }
 0x415   :  { %v1654_v42 = vpop.f32.mrf.mxu0 }
 0x483   :  { %v1659_v2 = vpop.xlane.xlu1 %1658 }
 0x484   :  { %v1660_v3 = vmul.f32 %v1659_v2, %v4584_v41 }
 0x486   :  { %v1661_v4 = vsub.f32 %v1653_v1, %v1660_v3 }
 0x488   :  { %v1662_v50 = vmul.f32 %v1661_v4, %v1661_v4 }
 0x48a   :  { %1663 = vadd.xlane.f32.xlu1 %v1662_v50 }
 0x4fd   :  { %v1664_v34 = vpop.xlane.xlu1 %1663 }
 0x4fe   :  { %v1665_v6 = vmul.f32 %v1664_v34, %v4584_v41 }
 0x500   :  { %v1666_v5 = vadd.f32 1e-05, %v1665_v6 }
 0x502   :  { %3983 = vrsqrt.f32 %v1666_v5  ;;  %vm1673_vm9 = vweird.f32 %v1666_v5 }
 0x508   :  { %v3984_v8 = vpop.eup %3983 }
 0x509   :  { %v1668_v10 = vmul.f32 %v3984_v8, %v1666_v5  ;;  %vm1674_vm8 = vweird.f32 %v3984_v8 }
 0x50a   :  { %vm1675_vm10 = vmor %vm1673_vm9, %vm1674_vm8 }
 0x50b   :  { %v1669_v12 = vmul.f32 %v3984_v8, %v1668_v10 }
 0x50d   :  { %v1670_v18 = vmul.f32 0.5, %v1669_v12 }
 0x50f   :  { %v1671_v22 = vsub.f32 1.5, %v1670_v18 }
 0x511   :  { %v1672_v24 = vmul.f32 %v3984_v8, %v1671_v22 }
 0x513   :  { %v1676_v29 = vsel %vm1675_vm10, %v3984_v8, %v1672_v24 }
 0x514   :  { %v1677_v32 = vmul.f32 %v1676_v29, %v1661_v4 }
 0x516   :  { %v1679_v35 = vmul.f32 %v3964_v25, %v1677_v32 }
 0x518   :  { %v4671_v40 = vadd.f32 %v3965_v31, %v1679_v35 }
 0x51a   :  { %v1685_v43 = vand.u32 2139095040, %v4671_v40  ;;  %v1682_v47 = vand.u32 2147483647, %v4671_v40  ;;  %vm1684_vm7 = vcmp.lt.s32.totalorder %v4671_v40, 0 }
 0x51c   :  { %v1686_v44 = vshrl.u32 %v1685_v43, 23  ;;  %v1689_v49 = vand.u32 8388607, %v1682_v47  ;;  %vm1683_vm8 = vcmp.le.f32.partialorder %v1682_v47, 0.7853982 }
 0x51e   :  { %v3573_v45 = vadd.s32 4294967169, %v1686_v44  ;;  %v1690_v54 = vor.u32 8388608, %v1689_v49 }
 0x520   :  { %v1692_v48 = vadd.s32 1, %v3573_v45  ;;  %v4689_v2 = vshll.u32 %v1690_v54, 8 }
 0x522   :  { %vm1693_vm11 = vcmp.gt.s32.totalorder %v1692_v48, 0  ;;  %v1731_v16 = vand.u32 65535, %v4689_v2  ;;  %v1732_v20 = vshrl.u32 %v4689_v2, 16 }
 0x523   :  { %v1694_v51 = vsel %vm1693_vm11, %v1692_v48, 0 }
 0x524   :  { %v1696_v7 = vand.u32 31, %v1694_v51  ;;  %v4677_v36 = vshrl.u32 %v1694_v51, 5 }
 0x526   :  { %v1697_v52 = vsub.s32 32, %v1696_v7  ;;  %v1708_v55 = vshll.u32 %v4395_v26, %v1696_v7  ;;  %v1711_v56 = vshll.u32 %v4396_v30, %v1696_v7  ;;  %v1699_v58 = vshll.u32 %v4392_v17, %v1696_v7 }
 0x527   :  { %v1702_v60 = vshll.u32 %v4393_v19, %v1696_v7  ;;  %v1705_v62 = vshll.u32 %v4394_v23, %v1696_v7  ;;  %vm1717_vm12 = vcmp.lt.s32.totalorder %v4677_v36, 4  ;;  %vm1714_vm13 = vcmp.lt.s32.totalorder %v4677_v36, 1 }
 0x528   :  { %v1709_v37 = vshrl.u32 %v4396_v30, %v1697_v52  ;;  %v1712_v11 = vshrl.u32 %v4397_v33, %v1697_v52  ;;  %v1700_v59 = vshrl.u32 %v4393_v19, %v1697_v52  ;;  %v1703_v61 = vshrl.u32 %v4394_v23, %v1697_v52 }
 0x529   :  { %v1706_v63 = vshrl.u32 %v4395_v26, %v1697_v52  ;;  %vm1716_vm14 = vcmp.lt.s32.totalorder %v4677_v36, 3  ;;  %vm1715_vm15 = vcmp.lt.s32.totalorder %v4677_v36, 2 }
 0x52a   :  { %v1710_v0 = vor.u32 %v1709_v37, %v1708_v55  ;;  %v1713_v1 = vor.u32 %v1712_v11, %v1711_v56  ;;  %v1701_v42 = vor.u32 %v1700_v59, %v1699_v58  ;;  %v1704_v3 = vor.u32 %v1703_v61, %v1702_v60 }
 0x52b   :  { %v1707_v4 = vor.u32 %v1706_v63, %v1705_v62  ;;  %v1698_v56 = vshrl.u32 %v4392_v17, %v1697_v52 }
 0x52c   :  { %v1723_v50 = vsel %vm1717_vm12, %v1710_v0, 920167782  ;;  %v1727_v34 = vsel %vm1717_vm12, %v1713_v1, 1326507024  ;;  %v1722_v6 = vsel %vm1714_vm13, %v1701_v42, %v1704_v3 }
 0x52d   :  { %v1724_v5 = vsel %vm1716_vm14, %v1707_v4, %v1723_v50  ;;  %v1726_v8 = vsel %vm1714_vm13, %v1704_v3, %v1707_v4  ;;  %v1728_v12 = vsel %vm1716_vm14, %v1710_v0, %v1727_v34  ;;  %v1719_v53 = vsel %vm1717_vm12, %v1707_v4, 2102212464 }
 0x52e   :  { %v1725_v10 = vsel %vm1715_vm15, %v1722_v6, %v1724_v5  ;;  %v1729_v18 = vsel %vm1715_vm15, %v1726_v8, %v1728_v12  ;;  %v1718_v61 = vsel %vm1714_vm13, %v1698_v56, %v1701_v42  ;;  %v1720_v62 = vsel %vm1716_vm14, %v1704_v3, %v1719_v53 }
 0x52f   :  { %v1755_v22 = vand.u32 65535, %v1725_v10  ;;  %v1756_v24 = vshrl.u32 %v1725_v10, 16  ;;  %v1733_v25 = vand.u32 65535, %v1729_v18  ;;  %v1734_v28 = vshrl.u32 %v1729_v18, 16 }
 0x530   :  { %v1721_v34 = vsel %vm1715_vm15, %v1718_v61, %v1720_v62  ;;  %vm1825_vm12 = vweird.f32 %v4671_v40 }
 0x531   :  { %v1758_v29 = vmul.u32 %v1756_v24, %v1731_v16  ;;  %v1759_v31 = vmul.u32 %v1755_v22, %v1732_v20  ;;  %v1736_v32 = vmul.u32 %v1734_v28, %v1731_v16  ;;  %v1737_v35 = vmul.u32 %v1733_v25, %v1732_v20 }
 0x532   :  { %v1757_v39 = vmul.u32 %v1755_v22, %v1731_v16  ;;  %v1735_v38 = vmul.u32 %v1733_v25, %v1731_v16  ;;  %v1760_v45 = vmul.u32 %v1756_v24, %v1732_v20  ;;  %v1738_v46 = vmul.u32 %v1734_v28, %v1732_v20 }
 0x533   :  { %v1761_v43 = vshll.u32 %v1758_v29, 16  ;;  %v1739_v44 = vshll.u32 %v1736_v32, 16  ;;  %v1763_v48 = vshll.u32 %v1759_v31, 16  ;;  %v1741_v49 = vshll.u32 %v1737_v35, 16 }
 0x534   :  { %v1762_v59 = vshrl.u32 %v1758_v29, 16  ;;  %v1740_v63 = vshrl.u32 %v1736_v32, 16  ;;  %v1764_v1 = vshrl.u32 %v1759_v31, 16  ;;  %v1742_v50 = vshrl.u32 %v1737_v35, 16 }
 0x535   :  { %vm1765_vm0 = vc.u32 %v1757_v39, %v1761_v43  ;;  %v1767_v14 = vadd.s32 %v1761_v43, %v1757_v39  ;;  %vm1743_vm1 = vc.u32 %v1735_v38, %v1739_v44  ;;  %v1745_v51 = vadd.s32 %v1739_v44, %v1735_v38 }
 0x536   :  { %v1766_v7 = vsel %vm1765_vm0, 1, %v4398_v9  ;;  %v1744_v54 = vsel %vm1743_vm1, 1, %v4398_v9  ;;  %v1775_v12 = vmul.u32 %v4689_v2, %v1721_v34 }
 0x537   :  { %v1768_v55 = vadd.s32 %v1766_v7, %v1760_v45  ;;  %vm1769_vm2 = vc.u32 %v1767_v14, %v1763_v48  ;;  %v1746_v37 = vadd.s32 %v1744_v54, %v1738_v46  ;;  %vm1747_vm3 = vc.u32 %v1745_v51, %v1741_v49 }
 0x538   :  { %v1770_v11 = vsel %vm1769_vm2, 1, %v4398_v9  ;;  %v1748_v58 = vsel %vm1747_vm3, 1, %v4398_v9  ;;  %v1771_v8 = vadd.s32 %v1767_v14, %v1763_v48 }
 0x539   :  { %v1772_v60 = vadd.s32 %v1770_v11, %v1768_v55  ;;  %v1750_v0 = vadd.s32 %v1748_v58, %v1746_v37 }
 0x53b   :  { %v1773_v4 = vadd.s32 %v1772_v60, %v1762_v59  ;;  %v1751_v52 = vadd.s32 %v1750_v0, %v1740_v63 }
 0x53d   :  { %v1774_v6 = vadd.s32 %v1773_v4, %v1764_v1  ;;  %v1752_v5 = vadd.s32 %v1751_v52, %v1742_v50 }
 0x53f   :  { %v1778_v10 = vadd.s32 1, %v1774_v6  ;;  %vm1777_vm4 = vc.u32 %v1752_v5, %v1771_v8  ;;  %v1776_v31 = vadd.s32 %v1771_v8, %v1752_v5 }
 0x541   :  { %v1779_v42 = vsel %vm1777_vm4, %v1778_v10, %v1774_v6 }
 0x542   :  { %v1780_v16 = vadd.s32 %v1779_v42, %v1775_v12 }
 0x544   :  { %v1781_v18 = vadd.s32 536870912, %v1780_v16 }
 0x546   :  { %v1782_v3 = vshrl.u32 %v1781_v18, 30 }
 0x548   :  { %v1783_v20 = vshll.u32 %v1782_v3, 30  ;;  %v1806_v7 = vsub.s32 4, %v1782_v3 }
 0x54a   :  { %v1784_v22 = vsub.s32 %v1780_v16, %v1783_v20  ;;  %v1807_v37 = vsel %vm1684_vm7, %v1806_v7, %v1782_v3 }
 0x54b   :  { %v1809_v59 = vsel %vm1683_vm8, 0, %v1807_v37 }
 0x54c   :  { %vm1785_vm5 = vcmp.lt.s32.totalorder %v1784_v22, 0  ;;  %v1786_v24 = vsub.s32 0, %v1784_v22  ;;  %v1826_v0 = vadd.s32 3, %v1809_v59 }
 0x54e   :  { %v1787_v25 = vsel %vm1785_vm5, %v1786_v24, %v1784_v22  ;;  %v1827_v52 = vand.u32 3, %v1826_v0 }
 0x54f   :  { %v1788_v28 = vclz %v1787_v25 }
 0x550   :  { %vm1829_vm9 = vcmp.eq.s32.totalorder %v1827_v52, 0  ;;  %vm1832_vm10 = vcmp.eq.s32.totalorder %v1827_v52, 2  ;;  %vm1828_vm11 = vcmp.lt.s32.totalorder %v1827_v52, 2 }
 0x551   :  { %v3574_v29 = vadd.s32 4294967294, %v1788_v28 }
 0x553   :  { %vm3575_vm6 = vcmp.lt.s32.totalorder %v3574_v29, 0 }
 0x554   :  { %v1791_v36 = vsel %vm3575_vm6, 0, %v3574_v29 }
 0x555   :  { %v1792_v32 = vsub.s32 32, %v1791_v36  ;;  %v1796_v35 = vsub.s32 4294967266, %v1791_v36  ;;  %v1793_v39 = vshll.u32 %v1784_v22, %v1791_v36  ;;  %v3966_v22 = vld [vmem:[#allocation19 + $0x1] ss:$0 sm:$0xff] }
 0x557   :  { %v1794_v43 = vshrl.u32 %v1776_v31, %v1792_v32  ;;  %v1797_v2 = vadd.s32 127, %v1796_v35 }
 0x559   :  { %v1795_v38 = vor.u32 %v1794_v43, %v1793_v39  ;;  %v1798_v44 = vshll.u32 %v1797_v2, 23  ;;  %v3905_v43 = vld [vmem:[#allocation17 + $0xb8] sm:$0xff] }
 0x55a   :  { %2173 = vmatpush.bf16.msra.mxu2 %v3905_v43 }
 0x55b   :  { %v1799_v45 = vor.u32 4788187, %v1798_v44  ;;  %v1802_v48 = vcvt.s32.f32 %v1795_v38  ;;  %v3904_v38 = vld [vmem:[#allocation17 + $0xb0] sm:$0xff] }
 0x55d   :  { %v1800_v46 = vand.u32 2147483647, %v1799_v45 }
 0x55e   :  { %2174 = vmatpush.bf16.msra.mxu2 %v3904_v38 }
 0x55f   :  { %v1803_v14 = vmul.f32 %v1802_v48, %v1800_v46  ;;  %v3967_v46 = vld [vmem:[#allocation20 + $0x2] ss:$0 sm:$0xff] }
 0x560   :  { %v3903_v48 = vld [vmem:[#allocation17 + $0xa8] sm:$0xff] }
 0x561   :  { %v1804_v49 = vxor.u32 2147483648, %v1803_v14 }
 0x562   :  { %2175 = vmatpush.bf16.msra.mxu2 %v3903_v48 }
 0x563   :  { %v1805_v51 = vsel %vm1684_vm7, %v1804_v49, %v1803_v14  ;;  %v3968_v49 = vld [vmem:[#allocation22 + $0x2] ss:$0 sm:$0xff] }
 0x564   :  { %v1808_v53 = vsel %vm1683_vm8, %v4671_v40, %v1805_v51 }
 0x565   :  { %v1810_v54 = vmul.f32 %v1808_v53, %v1808_v53 }
 0x567   :  { %v1811_v55 = vmul.f32 -0.001358992, %v1810_v54  ;;  %v1818_v56 = vmul.f32 -0.00019511016, %v1810_v54 }
 0x569   :  { %v1812_v11 = vadd.f32 0.041655596, %v1811_v55  ;;  %v1819_v58 = vadd.f32 0.008332121, %v1818_v56  ;;  %v3901_v56 = vld [vmem:[#allocation17 + $0x98] sm:$0xff] }
 0x56b   :  { %v1813_v60 = vmul.f32 %v1812_v11, %v1810_v54  ;;  %v1820_v61 = vmul.f32 %v1819_v58, %v1810_v54  ;;  %v3900_v58 = vld [vmem:[#allocation17 + $0x90] sm:$0xff] }
 0x56d   :  { %v1814_v62 = vadd.f32 -0.4999988, %v1813_v60  ;;  %v1821_v63 = vadd.f32 -0.16666654, %v1820_v61  ;;  %v3899_v61 = vld [vmem:[#allocation17 + $0x88] sm:$0xff] }
 0x56f   :  { %v1815_v1 = vmul.f32 %v1814_v62, %v1810_v54  ;;  %v1822_v4 = vmul.f32 %v1821_v63, %v1810_v54 }
 0x571   :  { %v1816_v50 = vadd.f32 1.0, %v1815_v1  ;;  %v1823_v47 = vadd.f32 1.0, %v1822_v4  ;;  %v3898_v4 = vld [vmem:[#allocation17 + $0x80] sm:$0xff] }
 0x573   :  { %v1824_v34 = vmul.f32 %v1823_v47, %v1808_v53  ;;  %v1833_v6 = vxor.u32 2147483648, %v1816_v50  ;;  %v3902_v53 = vld [vmem:[#allocation17 + $0xa0] sm:$0xff] }
 0x574   :  { %2176 = vmatpush.bf16.msra.mxu2 %v3902_v53 }
 0x575   :  { %v1830_v5 = vxor.u32 2147483648, %v1824_v34  ;;  %v1834_v10 = vsel %vm1832_vm10, %v1833_v6, %v1824_v34 }
 0x577   :  { %v1831_v8 = vsel %vm1829_vm9, %v1816_v50, %v1830_v5 }
 0x578   :  { %v1835_v12 = vsel %vm1828_vm11, %v1831_v8, %v1834_v10  ;;  %2177 = vmatpush.bf16.msra.mxu2 %v3901_v56 }
 0x579   :  { %v1836_v42 = vsel %vm1825_vm12, nan, %v1835_v12 }
 0x57a   :  { %v1837_v16 = vmul.f32 %v1836_v42, %v4565_v57 }
 0x57c   :  { %v1838_v18 = vadd.f32 %v1837_v16, %v4575_v27  ;;  %2178 = vmatpush.bf16.msra.mxu2 %v3900_v58 }
 0x57e   :  { %v4735_v3 = vadd.f32 %v1838_v18, %v4665_v15 }
 0x580   :  { %v1857_v20 = vpack.c.bf16 %v4735_v3, %v4735_v3  ;;  %2179 = vmatpush.bf16.msra.mxu2 %v3899_v61 }
 0x582   :  { %1916 = vmatmul.bf16.vlgmr.msra.gmra.mxu1 %v1857_v20 }
 0x584   :  { %2180 = vmatpush.bf16.msra.mxu2 %v3898_v4 }
 0x5ff   :  { %v1917_v24 = vpop.f32.mrf.mxu1 }
 0x600   :  { %v1918_v25 = vadd.f32 %v3966_v22, %v1917_v24 }
 0x602   :  { %1923 = vadd.xlane.f32.xlu2 %v1918_v25 }
 0x607   :  { %v1919_v28 = vpop.f32.mrf.mxu1 }
 0x675   :  { %v1924_v29 = vpop.xlane.xlu2 %1923 }
 0x676   :  { %v1925_v40 = vmul.f32 %v1924_v29, %v4584_v41 }
 0x678   :  { %v1926_v36 = vsub.f32 %v1918_v25, %v1925_v40 }
 0x67a   :  { %v1927_v31 = vmul.f32 %v1926_v36, %v1926_v36 }
 0x67c   :  { %1928 = vadd.xlane.f32.xlu2 %v1927_v31 }
 0x6ef   :  { %v1929_v57 = vpop.xlane.xlu2 %1928 }
 0x6f0   :  { %v1930_v27 = vmul.f32 %v1929_v57, %v4584_v41 }
 0x6f2   :  { %v1931_v15 = vadd.f32 1e-05, %v1930_v27 }
 0x6f4   :  { %3985 = vrsqrt.f32 %v1931_v15  ;;  %vm1938_vm14 = vweird.f32 %v1931_v15 }
 0x6fa   :  { %v3986_v32 = vpop.eup %3985 }
 0x6fb   :  { %v1933_v35 = vmul.f32 %v3986_v32, %v1931_v15  ;;  %vm1939_vm13 = vweird.f32 %v3986_v32 }
 0x6fc   :  { %vm1940_vm15 = vmor %vm1938_vm14, %vm1939_vm13 }
 0x6fd   :  { %v1934_v39 = vmul.f32 %v3986_v32, %v1933_v35 }
 0x6ff   :  { %v1935_v2 = vmul.f32 0.5, %v1934_v39 }
 0x701   :  { %v1936_v44 = vsub.f32 1.5, %v1935_v2 }
 0x703   :  { %v1937_v45 = vmul.f32 %v3986_v32, %v1936_v44 }
 0x705   :  { %v1941_v14 = vsel %vm1940_vm15, %v3986_v32, %v1937_v45 }
 0x706   :  { %v1942_v51 = vmul.f32 %v1941_v14, %v1926_v36 }
 0x708   :  { %v1944_v7 = vmul.f32 %v3967_v46, %v1942_v51 }
 0x70a   :  { %v4741_v54 = vadd.f32 %v3968_v49, %v1944_v7 }
 0x70c   :  { %v1950_v55 = vand.u32 2139095040, %v4741_v54  ;;  %v1947_v59 = vand.u32 2147483647, %v4741_v54  ;;  %vm1949_vm12 = vcmp.lt.s32.totalorder %v4741_v54, 0 }
 0x70e   :  { %v1951_v37 = vshrl.u32 %v1950_v55, 23  ;;  %v1954_v62 = vand.u32 8388607, %v1947_v59  ;;  %vm1948_vm13 = vcmp.le.f32.partialorder %v1947_v59, 0.7853982 }
 0x710   :  { %v3608_v11 = vadd.s32 4294967169, %v1951_v37  ;;  %v1955_v50 = vor.u32 8388608, %v1954_v62 }
 0x712   :  { %v1957_v60 = vadd.s32 1, %v3608_v11  ;;  %v4759_v25 = vshll.u32 %v1955_v50, 8 }
 0x714   :  { %vm1958_vm0 = vcmp.gt.s32.totalorder %v1957_v60, 0  ;;  %v1996_v35 = vand.u32 65535, %v4759_v25  ;;  %v1997_v43 = vshrl.u32 %v4759_v25, 16 }
 0x715   :  { %v1959_v63 = vsel %vm1958_vm0, %v1957_v60, 0 }
 0x716   :  { %v1961_v0 = vand.u32 31, %v1959_v63  ;;  %v4747_v47 = vshrl.u32 %v1959_v63, 5 }
 0x718   :  { %v1962_v1 = vsub.s32 32, %v1961_v0  ;;  %v1973_v52 = vshll.u32 %v4395_v26, %v1961_v0  ;;  %v1976_v34 = vshll.u32 %v4396_v30, %v1961_v0  ;;  %v1964_v8 = vshll.u32 %v4392_v17, %v1961_v0 }
 0x719   :  { %v1967_v12 = vshll.u32 %v4393_v19, %v1961_v0  ;;  %v1970_v16 = vshll.u32 %v4394_v23, %v1961_v0  ;;  %vm1982_vm1 = vcmp.lt.s32.totalorder %v4747_v47, 4  ;;  %vm1979_vm2 = vcmp.lt.s32.totalorder %v4747_v47, 1 }
 0x71a   :  { %v1974_v6 = vshrl.u32 %v4396_v30, %v1962_v1  ;;  %v1977_v5 = vshrl.u32 %v4397_v33, %v1962_v1  ;;  %v1965_v10 = vshrl.u32 %v4393_v19, %v1962_v1  ;;  %v1968_v42 = vshrl.u32 %v4394_v23, %v1962_v1 }
 0x71b   :  { %v1971_v18 = vshrl.u32 %v4395_v26, %v1962_v1  ;;  %vm1981_vm3 = vcmp.lt.s32.totalorder %v4747_v47, 3  ;;  %vm1980_vm4 = vcmp.lt.s32.totalorder %v4747_v47, 2  ;;  %v1963_v50 = vshrl.u32 %v4392_v17, %v1962_v1 }
 0x71c   :  { %v1975_v20 = vor.u32 %v1974_v6, %v1973_v52  ;;  %v1978_v22 = vor.u32 %v1977_v5, %v1976_v34  ;;  %v1966_v24 = vor.u32 %v1965_v10, %v1964_v8  ;;  %v1969_v28 = vor.u32 %v1968_v42, %v1967_v12 }
 0x71d   :  { %v1972_v29 = vor.u32 %v1971_v18, %v1970_v16 }
 0x71e   :  { %v1988_v40 = vsel %vm1982_vm1, %v1975_v20, 920167782  ;;  %v1992_v36 = vsel %vm1982_vm1, %v1978_v22, 1326507024  ;;  %v1987_v31 = vsel %vm1979_vm2, %v1966_v24, %v1969_v28  ;;  %v1983_v10 = vsel %vm1979_vm2, %v1963_v50, %v1966_v24 }
 0x71f   :  { %v1989_v57 = vsel %vm1981_vm3, %v1972_v29, %v1988_v40  ;;  %v1991_v27 = vsel %vm1979_vm2, %v1969_v28, %v1972_v29  ;;  %v1993_v32 = vsel %vm1981_vm3, %v1975_v20, %v1992_v36  ;;  %v1984_v63 = vsel %vm1982_vm1, %v1972_v29, 2102212464 }
 0x720   :  { %v1990_v15 = vsel %vm1980_vm4, %v1987_v31, %v1989_v57  ;;  %v1994_v39 = vsel %vm1980_vm4, %v1991_v27, %v1993_v32  ;;  %v1985_v12 = vsel %vm1981_vm3, %v1969_v28, %v1984_v63  ;;  %vm2090_vm1 = vweird.f32 %v4741_v54 }
 0x721   :  { %v2020_v2 = vand.u32 65535, %v1990_v15  ;;  %v2021_v38 = vshrl.u32 %v1990_v15, 16  ;;  %v1998_v44 = vand.u32 65535, %v1994_v39  ;;  %v1999_v45 = vshrl.u32 %v1994_v39, 16 }
 0x722   :  { %v1986_v29 = vsel %vm1980_vm4, %v1983_v10, %v1985_v12 }
 0x723   :  { %v2023_v46 = vmul.u32 %v2021_v38, %v1996_v35  ;;  %v2024_v48 = vmul.u32 %v2020_v2, %v1997_v43  ;;  %v2001_v14 = vmul.u32 %v1999_v45, %v1996_v35  ;;  %v2002_v49 = vmul.u32 %v1998_v44, %v1997_v43 }
 0x724   :  { %v2022_v51 = vmul.u32 %v2020_v2, %v1996_v35  ;;  %v2000_v53 = vmul.u32 %v1998_v44, %v1996_v35  ;;  %v2025_v56 = vmul.u32 %v2021_v38, %v1997_v43  ;;  %v2003_v37 = vmul.u32 %v1999_v45, %v1997_v43 }
 0x725   :  { %v2026_v7 = vshll.u32 %v2023_v46, 16  ;;  %v2004_v55 = vshll.u32 %v2001_v14, 16  ;;  %v2028_v11 = vshll.u32 %v2024_v48, 16  ;;  %v2006_v60 = vshll.u32 %v2002_v49, 16 }
 0x726   :  { %v2027_v5 = vshrl.u32 %v2023_v46, 16  ;;  %v2005_v42 = vshrl.u32 %v2001_v14, 16  ;;  %v2029_v18 = vshrl.u32 %v2024_v48, 16  ;;  %v2007_v22 = vshrl.u32 %v2002_v49, 16 }
 0x727   :  { %vm2030_vm5 = vc.u32 %v2022_v51, %v2026_v7  ;;  %v2032_v58 = vadd.s32 %v2026_v7, %v2022_v51  ;;  %vm2008_vm6 = vc.u32 %v2000_v53, %v2004_v55  ;;  %v2010_v61 = vadd.s32 %v2004_v55, %v2000_v53 }
 0x728   :  { %v2031_v62 = vsel %vm2030_vm5, 1, %v4398_v9  ;;  %v2009_v0 = vsel %vm2008_vm6, 1, %v4398_v9  ;;  %v2040_v27 = vmul.u32 %v4759_v25, %v1986_v29 }
 0x729   :  { %v2033_v4 = vadd.s32 %v2031_v62, %v2025_v56  ;;  %vm2034_vm7 = vc.u32 %v2032_v58, %v2028_v11  ;;  %v2011_v52 = vadd.s32 %v2009_v0, %v2003_v37  ;;  %vm2012_vm8 = vc.u32 %v2010_v61, %v2006_v60 }
 0x72a   :  { %v2035_v34 = vsel %vm2034_vm7, 1, %v4398_v9  ;;  %v2013_v6 = vsel %vm2012_vm8, 1, %v4398_v9  ;;  %v2036_v31 = vadd.s32 %v2032_v58, %v2028_v11 }
 0x72b   :  { %v2037_v8 = vadd.s32 %v2035_v34, %v2033_v4  ;;  %v2015_v16 = vadd.s32 %v2013_v6, %v2011_v52 }
 0x72d   :  { %v2038_v20 = vadd.s32 %v2037_v8, %v2027_v5  ;;  %v2016_v1 = vadd.s32 %v2015_v16, %v2005_v42 }
 0x72f   :  { %v2039_v40 = vadd.s32 %v2038_v20, %v2029_v18  ;;  %v2017_v36 = vadd.s32 %v2016_v1, %v2007_v22 }
 0x731   :  { %v2043_v57 = vadd.s32 1, %v2039_v40  ;;  %vm2042_vm9 = vc.u32 %v2017_v36, %v2036_v31  ;;  %v2041_v45 = vadd.s32 %v2036_v31, %v2017_v36 }
 0x733   :  { %v2044_v24 = vsel %vm2042_vm9, %v2043_v57, %v2039_v40 }
 0x734   :  { %v2045_v15 = vadd.s32 %v2044_v24, %v2040_v27 }
 0x736   :  { %v2046_v32 = vadd.s32 536870912, %v2045_v15 }
 0x738   :  { %v2047_v28 = vshrl.u32 %v2046_v32, 30 }
 0x73a   :  { %v2048_v35 = vshll.u32 %v2047_v28, 30  ;;  %v2071_v60 = vsub.s32 4, %v2047_v28 }
 0x73c   :  { %v2049_v39 = vsub.s32 %v2045_v15, %v2048_v35  ;;  %v2072_v4 = vsel %vm1949_vm12, %v2071_v60, %v2047_v28  ;;  %v3969_v28 = vld [vmem:[#allocation19 + $0x2] ss:$0 sm:$0xff] }
 0x73d   :  { %v2074_v34 = vsel %vm1948_vm13, 0, %v2072_v4  ;;  %v3907_v4 = vld [vmem:[#allocation17 + $0xc8] sm:$0xff] }
 0x73e   :  { %vm2050_vm10 = vcmp.lt.s32.totalorder %v2049_v39, 0  ;;  %v2051_v43 = vsub.s32 0, %v2049_v39  ;;  %v2091_v12 = vadd.s32 3, %v2074_v34 }
 0x740   :  { %v2052_v2 = vsel %vm2050_vm10, %v2051_v43, %v2049_v39  ;;  %v2092_v20 = vand.u32 3, %v2091_v12 }
 0x741   :  { %v2053_v38 = vclz %v2052_v2 }
 0x742   :  { %vm2094_vm14 = vcmp.eq.s32.totalorder %v2092_v20, 0  ;;  %vm2097_vm15 = vcmp.eq.s32.totalorder %v2092_v20, 2  ;;  %vm2093_vm0 = vcmp.lt.s32.totalorder %v2092_v20, 2 }
 0x743   :  { %v3609_v44 = vadd.s32 4294967294, %v2053_v38 }
 0x745   :  { %vm3610_vm11 = vcmp.lt.s32.totalorder %v3609_v44, 0 }
 0x746   :  { %v2056_v47 = vsel %vm3610_vm11, 0, %v3609_v44 }
 0x747   :  { %v2057_v46 = vsub.s32 32, %v2056_v47  ;;  %v2061_v48 = vsub.s32 4294967266, %v2056_v47  ;;  %v2058_v14 = vshll.u32 %v2049_v39, %v2056_v47 }
 0x749   :  { %v2059_v49 = vshrl.u32 %v2041_v45, %v2057_v46  ;;  %v2062_v25 = vadd.s32 127, %v2061_v48  ;;  %v3912_v46 = vld [vmem:[#allocation17 + $0xf0] sm:$0xff] }
 0x74b   :  { %v2060_v51 = vor.u32 %v2059_v49, %v2058_v14  ;;  %v2063_v7 = vshll.u32 %v2062_v25, 23  ;;  %v3911_v49 = vld [vmem:[#allocation17 + $0xe8] sm:$0xff] }
 0x74d   :  { %v2064_v53 = vor.u32 4788187, %v2063_v7  ;;  %v2067_v56 = vcvt.s32.f32 %v2060_v51  ;;  %v3910_v7 = vld [vmem:[#allocation17 + $0xe0] sm:$0xff] }
 0x74f   :  { %v2065_v55 = vand.u32 2147483647, %v2064_v53 }
 0x751   :  { %v2068_v37 = vmul.f32 %v2067_v56, %v2065_v55  ;;  %v3970_v55 = vld [vmem:[#allocation20 + $0x3] ss:$0 sm:$0xff] }
 0x753   :  { %v2069_v11 = vxor.u32 2147483648, %v2068_v37 }
 0x755   :  { %v2070_v58 = vsel %vm1949_vm12, %v2069_v11, %v2068_v37  ;;  %v3971_v37 = vld [vmem:[#allocation22 + $0x3] ss:$0 sm:$0xff] }
 0x756   :  { %v2073_v61 = vsel %vm1948_vm13, %v4741_v54, %v2070_v58  ;;  %v3909_v58 = vld [vmem:[#allocation17 + $0xd8] sm:$0xff] }
 0x757   :  { %v2075_v62 = vmul.f32 %v2073_v61, %v2073_v61 }
 0x759   :  { %v2076_v63 = vmul.f32 -0.001358992, %v2075_v62  ;;  %v2083_v0 = vmul.f32 -0.00019511016, %v2075_v62 }
 0x75b   :  { %v2077_v50 = vadd.f32 0.041655596, %v2076_v63  ;;  %v2084_v52 = vadd.f32 0.008332121, %v2083_v0 }
 0x75d   :  { %v2078_v6 = vmul.f32 %v2077_v50, %v2075_v62  ;;  %v2085_v5 = vmul.f32 %v2084_v52, %v2075_v62 }
 0x75f   :  { %v2079_v8 = vadd.f32 -0.4999988, %v2078_v6  ;;  %v2086_v10 = vadd.f32 -0.16666654, %v2085_v5  ;;  %v3906_v6 = vld [vmem:[#allocation17 + $0xc0] sm:$0xff] }
 0x761   :  { %v2080_v42 = vmul.f32 %v2079_v8, %v2075_v62  ;;  %v2087_v16 = vmul.f32 %v2086_v10, %v2075_v62  ;;  %v3908_v62 = vld [vmem:[#allocation17 + $0xd0] sm:$0xff] }
 0x763   :  { %v2081_v18 = vadd.f32 1.0, %v2080_v42  ;;  %v2088_v59 = vadd.f32 1.0, %v2087_v16 }
 0x765   :  { %v2089_v22 = vmul.f32 %v2088_v59, %v2073_v61  ;;  %v2098_v1 = vxor.u32 2147483648, %v2081_v18 }
 0x767   :  { %v2095_v29 = vxor.u32 2147483648, %v2089_v22  ;;  %v2099_v36 = vsel %vm2097_vm15, %v2098_v1, %v2089_v22 }
 0x769   :  { %v2096_v40 = vsel %vm2094_vm14, %v2081_v18, %v2095_v29 }
 0x76a   :  { %v2100_v31 = vsel %vm2093_vm0, %v2096_v40, %v2099_v36 }
 0x76b   :  { %v2101_v57 = vsel %vm2090_vm1, nan, %v2100_v31 }
 0x76c   :  { %v2102_v27 = vmul.f32 %v2101_v57, %v4571_v13 }
 0x76e   :  { %v2103_v24 = vadd.f32 %v2102_v27, %v4573_v21  ;;  %v3913_v21 = vld [vmem:[#allocation17 + $0xf8] sm:$0xff] }
 0x76f   :  { %2435 = vmatpush.bf16.msra.mxu3 %v3913_v21 }
 0x770   :  { %v2104_v15 = vadd.f32 %v2103_v24, %v4735_v3 }
 0x772   :  { %v2122_v32 = vpack.c.bf16 %v2104_v15, %v2104_v15 }
 0x773   :  { %2436 = vmatpush.bf16.msra.mxu3 %v3912_v46 }
 0x774   :  { %2181 = vmatmul.bf16.vlgmr.msra.gmra.mxu2 %v2122_v32 }
 0x777   :  { %2437 = vmatpush.bf16.msra.mxu3 %v3911_v49 }
 0x77b   :  { %2438 = vmatpush.bf16.msra.mxu3 %v3910_v7 }
 0x77f   :  { %2439 = vmatpush.bf16.msra.mxu3 %v3909_v58 }
 0x783   :  { %2440 = vmatpush.bf16.msra.mxu3 %v3908_v62 }
 0x787   :  { %2441 = vmatpush.bf16.msra.mxu3 %v3907_v4 }
 0x78b   :  { %2442 = vmatpush.bf16.msra.mxu3 %v3906_v6 }
 0x7f7   :  { %v2182_v35 = vpop.f32.mrf.mxu2 }
 0x7f8   :  { %v2183_v39 = vadd.f32 %v3969_v28, %v2182_v35 }
 0x7fa   :  { %2188 = vadd.xlane.f32.xlu0 %v2183_v39 }
 0x7ff   :  { %v2184_v43 = vpop.f32.mrf.mxu2 }
 0x86d   :  { %v2189_v2 = vpop.xlane.xlu0 %2188 }
 0x86e   :  { %v2190_v38 = vmul.f32 %v2189_v2, %v4584_v41 }
 0x870   :  { %v2191_v44 = vsub.f32 %v2183_v39, %v2190_v38 }
 0x872   :  { %v2192_v54 = vmul.f32 %v2191_v44, %v2191_v44 }
 0x874   :  { %2193 = vadd.xlane.f32.xlu1 %v2192_v54 }
 0x8e7   :  { %v2194_v47 = vpop.xlane.xlu1 %2193 }
 0x8e8   :  { %v2195_v13 = vmul.f32 %v2194_v47, %v4584_v41 }
 0x8ea   :  { %v2196_v45 = vadd.f32 1e-05, %v2195_v13 }
 0x8ec   :  { %3987 = vrsqrt.f32 %v2196_v45  ;;  %vm2203_vm3 = vweird.f32 %v2196_v45 }
 0x8f2   :  { %v3988_v3 = vpop.eup %3987 }
 0x8f3   :  { %v2198_v48 = vmul.f32 %v3988_v3, %v2196_v45  ;;  %vm2204_vm2 = vweird.f32 %v3988_v3 }
 0x8f4   :  { %vm2205_vm4 = vmor %vm2203_vm3, %vm2204_vm2 }
 0x8f5   :  { %v2199_v14 = vmul.f32 %v3988_v3, %v2198_v48 }
 0x8f7   :  { %v2200_v25 = vmul.f32 0.5, %v2199_v14 }
 0x8f9   :  { %v2201_v51 = vsub.f32 1.5, %v2200_v25 }
 0x8fb   :  { %v2202_v53 = vmul.f32 %v3988_v3, %v2201_v51 }
 0x8fd   :  { %v2206_v56 = vsel %vm2205_vm4, %v3988_v3, %v2202_v53 }
 0x8fe   :  { %v2207_v11 = vmul.f32 %v2206_v56, %v2191_v44 }
 0x900   :  { %v2209_v60 = vmul.f32 %v3970_v55, %v2207_v11 }
 0x902   :  { %v4807_v61 = vadd.f32 %v3971_v37, %v2209_v60 }
 0x904   :  { %v2215_v63 = vand.u32 2139095040, %v4807_v61  ;;  %v2212_v52 = vand.u32 2147483647, %v4807_v61  ;;  %vm2214_vm1 = vcmp.lt.s32.totalorder %v4807_v61, 0 }
 0x906   :  { %v2216_v0 = vshrl.u32 %v2215_v63, 23  ;;  %v2219_v8 = vand.u32 8388607, %v2212_v52  ;;  %vm2213_vm2 = vcmp.le.f32.partialorder %v2212_v52, 0.7853982 }
 0x908   :  { %v3643_v50 = vadd.s32 4294967169, %v2216_v0  ;;  %v2220_v16 = vor.u32 8388608, %v2219_v8 }
 0x90a   :  { %v2222_v34 = vadd.s32 1, %v3643_v50  ;;  %v4826_v35 = vshll.u32 %v2220_v16, 8 }
 0x90c   :  { %vm2223_vm5 = vcmp.gt.s32.totalorder %v2222_v34, 0  ;;  %v2261_v45 = vand.u32 65535, %v4826_v35  ;;  %v2262_v21 = vshrl.u32 %v4826_v35, 16 }
 0x90d   :  { %v2224_v5 = vsel %vm2223_vm5, %v2222_v34, 0 }
 0x90e   :  { %v2226_v10 = vand.u32 31, %v2224_v5  ;;  %v4813_v42 = vshrl.u32 %v2224_v5, 5 }
 0x910   :  { %v2227_v12 = vsub.s32 32, %v2226_v10  ;;  %v2229_v18 = vshll.u32 %v4392_v17, %v2226_v10  ;;  %v2232_v59 = vshll.u32 %v4393_v19, %v2226_v10  ;;  %v2235_v1 = vshll.u32 %v4394_v23, %v2226_v10 }
 0x911   :  { %v2238_v40 = vshll.u32 %v4395_v26, %v2226_v10  ;;  %v2241_v31 = vshll.u32 %v4396_v30, %v2226_v10  ;;  %vm2244_vm6 = vcmp.lt.s32.totalorder %v4813_v42, 1  ;;  %vm2247_vm7 = vcmp.lt.s32.totalorder %v4813_v42, 4 }
 0x912   :  { %v2230_v20 = vshrl.u32 %v4393_v19, %v2227_v12  ;;  %v2233_v22 = vshrl.u32 %v4394_v23, %v2227_v12  ;;  %v2236_v29 = vshrl.u32 %v4395_v26, %v2227_v12  ;;  %v2239_v36 = vshrl.u32 %v4396_v30, %v2227_v12 }
 0x913   :  { %v2242_v57 = vshrl.u32 %v4397_v33, %v2227_v12  ;;  %vm2246_vm8 = vcmp.lt.s32.totalorder %v4813_v42, 3  ;;  %vm2245_vm9 = vcmp.lt.s32.totalorder %v4813_v42, 2  ;;  %v2228_v10 = vshrl.u32 %v4392_v17, %v2227_v12 }
 0x914   :  { %v2231_v27 = vor.u32 %v2230_v20, %v2229_v18  ;;  %v2234_v24 = vor.u32 %v2233_v22, %v2232_v59  ;;  %v2237_v15 = vor.u32 %v2236_v29, %v2235_v1  ;;  %v2240_v32 = vor.u32 %v2239_v36, %v2238_v40 }
 0x915   :  { %v2243_v28 = vor.u32 %v2242_v57, %v2241_v31 }
 0x916   :  { %v2252_v39 = vsel %vm2244_vm6, %v2231_v27, %v2234_v24  ;;  %v2256_v43 = vsel %vm2244_vm6, %v2234_v24, %v2237_v15  ;;  %v2253_v2 = vsel %vm2247_vm7, %v2240_v32, 920167782  ;;  %v2249_v6 = vsel %vm2247_vm7, %v2237_v15, 2102212464 }
 0x917   :  { %v2257_v38 = vsel %vm2247_vm7, %v2243_v28, 1326507024  ;;  %v2254_v44 = vsel %vm2246_vm8, %v2237_v15, %v2253_v2  ;;  %v2248_v1 = vsel %vm2244_vm6, %v2228_v10, %v2231_v27  ;;  %v2250_v29 = vsel %vm2246_vm8, %v2234_v24, %v2249_v6 }
 0x918   :  { %v2258_v54 = vsel %vm2246_vm8, %v2240_v32, %v2257_v38  ;;  %v2255_v47 = vsel %vm2245_vm9, %v2252_v39, %v2254_v44  ;;  %v2251_v12 = vsel %vm2245_vm9, %v2248_v1, %v2250_v29  ;;  %vm2355_vm6 = vweird.f32 %v4807_v61 }
 0x919   :  { %v2259_v13 = vsel %vm2245_vm9, %v2256_v43, %v2258_v54  ;;  %v2285_v48 = vand.u32 65535, %v2255_v47  ;;  %v2286_v14 = vshrl.u32 %v2255_v47, 16  ;;  %v2305_v43 = vmul.u32 %v4826_v35, %v2251_v12 }
 0x91a   :  { %v2263_v3 = vand.u32 65535, %v2259_v13  ;;  %v2264_v46 = vshrl.u32 %v2259_v13, 16 }
 0x91b   :  { %v2288_v51 = vmul.u32 %v2286_v14, %v2261_v45  ;;  %v2289_v7 = vmul.u32 %v2285_v48, %v2262_v21  ;;  %v2287_v37 = vmul.u32 %v2285_v48, %v2261_v45  ;;  %v2290_v62 = vmul.u32 %v2286_v14, %v2262_v21 }
 0x91c   :  { %v2266_v49 = vmul.u32 %v2264_v46, %v2261_v45  ;;  %v2267_v25 = vmul.u32 %v2263_v3, %v2262_v21  ;;  %v2265_v53 = vmul.u32 %v2263_v3, %v2261_v45  ;;  %v2268_v56 = vmul.u32 %v2264_v46, %v2262_v21 }
 0x91d   :  { %v2291_v11 = vshll.u32 %v2288_v51, 16  ;;  %v2293_v0 = vshll.u32 %v2289_v7, 16  ;;  %v2292_v20 = vshrl.u32 %v2288_v51, 16  ;;  %v2294_v31 = vshrl.u32 %v2289_v7, 16 }
 0x91e   :  { %v2269_v55 = vshll.u32 %v2266_v49, 16  ;;  %v2271_v58 = vshll.u32 %v2267_v25, 16  ;;  %v2270_v16 = vshrl.u32 %v2266_v49, 16  ;;  %v2272_v40 = vshrl.u32 %v2267_v25, 16 }
 0x91f   :  { %vm2295_vm11 = vc.u32 %v2287_v37, %v2291_v11  ;;  %v2297_v4 = vadd.s32 %v2291_v11, %v2287_v37 }
 0x920   :  { %vm2273_vm10 = vc.u32 %v2265_v53, %v2269_v55  ;;  %v2275_v60 = vadd.s32 %v2269_v55, %v2265_v53  ;;  %v2296_v34 = vsel %vm2295_vm11, 1, %v4398_v9 }
 0x921   :  { %v2274_v63 = vsel %vm2273_vm10, 1, %v4398_v9  ;;  %v2298_v8 = vadd.s32 %v2296_v34, %v2290_v62  ;;  %vm2299_vm13 = vc.u32 %v2297_v4, %v2293_v0  ;;  %v2301_v32 = vadd.s32 %v2297_v4, %v2293_v0 }
 0x922   :  { %v2276_v50 = vadd.s32 %v2274_v63, %v2268_v56  ;;  %vm2277_vm12 = vc.u32 %v2275_v60, %v2271_v58  ;;  %v2300_v59 = vsel %vm2299_vm13, 1, %v4398_v9 }
 0x923   :  { %v2278_v5 = vsel %vm2277_vm12, 1, %v4398_v9  ;;  %v2302_v22 = vadd.s32 %v2300_v59, %v2298_v8 }
 0x924   :  { %v2280_v18 = vadd.s32 %v2278_v5, %v2276_v50 }
 0x925   :  { %v2303_v57 = vadd.s32 %v2302_v22, %v2292_v20 }
 0x926   :  { %v2281_v36 = vadd.s32 %v2280_v18, %v2270_v16 }
 0x927   :  { %v2304_v28 = vadd.s32 %v2303_v57, %v2294_v31 }
 0x928   :  { %v2282_v15 = vadd.s32 %v2281_v36, %v2272_v40 }
 0x929   :  { %v2308_v39 = vadd.s32 1, %v2304_v28 }
 0x92a   :  { %vm2307_vm14 = vc.u32 %v2282_v15, %v2301_v32  ;;  %v2306_v42 = vadd.s32 %v2301_v32, %v2282_v15 }
 0x92b   :  { %v2309_v2 = vsel %vm2307_vm14, %v2308_v39, %v2304_v28  ;;  %v3972_v28 = vld [vmem:[#allocation19 + $0x3] ss:$0 sm:$0xff] }
 0x92c   :  { %v2310_v38 = vadd.s32 %v2309_v2, %v2305_v43 }
 0x92e   :  { %v2311_v27 = vadd.s32 536870912, %v2310_v38 }
 0x930   :  { %v2312_v44 = vshrl.u32 %v2311_v27, 30 }
 0x932   :  { %v2313_v54 = vshll.u32 %v2312_v44, 30  ;;  %v2336_v58 = vsub.s32 4, %v2312_v44 }
 0x934   :  { %v2314_v24 = vsub.s32 %v2310_v38, %v2313_v54  ;;  %v2337_v4 = vsel %vm2214_vm1, %v2336_v58, %v2312_v44 }
 0x935   :  { %v2339_v6 = vsel %vm2213_vm2, 0, %v2337_v4 }
 0x936   :  { %vm2315_vm15 = vcmp.lt.s32.totalorder %v2314_v24, 0  ;;  %v2316_v47 = vsub.s32 0, %v2314_v24  ;;  %v2356_v18 = vadd.s32 3, %v2339_v6 }
 0x938   :  { %v2317_v13 = vsel %vm2315_vm15, %v2316_v47, %v2314_v24  ;;  %v2357_v1 = vand.u32 3, %v2356_v18 }
 0x939   :  { %v2318_v45 = vclz %v2317_v13 }
 0x93a   :  { %vm2359_vm3 = vcmp.eq.s32.totalorder %v2357_v1, 0  ;;  %vm2362_vm4 = vcmp.eq.s32.totalorder %v2357_v1, 2  ;;  %vm2358_vm5 = vcmp.lt.s32.totalorder %v2357_v1, 2 }
 0x93b   :  { %v3644_v21 = vadd.s32 4294967294, %v2318_v45 }
 0x93d   :  { %vm3645_vm0 = vcmp.lt.s32.totalorder %v3644_v21, 0 }
 0x93e   :  { %v2321_v3 = vsel %vm3645_vm0, 0, %v3644_v21  ;;  %v3920_v21 = vld [vmem:[#allocation17 + $0x130] sm:$0xff] }
 0x93f   :  { %v2322_v46 = vsub.s32 32, %v2321_v3  ;;  %v2326_v48 = vsub.s32 4294967266, %v2321_v3  ;;  %v2323_v14 = vshll.u32 %v2314_v24, %v2321_v3 }
 0x941   :  { %v2324_v49 = vshrl.u32 %v2306_v42, %v2322_v46  ;;  %v2327_v25 = vadd.s32 127, %v2326_v48  ;;  %v3919_v46 = vld [vmem:[#allocation17 + $0x128] sm:$0xff] }
 0x943   :  { %v2325_v35 = vor.u32 %v2324_v49, %v2323_v14  ;;  %v2328_v51 = vshll.u32 %v2327_v25, 23  ;;  %v3918_v49 = vld [vmem:[#allocation17 + $0x120] sm:$0xff] }
 0x945   :  { %v2329_v7 = vor.u32 4788187, %v2328_v51  ;;  %v2332_v55 = vcvt.s32.f32 %v2325_v35  ;;  %v3973_v35 = vld [vmem:[#allocation20 + $0x4] ss:$0 sm:$0xff] }
 0x947   :  { %v2330_v53 = vand.u32 2147483647, %v2329_v7  ;;  %v3974_v7 = vld [vmem:[#allocation22 + $0x4] ss:$0 sm:$0xff] }
 0x949   :  { %v2333_v56 = vmul.f32 %v2332_v55, %v2330_v53  ;;  %v3917_v55 = vld [vmem:[#allocation17 + $0x118] sm:$0xff] }
 0x94b   :  { %v2334_v37 = vxor.u32 2147483648, %v2333_v56 }
 0x94d   :  { %v2335_v11 = vsel %vm2214_vm1, %v2334_v37, %v2333_v56 }
 0x94e   :  { %v2338_v60 = vsel %vm2213_vm2, %v4807_v61, %v2335_v11  ;;  %v3921_v61 = vld [vmem:[#allocation17 + $0x138] sm:$0xff]  ;;  %v3916_v11 = vld [vmem:[#allocation17 + $0x110] sm:$0xff] }
 0x94f   :  { %v2340_v62 = vmul.f32 %v2338_v60, %v2338_v60  ;;  %2697 = vmatpush.bf16.msrb.mxu0 %v3921_v61 }
 0x951   :  { %v2341_v63 = vmul.f32 -0.001358992, %v2340_v62  ;;  %v2348_v0 = vmul.f32 -0.00019511016, %v2340_v62 }
 0x953   :  { %v2342_v50 = vadd.f32 0.041655596, %v2341_v63  ;;  %v2349_v34 = vadd.f32 0.008332121, %v2348_v0  ;;  %2698 = vmatpush.bf16.msrb.mxu0 %v3920_v21 }
 0x955   :  { %v2343_v5 = vmul.f32 %v2342_v50, %v2340_v62  ;;  %v2350_v8 = vmul.f32 %v2349_v34, %v2340_v62  ;;  %v3914_v50 = vld [vmem:[#allocation17 + $0x100] sm:$0xff] }
 0x957   :  { %v2344_v10 = vadd.f32 -0.4999988, %v2343_v5  ;;  %v2351_v16 = vadd.f32 -0.16666654, %v2350_v8  ;;  %2699 = vmatpush.bf16.msrb.mxu0 %v3919_v46 }
 0x959   :  { %v2345_v59 = vmul.f32 %v2344_v10, %v2340_v62  ;;  %v2352_v20 = vmul.f32 %v2351_v16, %v2340_v62  ;;  %v3915_v62 = vld [vmem:[#allocation17 + $0x108] sm:$0xff] }
 0x95b   :  { %v2346_v22 = vadd.f32 1.0, %v2345_v59  ;;  %v2353_v52 = vadd.f32 1.0, %v2352_v20  ;;  %2700 = vmatpush.bf16.msrb.mxu0 %v3918_v49 }
 0x95d   :  { %v2354_v29 = vmul.f32 %v2353_v52, %v2338_v60  ;;  %v2363_v40 = vxor.u32 2147483648, %v2346_v22 }
 0x95f   :  { %v2360_v36 = vxor.u32 2147483648, %v2354_v29  ;;  %v2364_v57 = vsel %vm2362_vm4, %v2363_v40, %v2354_v29  ;;  %2701 = vmatpush.bf16.msrb.mxu0 %v3917_v55 }
 0x961   :  { %v2361_v31 = vsel %vm2359_vm3, %v2346_v22, %v2360_v36 }
 0x962   :  { %v2365_v15 = vsel %vm2358_vm5, %v2361_v31, %v2364_v57 }
 0x963   :  { %v2366_v32 = vsel %vm2355_vm6, nan, %v2365_v15  ;;  %2702 = vmatpush.bf16.msrb.mxu0 %v3916_v11 }
 0x964   :  { %v2384_v12 = vpack.c.bf16 %v2366_v32, %v2366_v32 }
 0x966   :  { %2443 = vmatmul.bf16.vlgmr.msra.gmra.mxu3 %v2384_v12 }
 0x967   :  { %2703 = vmatpush.bf16.msrb.mxu0 %v3915_v62 }
 0x96b   :  { %2704 = vmatpush.bf16.msrb.mxu0 %v3914_v50 }
 0x9e9   :  { %v2444_v39 = vpop.f32.mrf.mxu3 }
 0x9ea   :  { %v2445_v43 = vadd.f32 %v3972_v28, %v2444_v39 }
 0x9ec   :  { %2450 = vadd.xlane.f32.xlu2 %v2445_v43 }
 0x9f1   :  { %v2446_v2 = vpop.f32.mrf.mxu3 }
 0xa5f   :  { %v2451_v38 = vpop.xlane.xlu2 %2450 }
 0xa60   :  { %v2452_v27 = vmul.f32 %v2451_v38, %v4584_v41 }
 0xa62   :  { %v2453_v44 = vsub.f32 %v2445_v43, %v2452_v27 }
 0xa64   :  { %v2454_v54 = vmul.f32 %v2453_v44, %v2453_v44 }
 0xa66   :  { %2455 = vadd.xlane.f32.xlu0 %v2454_v54 }
 0xad9   :  { %v2456_v24 = vpop.xlane.xlu0 %2455 }
 0xada   :  { %v2457_v47 = vmul.f32 %v2456_v24, %v4584_v41 }
 0xadc   :  { %v2458_v13 = vadd.f32 1e-05, %v2457_v47 }
 0xade   :  { %3989 = vrsqrt.f32 %v2458_v13  ;;  %vm2465_vm8 = vweird.f32 %v2458_v13 }
 0xae4   :  { %v3990_v45 = vpop.eup %3989 }
 0xae5   :  { %v2460_v3 = vmul.f32 %v3990_v45, %v2458_v13  ;;  %vm2466_vm7 = vweird.f32 %v3990_v45 }
 0xae6   :  { %vm2467_vm9 = vmor %vm2465_vm8, %vm2466_vm7 }
 0xae7   :  { %v2461_v42 = vmul.f32 %v3990_v45, %v2460_v3 }
 0xae9   :  { %v2462_v48 = vmul.f32 0.5, %v2461_v42 }
 0xaeb   :  { %v2463_v14 = vsub.f32 1.5, %v2462_v48 }
 0xaed   :  { %v2464_v25 = vmul.f32 %v3990_v45, %v2463_v14 }
 0xaef   :  { %v2468_v51 = vsel %vm2467_vm9, %v3990_v45, %v2464_v25 }
 0xaf0   :  { %v2469_v53 = vmul.f32 %v2468_v51, %v2453_v44 }
 0xaf2   :  { %v2471_v56 = vmul.f32 %v3973_v35, %v2469_v53 }
 0xaf4   :  { %v4870_v37 = vadd.f32 %v3974_v7, %v2471_v56 }
 0xaf6   :  { %v2477_v58 = vand.u32 2139095040, %v4870_v37  ;;  %v2474_v0 = vand.u32 2147483647, %v4870_v37  ;;  %vm2476_vm6 = vcmp.lt.s32.totalorder %v4870_v37, 0 }
 0xaf8   :  { %v2478_v60 = vshrl.u32 %v2477_v58, 23  ;;  %v2481_v6 = vand.u32 8388607, %v2474_v0  ;;  %vm2475_vm7 = vcmp.le.f32.partialorder %v2474_v0, 0.7853982 }
 0xafa   :  { %v3678_v63 = vadd.s32 4294967169, %v2478_v60  ;;  %v2482_v16 = vor.u32 8388608, %v2481_v6 }
 0xafc   :  { %v2484_v4 = vadd.s32 1, %v3678_v63  ;;  %v4889_v39 = vshll.u32 %v2482_v16, 8 }
 0xafe   :  { %vm2485_vm10 = vcmp.gt.s32.totalorder %v2484_v4, 0  ;;  %v2523_v13 = vand.u32 65535, %v4889_v39  ;;  %v2524_v61 = vshrl.u32 %v4889_v39, 16 }
 0xaff   :  { %v2486_v34 = vsel %vm2485_vm10, %v2484_v4, 0 }
 0xb00   :  { %v2488_v5 = vand.u32 31, %v2486_v34  ;;  %v4876_v10 = vshrl.u32 %v2486_v34, 5 }
 0xb02   :  { %v2489_v8 = vsub.s32 32, %v2488_v5  ;;  %v2491_v18 = vshll.u32 %v4392_v17, %v2488_v5  ;;  %v2494_v59 = vshll.u32 %v4393_v19, %v2488_v5  ;;  %v2497_v52 = vshll.u32 %v4394_v23, %v2488_v5 }
 0xb03   :  { %v2500_v29 = vshll.u32 %v4395_v26, %v2488_v5  ;;  %v2503_v36 = vshll.u32 %v4396_v30, %v2488_v5  ;;  %vm2506_vm11 = vcmp.lt.s32.totalorder %v4876_v10, 1  ;;  %vm2509_vm12 = vcmp.lt.s32.totalorder %v4876_v10, 4 }
 0xb04   :  { %v2492_v20 = vshrl.u32 %v4393_v19, %v2489_v8  ;;  %v2495_v22 = vshrl.u32 %v4394_v23, %v2489_v8  ;;  %v2498_v1 = vshrl.u32 %v4395_v26, %v2489_v8  ;;  %v2501_v40 = vshrl.u32 %v4396_v30, %v2489_v8 }
 0xb05   :  { %v2504_v31 = vshrl.u32 %v4397_v33, %v2489_v8  ;;  %vm2508_vm13 = vcmp.lt.s32.totalorder %v4876_v10, 3  ;;  %vm2507_vm14 = vcmp.lt.s32.totalorder %v4876_v10, 2  ;;  %v2490_v5 = vshrl.u32 %v4392_v17, %v2489_v8 }
 0xb06   :  { %v2493_v57 = vor.u32 %v2492_v20, %v2491_v18  ;;  %v2496_v15 = vor.u32 %v2495_v22, %v2494_v59  ;;  %v2499_v32 = vor.u32 %v2498_v1, %v2497_v52  ;;  %v2502_v12 = vor.u32 %v2501_v40, %v2500_v29 }
 0xb07   :  { %v2505_v28 = vor.u32 %v2504_v31, %v2503_v36 }
 0xb08   :  { %v2514_v43 = vsel %vm2506_vm11, %v2493_v57, %v2496_v15  ;;  %v2518_v2 = vsel %vm2506_vm11, %v2496_v15, %v2499_v32  ;;  %v2515_v38 = vsel %vm2509_vm12, %v2502_v12, 920167782  ;;  %v2511_v50 = vsel %vm2509_vm12, %v2499_v32, 2102212464 }
 0xb09   :  { %v2519_v27 = vsel %vm2509_vm12, %v2505_v28, 1326507024  ;;  %v2516_v44 = vsel %vm2508_vm13, %v2499_v32, %v2515_v38  ;;  %v2510_v52 = vsel %vm2506_vm11, %v2490_v5, %v2493_v57  ;;  %v2512_v1 = vsel %vm2508_vm13, %v2496_v15, %v2511_v50 }
 0xb0a   :  { %v2520_v54 = vsel %vm2508_vm13, %v2502_v12, %v2519_v27  ;;  %v2517_v24 = vsel %vm2507_vm14, %v2514_v43, %v2516_v44  ;;  %v2513_v8 = vsel %vm2507_vm14, %v2510_v52, %v2512_v1  ;;  %vm2617_vm11 = vweird.f32 %v4870_v37 }
 0xb0b   :  { %v2521_v47 = vsel %vm2507_vm14, %v2518_v2, %v2520_v54  ;;  %v2547_v3 = vand.u32 65535, %v2517_v24  ;;  %v2548_v42 = vshrl.u32 %v2517_v24, 16  ;;  %v2567_v2 = vmul.u32 %v4889_v39, %v2513_v8 }
 0xb0c   :  { %v2525_v45 = vand.u32 65535, %v2521_v47  ;;  %v2526_v21 = vshrl.u32 %v2521_v47, 16 }
 0xb0d   :  { %v2550_v14 = vmul.u32 %v2548_v42, %v2523_v13  ;;  %v2551_v49 = vmul.u32 %v2547_v3, %v2524_v61  ;;  %v2549_v7 = vmul.u32 %v2547_v3, %v2523_v13  ;;  %v2552_v11 = vmul.u32 %v2548_v42, %v2524_v61 }
 0xb0e   :  { %v2528_v46 = vmul.u32 %v2526_v21, %v2523_v13  ;;  %v2529_v48 = vmul.u32 %v2525_v45, %v2524_v61  ;;  %v2527_v25 = vmul.u32 %v2525_v45, %v2523_v13  ;;  %v2530_v51 = vmul.u32 %v2526_v21, %v2524_v61 }
 0xb0f   :  { %v2553_v53 = vshll.u32 %v2550_v14, 16  ;;  %v2555_v60 = vshll.u32 %v2551_v49, 16  ;;  %v2554_v20 = vshrl.u32 %v2550_v14, 16  ;;  %v2556_v36 = vshrl.u32 %v2551_v49, 16 }
 0xb10   :  { %v2531_v35 = vshll.u32 %v2528_v46, 16  ;;  %v2533_v55 = vshll.u32 %v2529_v48, 16  ;;  %v2532_v16 = vshrl.u32 %v2528_v46, 16  ;;  %v2534_v29 = vshrl.u32 %v2529_v48, 16 }
 0xb11   :  { %vm2557_vm0 = vc.u32 %v2549_v7, %v2553_v53  ;;  %v2559_v62 = vadd.s32 %v2553_v53, %v2549_v7 }
 0xb12   :  { %vm2535_vm15 = vc.u32 %v2527_v25, %v2531_v35  ;;  %v2537_v56 = vadd.s32 %v2531_v35, %v2527_v25  ;;  %v2558_v4 = vsel %vm2557_vm0, 1, %v4398_v9 }
 0xb13   :  { %v2536_v58 = vsel %vm2535_vm15, 1, %v4398_v9  ;;  %v2560_v6 = vadd.s32 %v2558_v4, %v2552_v11  ;;  %vm2561_vm2 = vc.u32 %v2559_v62, %v2555_v60  ;;  %v2563_v12 = vadd.s32 %v2559_v62, %v2555_v60 }
 0xb14   :  { %v2538_v63 = vadd.s32 %v2536_v58, %v2530_v51  ;;  %vm2539_vm1 = vc.u32 %v2537_v56, %v2533_v55  ;;  %v2562_v59 = vsel %vm2561_vm2, 1, %v4398_v9 }
 0xb15   :  { %v2540_v34 = vsel %vm2539_vm1, 1, %v4398_v9  ;;  %v2564_v22 = vadd.s32 %v2562_v59, %v2560_v6 }
 0xb16   :  { %v2542_v18 = vadd.s32 %v2540_v34, %v2538_v63 }
 0xb17   :  { %v2565_v31 = vadd.s32 %v2564_v22, %v2554_v20 }
 0xb18   :  { %v2543_v40 = vadd.s32 %v2542_v18, %v2532_v16 }
 0xb19   :  { %v2566_v28 = vadd.s32 %v2565_v31, %v2556_v36 }
 0xb1a   :  { %v2544_v32 = vadd.s32 %v2543_v40, %v2534_v29 }
 0xb1b   :  { %v2570_v43 = vadd.s32 1, %v2566_v28 }
 0xb1c   :  { %vm2569_vm3 = vc.u32 %v2544_v32, %v2563_v12  ;;  %v2568_v10 = vadd.s32 %v2563_v12, %v2544_v32 }
 0xb1d   :  { %v2571_v38 = vsel %vm2569_vm3, %v2570_v43, %v2566_v28  ;;  %v3975_v28 = vld [vmem:[#allocation19 + $0x4] ss:$0 sm:$0xff] }
 0xb1e   :  { %v2572_v27 = vadd.s32 %v2571_v38, %v2567_v2 }
 0xb20   :  { %v2573_v57 = vadd.s32 536870912, %v2572_v27 }
 0xb22   :  { %v2574_v44 = vshrl.u32 %v2573_v57, 30 }
 0xb24   :  { %v2575_v54 = vshll.u32 %v2574_v44, 30  ;;  %v2598_v55 = vsub.s32 4, %v2574_v44 }
 0xb26   :  { %v2576_v15 = vsub.s32 %v2572_v27, %v2575_v54  ;;  %v2599_v62 = vsel %vm2476_vm6, %v2598_v55, %v2574_v44 }
 0xb27   :  { %v2601_v50 = vsel %vm2475_vm7, 0, %v2599_v62  ;;  %v3922_v62 = vld [vmem:[#allocation23] sm:$0xff] }
 0xb28   :  { %vm2577_vm4 = vcmp.lt.s32.totalorder %v2576_v15, 0  ;;  %v2578_v24 = vsub.s32 0, %v2576_v15  ;;  %v2618_v18 = vadd.s32 3, %v2601_v50 }
 0xb2a   :  { %v2579_v47 = vsel %vm2577_vm4, %v2578_v24, %v2576_v15  ;;  %v2619_v52 = vand.u32 3, %v2618_v18 }
 0xb2b   :  { %v2580_v13 = vclz %v2579_v47 }
 0xb2c   :  { %vm2621_vm8 = vcmp.eq.s32.totalorder %v2619_v52, 0  ;;  %vm2624_vm9 = vcmp.eq.s32.totalorder %v2619_v52, 2  ;;  %vm2620_vm10 = vcmp.lt.s32.totalorder %v2619_v52, 2 }
 0xb2d   :  { %v3679_v61 = vadd.s32 4294967294, %v2580_v13 }
 0xb2f   :  { %vm3680_vm5 = vcmp.lt.s32.totalorder %v3679_v61, 0 }
 0xb30   :  { %v2583_v45 = vsel %vm3680_vm5, 0, %v3679_v61  ;;  %v3928_v61 = vld [vmem:[#allocation23 + $0x30] sm:$0xff] }
 0xb31   :  { %v2584_v21 = vsub.s32 32, %v2583_v45  ;;  %v2588_v3 = vsub.s32 4294967266, %v2583_v45  ;;  %v2585_v42 = vshll.u32 %v2576_v15, %v2583_v45 }
 0xb33   :  { %v2586_v46 = vshrl.u32 %v2568_v10, %v2584_v21  ;;  %v2589_v48 = vadd.s32 127, %v2588_v3  ;;  %v3927_v21 = vld [vmem:[#allocation23 + $0x28] sm:$0xff] }
 0xb35   :  { %v2587_v39 = vor.u32 %v2586_v46, %v2585_v42  ;;  %v2590_v14 = vshll.u32 %v2589_v48, 23  ;;  %v3926_v46 = vld [vmem:[#allocation23 + $0x20] sm:$0xff] }
 0xb37   :  { %v2591_v49 = vor.u32 4788187, %v2590_v14  ;;  %v2594_v35 = vcvt.s32.f32 %v2587_v39  ;;  %v3976_v39 = vld [vmem:[#allocation20 + $0x5] ss:$0 sm:$0xff]  ;;  %v3977_v14 = vld [vmem:[#allocation22 + $0x5] ss:$0 sm:$0xff] }
 0xb39   :  { %v2592_v25 = vand.u32 2147483647, %v2591_v49 }
 0xb3b   :  { %v2595_v51 = vmul.f32 %v2594_v35, %v2592_v25  ;;  %v3925_v25 = vld [vmem:[#allocation23 + $0x18] sm:$0xff] }
 0xb3d   :  { %v2596_v7 = vxor.u32 2147483648, %v2595_v51 }
 0xb3f   :  { %v2597_v53 = vsel %vm2476_vm6, %v2596_v7, %v2595_v51  ;;  %v3924_v7 = vld [vmem:[#allocation23 + $0x10] sm:$0xff] }
 0xb40   :  { %v2600_v56 = vsel %vm2475_vm7, %v4870_v37, %v2597_v53  ;;  %v3929_v37 = vld [vmem:[#allocation23 + $0x38] sm:$0xff] }
 0xb41   :  { %v2602_v11 = vmul.f32 %v2600_v56, %v2600_v56  ;;  %2960 = vmatpush.bf16.msrb.mxu1 %v3929_v37 }
 0xb43   :  { %v2603_v58 = vmul.f32 -0.001358992, %v2602_v11  ;;  %v2610_v60 = vmul.f32 -0.00019511016, %v2602_v11 }
 0xb45   :  { %v2604_v63 = vadd.f32 0.041655596, %v2603_v58  ;;  %v2611_v4 = vadd.f32 0.008332121, %v2610_v60  ;;  %2961 = vmatpush.bf16.msrb.mxu1 %v3928_v61 }
 0xb47   :  { %v2605_v34 = vmul.f32 %v2604_v63, %v2602_v11  ;;  %v2612_v6 = vmul.f32 %v2611_v4, %v2602_v11 }
 0xb49   :  { %v2606_v5 = vadd.f32 -0.4999988, %v2605_v34  ;;  %v2613_v16 = vadd.f32 -0.16666654, %v2612_v6  ;;  %2962 = vmatpush.bf16.msrb.mxu1 %v3927_v21 }
 0xb4b   :  { %v2607_v59 = vmul.f32 %v2606_v5, %v2602_v11  ;;  %v2614_v20 = vmul.f32 %v2613_v16, %v2602_v11 }
 0xb4d   :  { %v2608_v22 = vadd.f32 1.0, %v2607_v59  ;;  %v2615_v0 = vadd.f32 1.0, %v2614_v20  ;;  %2963 = vmatpush.bf16.msrb.mxu1 %v3926_v46 }
 0xb4f   :  { %v2616_v1 = vmul.f32 %v2615_v0, %v2600_v56  ;;  %v2625_v29 = vxor.u32 2147483648, %v2608_v22  ;;  %v3923_v56 = vld [vmem:[#allocation23 + $0x8] sm:$0xff] }
 0xb51   :  { %v2622_v40 = vxor.u32 2147483648, %v2616_v1  ;;  %v2626_v31 = vsel %vm2624_vm9, %v2625_v29, %v2616_v1  ;;  %2964 = vmatpush.bf16.msrb.mxu1 %v3925_v25 }
 0xb53   :  { %v2623_v36 = vsel %vm2621_vm8, %v2608_v22, %v2622_v40 }
 0xb54   :  { %v2627_v32 = vsel %vm2620_vm10, %v2623_v36, %v2626_v31 }
 0xb55   :  { %v2628_v12 = vsel %vm2617_vm11, nan, %v2627_v32  ;;  %2965 = vmatpush.bf16.msrb.mxu1 %v3924_v7 }
 0xb56   :  { %v2646_v8 = vpack.c.bf16 %v2628_v12, %v2628_v12 }
 0xb58   :  { %2705 = vmatmul.bf16.vlgmr.msrb.gmra.mxu0 %v2646_v8 }
 0xb59   :  { %2966 = vmatpush.bf16.msrb.mxu1 %v3923_v56 }
 0xb5d   :  { %2967 = vmatpush.bf16.msrb.mxu1 %v3922_v62 }
 0xbd5   :  { %v2706_v43 = vpop.f32.mrf.mxu0 }
 0xbd6   :  { %v2707_v2 = vadd.f32 %v3975_v28, %v2706_v43 }
 0xbd8   :  { %2712 = vadd.xlane.f32.xlu1 %v2707_v2 }
 0xbdd   :  { %v2708_v38 = vpop.f32.mrf.mxu0 }
 0xc4b   :  { %v2713_v27 = vpop.xlane.xlu1 %2712 }
 0xc4c   :  { %v2714_v57 = vmul.f32 %v2713_v27, %v4584_v41 }
 0xc4e   :  { %v2715_v44 = vsub.f32 %v2707_v2, %v2714_v57 }
 0xc50   :  { %v2716_v54 = vmul.f32 %v2715_v44, %v2715_v44 }
 0xc52   :  { %2717 = vadd.xlane.f32.xlu2 %v2716_v54 }
 0xcc5   :  { %v2718_v15 = vpop.xlane.xlu2 %2717 }
 0xcc6   :  { %v2719_v24 = vmul.f32 %v2718_v15, %v4584_v41 }
 0xcc8   :  { %v2720_v47 = vadd.f32 1e-05, %v2719_v24 }
 0xcca   :  { %3991 = vrsqrt.f32 %v2720_v47  ;;  %vm2727_vm13 = vweird.f32 %v2720_v47 }
 0xcd0   :  { %v3992_v13 = vpop.eup %3991 }
 0xcd1   :  { %v2722_v45 = vmul.f32 %v3992_v13, %v2720_v47  ;;  %vm2728_vm12 = vweird.f32 %v3992_v13 }
 0xcd2   :  { %vm2729_vm14 = vmor %vm2727_vm13, %vm2728_vm12 }
 0xcd3   :  { %v2723_v10 = vmul.f32 %v3992_v13, %v2722_v45 }
 0xcd5   :  { %v2724_v3 = vmul.f32 0.5, %v2723_v10 }
 0xcd7   :  { %v2725_v42 = vsub.f32 1.5, %v2724_v3 }
 0xcd9   :  { %v2726_v48 = vmul.f32 %v3992_v13, %v2725_v42 }
 0xcdb   :  { %v2730_v41 = vsel %vm2729_vm14, %v3992_v13, %v2726_v48 }
 0xcdc   :  { %v2731_v49 = vmul.f32 %v2730_v41, %v2715_v44 }
 0xcde   :  { %v2733_v35 = vmul.f32 %v3976_v39, %v2731_v49 }
 0xce0   :  { %v4933_v51 = vadd.f32 %v3977_v14, %v2733_v35 }
 0xce2   :  { %v2739_v53 = vand.u32 2139095040, %v4933_v51  ;;  %v2736_v58 = vand.u32 2147483647, %v4933_v51  ;;  %vm2738_vm11 = vcmp.lt.s32.totalorder %v4933_v51, 0 }
 0xce4   :  { %v2740_v55 = vshrl.u32 %v2739_v53, 23  ;;  %v2743_v4 = vand.u32 8388607, %v2736_v58  ;;  %vm2737_vm12 = vcmp.le.f32.partialorder %v2736_v58, 0.7853982 }
 0xce6   :  { %v3713_v11 = vadd.s32 4294967169, %v2740_v55  ;;  %v2744_v5 = vor.u32 8388608, %v2743_v4 }
 0xce8   :  { %v2746_v60 = vadd.s32 1, %v3713_v11 }
 0xcea   :  { %vm2747_vm15 = vcmp.gt.s32.totalorder %v2746_v60, 0 }
 0xceb   :  { %v2748_v63 = vsel %vm2747_vm15, %v2746_v60, 0 }
 0xcec   :  { %v2750_v50 = vand.u32 31, %v2748_v63  ;;  %v4939_v6 = vshrl.u32 %v2748_v63, 5 }
 0xcee   :  { %v2751_v34 = vsub.s32 32, %v2750_v50  ;;  %v2753_v16 = vshll.u32 %v4392_v17, %v2750_v50  ;;  %v2756_v18 = vshll.u32 %v4393_v19, %v2750_v50  ;;  %v2759_v22 = vshll.u32 %v4394_v23, %v2750_v50 }
 0xcef   :  { %v2762_v52 = vshll.u32 %v4395_v26, %v2750_v50  ;;  %v2765_v29 = vshll.u32 %v4396_v30, %v2750_v50  ;;  %vm2768_vm0 = vcmp.lt.s32.totalorder %v4939_v6, 1  ;;  %vm2771_vm1 = vcmp.lt.s32.totalorder %v4939_v6, 4 }
 0xcf0   :  { %v2754_v59 = vshrl.u32 %v4393_v19, %v2751_v34  ;;  %v2757_v20 = vshrl.u32 %v4394_v23, %v2751_v34  ;;  %v2760_v0 = vshrl.u32 %v4395_v26, %v2751_v34  ;;  %v2763_v1 = vshrl.u32 %v4396_v30, %v2751_v34 }
 0xcf1   :  { %v2766_v40 = vshrl.u32 %v4397_v33, %v2751_v34  ;;  %v4952_v19 = vshll.u32 %v2744_v5, 8  ;;  %vm2770_vm2 = vcmp.lt.s32.totalorder %v4939_v6, 3  ;;  %vm2769_vm3 = vcmp.lt.s32.totalorder %v4939_v6, 2 }
 0xcf2   :  { %v2755_v36 = vor.u32 %v2754_v59, %v2753_v16  ;;  %v2758_v31 = vor.u32 %v2757_v20, %v2756_v18  ;;  %v2761_v32 = vor.u32 %v2760_v0, %v2759_v22  ;;  %v2764_v12 = vor.u32 %v2763_v1, %v2762_v52 }
 0xcf3   :  { %v2767_v8 = vor.u32 %v2766_v40, %v2765_v29  ;;  %v2785_v27 = vand.u32 65535, %v4952_v19  ;;  %v2786_v57 = vshrl.u32 %v4952_v19, 16  ;;  %v2752_v56 = vshrl.u32 %v4392_v17, %v2751_v34 }
 0xcf4   :  { %v2776_v23 = vsel %vm2768_vm0, %v2755_v36, %v2758_v31  ;;  %v2780_v26 = vsel %vm2768_vm0, %v2758_v31, %v2761_v32  ;;  %v2777_v30 = vsel %vm2771_vm1, %v2764_v12, 920167782  ;;  %v2773_v7 = vsel %vm2771_vm1, %v2761_v32, 2102212464 }
 0xcf5   :  { %v2781_v33 = vsel %vm2771_vm1, %v2767_v8, 1326507024  ;;  %v2778_v28 = vsel %vm2770_vm2, %v2761_v32, %v2777_v30  ;;  %v2772_v50 = vsel %vm2768_vm0, %v2752_v56, %v2755_v36  ;;  %v2774_v5 = vsel %vm2770_vm2, %v2758_v31, %v2773_v7 }
 0xcf6   :  { %v2782_v43 = vsel %vm2770_vm2, %v2764_v12, %v2781_v33  ;;  %v2779_v2 = vsel %vm2769_vm3, %v2776_v23, %v2778_v28  ;;  %v2775_v17 = vsel %vm2769_vm3, %v2772_v50, %v2774_v5  ;;  %vm2879_vm0 = vweird.f32 %v4933_v51  ;;  %v3978_v5 = vld [vmem:[%s5017_s17] ss:$0 sm:$0xff] }
 0xcf7   :  { %v2783_v38 = vsel %vm2769_vm3, %v2780_v26, %v2782_v43  ;;  %v2809_v15 = vand.u32 65535, %v2779_v2  ;;  %v2810_v24 = vshrl.u32 %v2779_v2, 16  ;;  %v2829_v52 = vmul.u32 %v4952_v19, %v2775_v17 }
 0xcf8   :  { %v2787_v44 = vand.u32 65535, %v2783_v38  ;;  %v2788_v54 = vshrl.u32 %v2783_v38, 16 }
 0xcf9   :  { %v2812_v13 = vmul.u32 %v2810_v24, %v2785_v27  ;;  %v2813_v61 = vmul.u32 %v2809_v15, %v2786_v57  ;;  %v2811_v3 = vmul.u32 %v2809_v15, %v2785_v27  ;;  %v2814_v39 = vmul.u32 %v2810_v24, %v2786_v57 }
 0xcfa   :  { %v2790_v47 = vmul.u32 %v2788_v54, %v2785_v27  ;;  %v2791_v37 = vmul.u32 %v2787_v44, %v2786_v57  ;;  %v2789_v45 = vmul.u32 %v2787_v44, %v2785_v27  ;;  %v2792_v21 = vmul.u32 %v2788_v54, %v2786_v57 }
 0xcfb   :  { %v2815_v42 = vshll.u32 %v2812_v13, 16  ;;  %v2817_v14 = vshll.u32 %v2813_v61, 16  ;;  %v2816_v63 = vshrl.u32 %v2812_v13, 16  ;;  %v2818_v59 = vshrl.u32 %v2813_v61, 16 }
 0xcfc   :  { %v2793_v10 = vshll.u32 %v2790_v47, 16  ;;  %v2795_v46 = vshll.u32 %v2791_v37, 16  ;;  %v2794_v11 = vshrl.u32 %v2790_v47, 16  ;;  %v2796_v16 = vshrl.u32 %v2791_v37, 16 }
 0xcfd   :  { %vm2819_vm5 = vc.u32 %v2811_v3, %v2815_v42  ;;  %v2821_v49 = vadd.s32 %v2815_v42, %v2811_v3 }
 0xcfe   :  { %vm2797_vm4 = vc.u32 %v2789_v45, %v2793_v10  ;;  %v2799_v48 = vadd.s32 %v2793_v10, %v2789_v45  ;;  %v2820_v35 = vsel %vm2819_vm5, 1, %v4398_v9 }
 0xcff   :  { %v2798_v41 = vsel %vm2797_vm4, 1, %v4398_v9  ;;  %v2822_v55 = vadd.s32 %v2820_v35, %v2814_v39  ;;  %vm2823_vm7 = vc.u32 %v2821_v49, %v2817_v14  ;;  %v2825_v0 = vadd.s32 %v2821_v49, %v2817_v14 }
 0xd00   :  { %v2800_v25 = vadd.s32 %v2798_v41, %v2792_v21  ;;  %vm2801_vm6 = vc.u32 %v2799_v48, %v2795_v46  ;;  %v2824_v62 = vsel %vm2823_vm7, 1, %v4398_v9 }
 0xd01   :  { %v2802_v53 = vsel %vm2801_vm6, 1, %v4398_v9  ;;  %v2826_v4 = vadd.s32 %v2824_v62, %v2822_v55 }
 0xd02   :  { %v2804_v60 = vadd.s32 %v2802_v53, %v2800_v25 }
 0xd03   :  { %v2827_v20 = vadd.s32 %v2826_v4, %v2816_v63 }
 0xd04   :  { %v2805_v18 = vadd.s32 %v2804_v60, %v2794_v11 }
 0xd05   :  { %v2828_v34 = vadd.s32 %v2827_v20, %v2818_v59 }
 0xd06   :  { %v2806_v22 = vadd.s32 %v2805_v18, %v2796_v16 }
 0xd07   :  { %v2832_v9 = vadd.s32 1, %v2828_v34 }
 0xd08   :  { %vm2831_vm8 = vc.u32 %v2806_v22, %v2825_v0  ;;  %v2830_v6 = vadd.s32 %v2825_v0, %v2806_v22 }
 0xd09   :  { %v2833_v1 = vsel %vm2831_vm8, %v2832_v9, %v2828_v34 }
 0xd0a   :  { %v2834_v29 = vadd.s32 %v2833_v1, %v2829_v52 }
 0xd0c   :  { %v2835_v40 = vadd.s32 536870912, %v2834_v29 }
 0xd0e   :  { %v2836_v36 = vshrl.u32 %v2835_v40, 30 }
 0xd10   :  { %v2837_v32 = vshll.u32 %v2836_v36, 30  ;;  %v2860_v37 = vsub.s32 4, %v2836_v36 }
 0xd12   :  { %v2838_v31 = vsub.s32 %v2834_v29, %v2837_v32  ;;  %v2861_v21 = vsel %vm2738_vm11, %v2860_v37, %v2836_v36 }
 0xd13   :  { %v2863_v46 = vsel %vm2737_vm12, 0, %v2861_v21 }
 0xd14   :  { %vm2839_vm9 = vcmp.lt.s32.totalorder %v2838_v31, 0  ;;  %v2840_v12 = vsub.s32 0, %v2838_v31  ;;  %v2880_v49 = vadd.s32 3, %v2863_v46 }
 0xd16   :  { %v2841_v8 = vsel %vm2839_vm9, %v2840_v12, %v2838_v31  ;;  %v2881_v53 = vand.u32 3, %v2880_v49 }
 0xd17   :  { %v2842_v23 = vclz %v2841_v8 }
 0xd18   :  { %vm2883_vm13 = vcmp.eq.s32.totalorder %v2881_v53, 0  ;;  %vm2886_vm14 = vcmp.eq.s32.totalorder %v2881_v53, 2  ;;  %vm2882_vm15 = vcmp.lt.s32.totalorder %v2881_v53, 2 }
 0xd19   :  { %v3714_v26 = vadd.s32 4294967294, %v2842_v23 }
 0xd1b   :  { %vm3715_vm10 = vcmp.lt.s32.totalorder %v3714_v26, 0 }
 0xd1c   :  { %v2845_v30 = vsel %vm3715_vm10, 0, %v3714_v26 }
 0xd1d   :  { %v2846_v33 = vsub.s32 32, %v2845_v30  ;;  %v2850_v28 = vsub.s32 4294967266, %v2845_v30  ;;  %v2847_v43 = vshll.u32 %v2838_v31, %v2845_v30 }
 0xd1f   :  { %v2848_v2 = vshrl.u32 %v2830_v6, %v2846_v33  ;;  %v2851_v38 = vadd.s32 127, %v2850_v28 }
 0xd21   :  { %v2849_v19 = vor.u32 %v2848_v2, %v2847_v43  ;;  %v2852_v27 = vshll.u32 %v2851_v38, 23 }
 0xd23   :  { %v2853_v57 = vor.u32 4788187, %v2852_v27  ;;  %v2856_v54 = vcvt.s32.f32 %v2849_v19 }
 0xd25   :  { %v2854_v44 = vand.u32 2147483647, %v2853_v57 }
 0xd27   :  { %v2857_v15 = vmul.f32 %v2856_v54, %v2854_v44 }
 0xd29   :  { %v2858_v24 = vxor.u32 2147483648, %v2857_v15 }
 0xd2b   :  { %v2859_v47 = vsel %vm2738_vm11, %v2858_v24, %v2857_v15 }
 0xd2c   :  { %v2862_v13 = vsel %vm2737_vm12, %v4933_v51, %v2859_v47 }
 0xd2d   :  { %v2864_v61 = vmul.f32 %v2862_v13, %v2862_v13 }
 0xd2f   :  { %v2865_v45 = vmul.f32 -0.001358992, %v2864_v61  ;;  %v2872_v10 = vmul.f32 -0.00019511016, %v2864_v61 }
 0xd31   :  { %v2866_v3 = vadd.f32 0.041655596, %v2865_v45  ;;  %v2873_v42 = vadd.f32 0.008332121, %v2872_v10 }
 0xd33   :  { %v2867_v48 = vmul.f32 %v2866_v3, %v2864_v61  ;;  %v2874_v39 = vmul.f32 %v2873_v42, %v2864_v61 }
 0xd35   :  { %v2868_v41 = vadd.f32 -0.4999988, %v2867_v48  ;;  %v2875_v14 = vadd.f32 -0.16666654, %v2874_v39 }
 0xd37   :  { %v2869_v25 = vmul.f32 %v2868_v41, %v2864_v61  ;;  %v2876_v35 = vmul.f32 %v2875_v14, %v2864_v61 }
 0xd39   :  { %v2870_v7 = vadd.f32 1.0, %v2869_v25  ;;  %v2877_v58 = vadd.f32 1.0, %v2876_v35 }
 0xd3b   :  { %v2878_v55 = vmul.f32 %v2877_v58, %v2862_v13  ;;  %v2887_v56 = vxor.u32 2147483648, %v2870_v7 }
 0xd3d   :  { %v2884_v11 = vxor.u32 2147483648, %v2878_v55  ;;  %v2888_v62 = vsel %vm2886_vm14, %v2887_v56, %v2878_v55 }
 0xd3f   :  { %v2885_v60 = vsel %vm2883_vm13, %v2870_v7, %v2884_v11 }
 0xd40   :  { %v2889_v63 = vsel %vm2882_vm15, %v2885_v60, %v2888_v62 }
 0xd41   :  { %v2890_v4 = vsel %vm2879_vm0, nan, %v2889_v63 }
 0xd42   :  { %v2907_v50 = vpack.c.bf16 %v2890_v4, %v2890_v4 }
 0xd44   :  { %2968 = vmatmul.bf16.vlgmr.msrb.gmra.mxu1 %v2907_v50 }
 0xdc1   :  { %v2969_v16 = vpop.f32.mrf.mxu1 }
 0xdc2   :  { %v2970_v18 = vadd.f32 %v3978_v5, %v2969_v16 }
 0xdc4   :  { %2973 = vst [vmem:[#allocation25] sm:$0xff] %v2970_v18 }
 0xdc5   :  { %2984 = dma.vmem_to_hbm [thread:$0]  %s2980_s14, 128, %s2982_s5, [#allocation4]  }
 0xdc9   :  { %v2971_v51 = vpop.f32.mrf.mxu1 }
 0xdca   :  { %4369 = dma.done.wait [#allocation4], 128  }
 0xdcb   :  { %4370 = vsyncadd [#allocation4], 4294967168 }
 0xdcc   :  { %2989 = vsyncpa [#allocation3], 1 }
 0xdcd   :  { %2990 = vsyncpa [#allocation6], 1 }
 0xdce   :  { %2991 = vsyncpa [#allocation9], 1 }
 0xdcf   :  { %2992 = vsyncpa [#allocation12], 1 }
 0xdd0   :  { %2993 = vsyncpa [#allocation15], 1 }
 0xdd1   :  { %2994 = vsyncpa [#allocation18], 1 }
 0xdd2   :  { %2995 = vsyncpa [#allocation21], 1 }
 0xdd3   :  { %2996 = vsyncpa [#allocation24], 1 }
 0xdd4   :  { %2997 = vsyncpa [#allocation4], 1 }

</bundles_post_ra>
